<compile_context>
chip_gen: v5e
topology: v5e:2x2
jax: 0.10.0
libtpu: 0.0.40
codegen_flags: <defaults>
</compile_context>

<pallas_src>
import math

import jax
import jax.numpy as jnp
from jax import lax
from jax.experimental import pallas as pl
from jax.experimental.pallas import tpu as pltpu


_INV_SQRT2 = 1.0 / math.sqrt(2.0)


def _gelu_exact_f32(h):
    # Exact GELU (erf formulation) == PyTorch nn.GELU default, in f32.
    return 0.5 * h * (1.0 + lax.erf(h * _INV_SQRT2))


# --------------------------------------------------------------------------
# Kernel bodies
# --------------------------------------------------------------------------
def _ffn_resident_kernel(x_ref, w1_ref, b1_ref, w2_ref, b2_ref, o_ref):
    """Weight-resident path: grid = (M tiles,), full W1/W2 in VMEM."""
    h = jnp.dot(x_ref[...], w1_ref[...], preferred_element_type=jnp.float32)
    h = h + b1_ref[...].astype(jnp.float32)
    h = _gelu_exact_f32(h)
    y = jnp.dot(h.astype(w2_ref.dtype), w2_ref[...],
                preferred_element_type=jnp.float32)
    o_ref[...] = (y + b2_ref[...].astype(jnp.float32)).astype(o_ref.dtype)


def _ffn_kstream_kernel(x_ref, w1_ref, b1_ref, w2_ref, b2_ref, o_ref, acc_ref):
    """K-streaming path: grid = (M tiles, K tiles over hidden dim)."""
    k = pl.program_id(1)

    @pl.when(k == 0)
    def _():
        acc_ref[...] = jnp.zeros_like(acc_ref)

    # Linear 1, k-slice of the hidden dim: (bm, dim) @ (dim, bk) -> (bm, bk).
    h = jnp.dot(x_ref[...], w1_ref[...], preferred_element_type=jnp.float32)
    h = h + b1_ref[...].astype(jnp.float32)
    h = _gelu_exact_f32(h)

    # Linear 2 partial product for this k-slice: (bm, bk) @ (bk, dim).
    acc_ref[...] += jnp.dot(h.astype(w2_ref.dtype), w2_ref[...],
                            preferred_element_type=jnp.float32)

    @pl.when(k == pl.num_programs(1) - 1)
    def _():
        o_ref[...] = (acc_ref[...]
                      + b2_ref[...].astype(jnp.float32)).astype(o_ref.dtype)


# --------------------------------------------------------------------------
# Wrapper / tiling heuristics
# --------------------------------------------------------------------------
def _round_up(x, m):
    return ((x + m - 1) // m) * m


def _sublane_align(itemsize):
    # Sub-32-bit dtypes pack along sublanes: bf16 -> 16 rows/vreg, int8 -> 32.
    return {4: 8, 2: 16, 1: 32}.get(int(itemsize), 8)


def _vmem_capacity_bytes():
    try:
        return int(pltpu.get_tpu_info().vmem_capacity_bytes)
    except Exception:
        return 64 << 20  # conservative (v7x per-TensorCore)


def feed_forward(x, w1, b1, w2, b2, *, block_m=None, block_k=None):
    """FeedForward: Linear(dim->inner) -> GELU -> Linear(inner->dim).

    x: (B, N, dim), channels last (nn.Linear convention). Works for f32 or
    bf16 activations/weights; matmuls accumulate in f32. Dropout (eval) is a
    no-op and not emitted.
    """
    B, N, dim = x.shape
    inner = w1.shape[1]
    M = B * N

    x_it = int(x.dtype.itemsize)
    w_it = int(w1.dtype.itemsize)
    b_it = int(b1.dtype.itemsize)
    sub = _sublane_align(x_it)

    vmem_cap = _vmem_capacity_bytes()
    budget = int(vmem_cap * 0.75)          # leave pipeline/regalloc headroom
    resident_budget = int(vmem_cap * 0.375)  # ~24 MiB on v7x, ~48 MiB on v5e/v6e

    def per_tile_bytes(bm, bk):
        t = 2 * bm * dim * x_it            # x row tile (double-buffered)
        t += 2 * bm * dim * x_it           # output tile (double-buffered)
        t += bm * bk * 4                   # f32 hidden intermediate
        t += bm * dim * 4                  # f32 second-matmul result / acc
        return t

    # ---------------- Path selection + tiling ----------------
    inner_p = _round_up(inner, 128)        # lane-align the hidden dim
    weight_bytes = 2 * dim * inner_p * w_it + inner_p * b_it + dim * b_it
    resident = weight_bytes <= resident_budget

    if resident:
        bk = inner_p
        bm_cap = min(block_m or 1024, _round_up(M, sub))
        bm = max(sub, (bm_cap // sub) * sub)
        while bm > sub and weight_bytes + per_tile_bytes(bm, inner_p) > budget:
            bm = max(sub, ((bm // 2) // sub) * sub)
        if weight_bytes + per_tile_bytes(bm, inner_p) > budget:
            resident = False               # extremely wide dim: fall back

    if not resident:
        # K-streaming fallback; bk snapped to 256 (v6e/v7x MXU width), 128 last.
        if block_k is not None:
            bk_candidates = [max(128, (int(block_k) // 128) * 128)]
        elif vmem_cap >= (96 << 20):       # v5e/v6e: 128 MiB physical
            bk_candidates = [1024, 512, 256, 128]
        else:                              # v7x: 64 MiB per TensorCore
            bk_candidates = [512, 256, 128]
        if block_m is not None:
            bm_candidates = [max(sub, (int(block_m) // sub) * sub)]
        elif vmem_cap >= (96 << 20):
            bm_candidates = [512, 256, 128, 64, 32, 16, 8]
        else:
            bm_candidates = [256, 128, 64, 32, 16, 8]
        bm_candidates = [b for b in bm_candidates if b >= sub] or [sub]

        chosen = None
        for bk_c in bk_candidates:
            for bm_c in bm_candidates:
                bm_eff = min(bm_c, _round_up(M, sub))
                bm_eff = max(sub, (bm_eff // sub) * sub)
                wt = 2 * (2 * dim * bk_c) * w_it + 2 * (bk_c + dim) * b_it
                if wt + per_tile_bytes(bm_eff, bk_c) <= budget:
                    chosen = (bm_eff, bk_c)
                    break
            if chosen is not None:
                break
        if chosen is None:
            chosen = (sub, 128)
        bm, bk = chosen
        inner_p = _round_up(inner, bk)     # zero-pad hidden to a bk multiple

    m_pad = _round_up(M, bm)
    # v7x megacore: make sure the "parallel" M axis has >= 2 steps so both
    # TensorCores get work (cheap no-op penalty on single-TC v5e/v6e).
    if m_pad // bm < 2 and M > sub:
        bm = max(sub, _round_up(pl.cdiv(M, 2), sub))
        m_pad = _round_up(M, bm)
    grid_m = m_pad // bm

    # ---------------- Operand padding / reshape ----------------
    x2 = x.reshape(M, dim)
    if m_pad != M:
        x2 = jnp.pad(x2, ((0, m_pad - M), (0, 0)))
    if inner_p != inner:
        # Zero-padded hidden columns: GELU(0 + 0) = 0, times zero W2 rows = 0,
        # so they contribute exactly nothing to the output.
        w1 = jnp.pad(w1, ((0, 0), (0, inner_p - inner)))
        b1 = jnp.pad(b1, ((0, inner_p - inner),))
        w2 = jnp.pad(w2, ((0, inner_p - inner), (0, 0)))
    b1_2 = b1.reshape(1, inner_p)
    b2_2 = b2.reshape(1, dim)

    # ---------------- Cost estimate (truthful DMA traffic) ----------------
    weight_read_factor = 1 if resident else grid_m
    bytes_accessed = int(
        m_pad * dim * x_it                       # x read
        + m_pad * dim * x_it                     # out write
        + weight_read_factor * (2 * dim * inner_p) * w_it
        + inner_p * b_it + dim * b_it)
    cost = pl.CostEstimate(
        flops=int(4 * m_pad * dim * inner_p),    # two matmuls, 2*M*dim*inner each
        transcendentals=int(m_pad * inner_p),    # erf per hidden element
        bytes_accessed=bytes_accessed)

    # ---------------- Explicit VMEM limit from real footprint ----------------
    if resident:
        footprint = weight_bytes + per_tile_bytes(bm, inner_p)
    else:
        footprint = (2 * (2 * dim * bk) * w_it + 2 * (bk + dim) * b_it
                     + per_tile_bytes(bm, bk))
    vmem_limit = int(min(vmem_cap, max(footprint + (8 << 20), 32 << 20)))

    # ---------------- pallas_call ----------------
    if resident:
        out = pl.pallas_call(
            _ffn_resident_kernel,
            out_shape=jax.ShapeDtypeStruct((m_pad, dim), x.dtype),
            grid_spec=pltpu.PrefetchScalarGridSpec(
                num_scalar_prefetch=0,
                grid=(grid_m,),
                in_specs=[
                    pl.BlockSpec((bm, dim), lambda i: (i, 0)),       # x tile
                    pl.BlockSpec((dim, inner_p), lambda i: (0, 0)),  # W1 (resident)
                    pl.BlockSpec((1, inner_p), lambda i: (0, 0)),    # b1
                    pl.BlockSpec((inner_p, dim), lambda i: (0, 0)),  # W2 (resident)
                    pl.BlockSpec((1, dim), lambda i: (0, 0)),        # b2
                ],
                out_specs=pl.BlockSpec((bm, dim), lambda i: (i, 0)),
            ),
            compiler_params=pltpu.CompilerParams(
                dimension_semantics=("parallel",),
                vmem_limit_bytes=vmem_limit),
            cost_estimate=cost,
        )(x2, w1, b1_2, w2, b2_2)
    else:
        grid = (grid_m, inner_p // bk)
        out = pl.pallas_call(
            _ffn_kstream_kernel,
            out_shape=jax.ShapeDtypeStruct((m_pad, dim), x.dtype),
            grid_spec=pltpu.PrefetchScalarGridSpec(
                num_scalar_prefetch=0,
                grid=grid,
                in_specs=[
                    pl.BlockSpec((bm, dim), lambda i, k: (i, 0)),    # x tile
                    pl.BlockSpec((dim, bk), lambda i, k: (0, k)),    # W1 k-slice
                    pl.BlockSpec((1, bk), lambda i, k: (0, k)),      # b1 k-slice
                    pl.BlockSpec((bk, dim), lambda i, k: (k, 0)),    # W2 k-slice
                    pl.BlockSpec((1, dim), lambda i, k: (0, 0)),     # b2
                ],
                out_specs=pl.BlockSpec((bm, dim), lambda i, k: (i, 0)),
                scratch_shapes=[pltpu.VMEM((bm, dim), jnp.float32)],
            ),
            compiler_params=pltpu.CompilerParams(
                dimension_semantics=("parallel", "arbitrary"),
                vmem_limit_bytes=vmem_limit),
            cost_estimate=cost,
        )(x2, w1, b1_2, w2, b2_2)

    if m_pad != M:
        out = out[:M]
    return out.reshape(B, N, dim)


def init_params(key, dim, mult=4, dtype=jnp.float32):
    """Deterministic init mirroring nn.Linear (uniform +-1/sqrt(fan_in))."""
    inner = int(dim * mult)
    k1, k2, k3, k4 = jax.random.split(key, 4)
    lim1 = 1.0 / math.sqrt(dim)
    lim2 = 1.0 / math.sqrt(inner)
    w1 = jax.random.uniform(k1, (dim, inner), dtype, minval=-lim1, maxval=lim1)
    b1 = jax.random.uniform(k2, (inner,), dtype, minval=-lim1, maxval=lim1)
    w2 = jax.random.uniform(k3, (inner, dim), dtype, minval=-lim2, maxval=lim2)
    b2 = jax.random.uniform(k4, (dim,), dtype, minval=-lim2, maxval=lim2)
    return w1, b1, w2, b2


if __name__ == "__main__":
    # TODO(synk): Dropout layers are eval-mode no-ops and are intentionally not emitted.
    key = jax.random.PRNGKey(0)
    kx, kp = jax.random.split(key)

    # Small but lane-aligned config: dim is a multiple of 128 so output stores
    # are lane-dense; inner = dim * mult = 512; M = B*N = 128 rows.
    B, N, dim, mult = 2, 64, 128, 4
    x = jax.random.normal(kx, (B, N, dim), dtype=jnp.float32)
    w1, b1, w2, b2 = init_params(kp, dim, mult, dtype=jnp.float32)

    # --- f32 run (weight-resident path): exact-semantics check vs pure JAX. ---
    out = jax.block_until_ready(feed_forward(x, w1, b1, w2, b2))
    h_ref = jnp.dot(x, w1) + b1
    h_ref = 0.5 * h_ref * (1.0 + lax.erf(h_ref / math.sqrt(2.0)))
    ref = jnp.dot(h_ref, w2) + b2
    assert out.shape == (B, N, dim)
    assert jnp.allclose(out, ref, atol=1e-4, rtol=1e-4), float(
        jnp.max(jnp.abs(out - ref)))

    # --- bf16 fast path (MXU-native operands, f32 accumulation). ---
    xb = x.astype(jnp.bfloat16)
    pb = [p.astype(jnp.bfloat16) for p in (w1, b1, w2, b2)]
    out_bf16 = jax.block_until_ready(feed_forward(xb, *pb))
    err = float(jnp.max(jnp.abs(out_bf16.astype(jnp.float32) - ref)))
    assert out_bf16.dtype == jnp.bfloat16 and err < 0.1, err

    # --- Exercise the K-streaming fallback path explicitly (small blocks). ---
    out_stream = jax.block_until_ready(
        feed_forward(x, w1, b1, w2, b2, block_m=64, block_k=128))
    # Force non-resident behavior check only if the fallback was not taken;
    # either way, the result must match the reference.
    assert jnp.allclose(out_stream, ref, atol=1e-4, rtol=1e-4), float(
        jnp.max(jnp.abs(out_stream - ref)))

    print("KERNEL_OK")
</pallas_src>

<mosaic_0001>
module attributes {stable_mosaic.version = 11 : i64} {
  func.func @_ffn_resident_kernel(%arg0: i32, %arg1: memref<64x128xf32, #tpu.memory_space<vmem>>, %arg2: memref<128x512xf32, #tpu.memory_space<vmem>>, %arg3: memref<1x512xf32, #tpu.memory_space<vmem>>, %arg4: memref<512x128xf32, #tpu.memory_space<vmem>>, %arg5: memref<1x128xf32, #tpu.memory_space<vmem>>, %arg6: memref<64x128xf32, #tpu.memory_space<vmem>>) attributes {dimension_semantics = [#tpu.dimension_semantics<parallel>], iteration_bounds = array<i64: 2>, scalar_prefetch = 0 : i64, scratch_operands = 0 : i64, tpu.core_type = #tpu.core_type<tc>, window_params = [{transform_indices = @transform_0, window_bounds = array<i64: 64, 128>}, {pipeline_mode = #tpu.pipeline_mode<synchronous>, transform_indices = @transform_1, window_bounds = array<i64: 128, 512>}, {pipeline_mode = #tpu.pipeline_mode<synchronous>, transform_indices = @transform_2, window_bounds = array<i64: 1, 512>}, {pipeline_mode = #tpu.pipeline_mode<synchronous>, transform_indices = @transform_3, window_bounds = array<i64: 512, 128>}, {pipeline_mode = #tpu.pipeline_mode<synchronous>, transform_indices = @transform_4, window_bounds = array<i64: 1, 128>}, {transform_indices = @transform_5, window_bounds = array<i64: 64, 128>}]} {
    %c0 = arith.constant 0 : index
    %c0_0 = arith.constant 0 : index
    %0 = vector.load %arg1[%c0, %c0_0] : memref<64x128xf32, #tpu.memory_space<vmem>>, vector<64x128xf32>
    %c0_1 = arith.constant 0 : index
    %c0_2 = arith.constant 0 : index
    %1 = vector.load %arg2[%c0_1, %c0_2] : memref<128x512xf32, #tpu.memory_space<vmem>>, vector<128x512xf32>
    %cst = arith.constant dense<0.000000e+00> : vector<64x512xf32>
    %2 = tpu.matmul %0, %1, %cst {dimension_numbers = #tpu.dot_dimension_numbers<[1], [0], [0], [1], [0, 0, 1, 1], [], []>} : vector<64x128xf32>, vector<128x512xf32>, vector<64x512xf32> -> vector<64x512xf32>
    %c0_3 = arith.constant 0 : index
    %c0_4 = arith.constant 0 : index
    %3 = vector.load %arg3[%c0_3, %c0_4] : memref<1x512xf32, #tpu.memory_space<vmem>>, vector<1x512xf32>
    %4 = vector.broadcast %3 : vector<1x512xf32> to vector<64x512xf32>
    %5 = arith.addf %2, %4 : vector<64x512xf32>
    %cst_5 = arith.constant 5.000000e-01 : f32
    %6 = vector.broadcast %cst_5 : f32 to vector<64x512xf32>
    %7 = arith.mulf %6, %5 : vector<64x512xf32>
    %cst_6 = arith.constant 0.707106769 : f32
    %8 = vector.broadcast %cst_6 : f32 to vector<64x512xf32>
    %9 = arith.mulf %5, %8 : vector<64x512xf32>
    %10 = math.erf %9 : vector<64x512xf32>
    %cst_7 = arith.constant 1.000000e+00 : f32
    %11 = vector.broadcast %cst_7 : f32 to vector<64x512xf32>
    %12 = arith.addf %11, %10 : vector<64x512xf32>
    %13 = arith.mulf %7, %12 : vector<64x512xf32>
    %c0_8 = arith.constant 0 : index
    %c0_9 = arith.constant 0 : index
    %14 = vector.load %arg4[%c0_8, %c0_9] : memref<512x128xf32, #tpu.memory_space<vmem>>, vector<512x128xf32>
    %cst_10 = arith.constant dense<0.000000e+00> : vector<64x128xf32>
    %15 = tpu.matmul %13, %14, %cst_10 {dimension_numbers = #tpu.dot_dimension_numbers<[1], [0], [0], [1], [0, 0, 1, 1], [], []>} : vector<64x512xf32>, vector<512x128xf32>, vector<64x128xf32> -> vector<64x128xf32>
    %c0_11 = arith.constant 0 : index
    %c0_12 = arith.constant 0 : index
    %16 = vector.load %arg5[%c0_11, %c0_12] : memref<1x128xf32, #tpu.memory_space<vmem>>, vector<1x128xf32>
    %17 = vector.broadcast %16 : vector<1x128xf32> to vector<64x128xf32>
    %18 = arith.addf %15, %17 : vector<64x128xf32>
    %c0_13 = arith.constant 0 : index
    %c0_14 = arith.constant 0 : index
    %19 = vector.load %arg6[%c0_13, %c0_14] : memref<64x128xf32, #tpu.memory_space<vmem>>, vector<64x128xf32>
    tpu.vector_store %arg6[%c0_13, %c0_14], %18 {strides = array<i32>} : memref<64x128xf32, #tpu.memory_space<vmem>>, vector<64x128xf32>,
    return
  }
  func.func @transform_0(%arg0: i32) -> (i32, i32) {
    %c0_i32 = arith.constant 0 : i32
    %c0_i32_0 = arith.constant 0 : i32
    return %arg0, %c0_i32 : i32, i32
  }
  func.func @transform_1(%arg0: i32) -> (i32, i32) {
    %c0_i32 = arith.constant 0 : i32
    %c0_i32_0 = arith.constant 0 : i32
    %c0_i32_1 = arith.constant 0 : i32
    return %c0_i32, %c0_i32_0 : i32, i32
  }
  func.func @transform_2(%arg0: i32) -> (i32, i32) {
    %c0_i32 = arith.constant 0 : i32
    %c0_i32_0 = arith.constant 0 : i32
    %c0_i32_1 = arith.constant 0 : i32
    return %c0_i32, %c0_i32_0 : i32, i32
  }
  func.func @transform_3(%arg0: i32) -> (i32, i32) {
    %c0_i32 = arith.constant 0 : i32
    %c0_i32_0 = arith.constant 0 : i32
    %c0_i32_1 = arith.constant 0 : i32
    return %c0_i32, %c0_i32_0 : i32, i32
  }
  func.func @transform_4(%arg0: i32) -> (i32, i32) {
    %c0_i32 = arith.constant 0 : i32
    %c0_i32_0 = arith.constant 0 : i32
    %c0_i32_1 = arith.constant 0 : i32
    return %c0_i32, %c0_i32_0 : i32, i32
  }
  func.func @transform_5(%arg0: i32) -> (i32, i32) {
    %c0_i32 = arith.constant 0 : i32
    %c0_i32_0 = arith.constant 0 : i32
    return %arg0, %c0_i32 : i32, i32
  }
}

</mosaic_0001>

<bundles_post_ra>
// kernel: tpu_custom_call.1
= control target key start
LH: loop header
LB: loop body
LE: loop exit
PB: predicated region body
PF: predicated region fallthrough
CT: control target
= control target key end

     0   :  { %10 = vsyncpa [#allocation3], 0  ;;  %s4387_s0 = inlined_call_operand.hbm [shape: f32[128,128], index: 0, kind: input, shape index: {}]   ;;  %s4388_s1 = inlined_call_operand.hbm [shape: f32[128,512], index: 1, kind: input, shape index: {}]   ;;  %s4389_s2 = inlined_call_operand.hbm [shape: f32[1,512], index: 2, kind: input, shape index: {}]   ;;  %s4390_s3 = inlined_call_operand.hbm [shape: f32[512,128], index: 3, kind: input, shape index: {}]   ;;  %s4391_s4 = inlined_call_operand.vmem [shape: f32[1,128], index: 4, kind: input, shape index: {}]   ;;  %s4392_s5 = inlined_call_operand.hbm [shape: f32[128,128], index: 5, kind: output, shape index: {}]  }
   0x1   :  { %12 = vsyncpa [#allocation3 + $0x1], 0 }
   0x2   :  { %13 = vsyncpa [#allocation6], 0 }
   0x3   :  { %14 = vsyncpa [#allocation9], 0 }
   0x4   :  { %15 = vsyncpa [#allocation4], 0 }
   0x5   :  { %17 = vsyncpa [#allocation4 + $0x1], 0  ;;  %s2744_s18 = smov 0   ;;  %s2746_s19 = smov 0  }
   0x6   :  { %s2748_s20 = smov 0   ;;  %s2750_s21 = smov 0  }
   0x7 LB: > { %s2765_s22 = sadd.s32 4294967295, %s2703_s21   ;;  %s2307_s23 = sadd.s32 4294967294, %s2703_s21   ;;  %s2703_s21 = sphi %s2750_s21, %s4631_s21   ;;  %s2699_s20 = sphi %s2748_s20, %s4630_s20   ;;  %s2695_s19 = sphi %s2746_s19, %s4629_s19   ;;  %s2691_s18 = sphi %s2744_s18, %s4628_s18  }
   0x8   : > { %p43_p0 = scmp.ne.s32.totalorder %s2695_s19, %s2691_s18  ;;  %p44_p1 = scmp.eq.s32.totalorder %s2765_s22, 0 }
   0x9   : > { %p151_p2 = scmp.eq.s32.totalorder %s2765_s22, 1  ;;  %p157_p3 = scmp.eq.s32.totalorder %s2307_s23, 1 }
   0xa   : > { %p2774_p4 = por %p44_p1, %p43_p0  ;;  %p2308_p5 = scmp.ge.s32.totalorder %s2703_s21, 1 }
   0xb   : > { %p2779_p6 = por %p157_p3, %p43_p0  ;;  %p164_p7 = scmp.lt.s32.totalorder %s2703_s21, 3 }
   0xc   : > { %s175_s28 = sshll.u32 %s4388_s1, 4  ;;  %s2705_s30 = smov [#allocation5]   ;;  %s176_s28 = int_to_ptr.hbm [resolvable:$true] %s175_s28 }
   0xd   : > { %p2787_p8 = pnand %p2308_p5, %p164_p7  ;;  %s177_s6 = sshll.u32 %s2705_s30, 4  ;;  %s178_s6 = int_to_ptr.vmem [resolvable:$true] %s177_s6 }
   0xe   : > { %s190_s10 = sshll.u32 %s4389_s2, 4  ;;  %s2706_s11 = smov 512   ;;  %s191_s10 = int_to_ptr.hbm [resolvable:$true] %s190_s10 }
   0xf   : > { %p2377_p9 = pneg %p2787_p8  ;;  %s2707_s12 = smov 32  }
  0x10   : > { %s2708_s13 = smov [#allocation7]   ;;  %s201_s17 = sshll.u32 %s4390_s3, 4  ;;  %s202_s17 = int_to_ptr.hbm [resolvable:$true] %s201_s17 }
  0x11   : > { %p2795_p10 = pnand %p2377_p9, %p44_p1  ;;  %s192_s14 = sshll.u32 %s2708_s13, 4  ;;  %s193_s14 = int_to_ptr.vmem [resolvable:$true] %s192_s14 }
  0x12   : > { %s2709_s23 = smov [#allocation8]   ;;  %s4393_s27 = smov 128  }
  0x13   : > { %2380 = dma.hbm_to_vmem [thread:$0]  (!%p2795_p10), %s176_s28, 8192, %s178_s6, [#allocation6], %s2706_s11, %s2706_s11, %s2707_s12  }
  0x14   : > { %2383 = dma.hbm_to_vmem [thread:$0]  (!%p2795_p10), %s191_s10, 64, %s193_s14, [#allocation6]  }
  0x15   : > { %s203_s26 = sshll.u32 %s2709_s23, 4  ;;  %s2711_s28 = smov 8   ;;  %s204_s26 = int_to_ptr.vmem [resolvable:$true] %s203_s26 }
  0x16   : > { %2386 = dma.hbm_to_vmem [thread:$0]  (!%p2795_p10), %s202_s17, 8192, %s204_s26, [#allocation9], %s4393_s27, %s4393_s27, %s2711_s28  }
  0x17   : > { %s2816_s30 = sadd.s32 1, %s2703_s21   ;;  %s30_s8 = sadd.s32 1, %s2699_s20 }
  0x18   : > { %s27_s6 = ssub.s32 %s2703_s21, %s2816_s30  ;;  %p37_p13 = scmp.ne.s32.totalorder %s2699_s20, %s2695_s19 }
  0x19   : > { %p28_p12 = scmp.eq.s32.totalorder %s27_s6, 0  ;;  %p38_p0 = scmp.eq.s32.totalorder %s2703_s21, 0 }
  0x1a   : > { %p2829_p3 = por %p151_p2, %p37_p13  ;;  %p2398_p5 = scmp.lt.s32.totalorder %s2703_s21, 2 }
  0x1b   : > { %s2825_s9 = scalar_select %p28_p12, %s2699_s20, %s30_s8  }
  0x1c   : > { %s220_s7 = sand.u32 1, %s2699_s20   ;;  %s2359_s11 = sshll.u32 %s2703_s21, 6 }
  0x1d   : > { %p39_p7 = por %p38_p0, %p37_p13  ;;  %s2313_s12 = sshll.u32 %s220_s7, 6 }
  0x1e   : > { %s229_s15 = scalar_lea.hbm %s4387_s0, %s2359_s11  ;;  %s224_s17 = scalar_lea.vmem [#allocation2], %s2313_s12 }
  0x1f   : > { %s230_s16 = sshll.u32 %s229_s15, 4  ;;  %s232_s23 = sshll.u32 %s224_s17, 4  ;;  %s231_s16 = int_to_ptr.hbm [resolvable:$true] %s230_s16  ;;  %s233_s23 = int_to_ptr.vmem [resolvable:$true] %s232_s23 }
  0x20   : > { %p2839_p9 = pnand %p2398_p5, %p39_p7  ;;  %s221_s6 = scalar_lea.sflag [#allocation3], %s220_s7 }
  0x21   : > { %s2599_s8 = sshra.s32 %s231_s16, 4  ;;  %s2606_s12 = scalar_lea.hbm %s4387_s0, 128  ;;  %s2600_s8 = int_to_ptr.hbm [resolvable:$true] %s2599_s8 }
  0x22   : > { %s2601_s27 = scalar_lea.hbm %s2600_s8, 64  ;;  %p2603_p10 = pneg %p2839_p9 }
  0x23   : > { %p2602_p2 = scmp.ne.s32.totalorder %s2600_s8, %s2601_s27  ;;  %p2607_p0 = scmp.lt.s32.totalorder %s2600_s8, %s4387_s0 }
  0x24   : > { %p2608_p5 = scmp.lt.s32.totalorder %s2606_s12, %s2601_s27 }
  0x25   : > { %p2604_p12 = pnand %p2603_p10, %p2602_p2 }
  0x26   : > { %p2609_p7 = por %p2608_p5, %p2607_p0 }
  0x27   : > { %p2605_p13 = pneg %p2604_p12 }
  0x29   : > { %p2610_p11 = pnand %p2609_p7, %p2605_p13 }
  0x2b   : > { %2613 = shalt.err (!%p2610_p11)
}
  0x2c   : > { %s4434_s7 = smov 128   ;;  %244 = sbr.rel (%p2787_p8) target bundleno = 716 (0x2cc), region = 40 }
  0x2d   : > { %2390 = dma.hbm_to_vmem [thread:$0]  (!%p2839_p9), %s231_s16, 1024, %s233_s23, %s221_s6, %s4434_s7, %s4434_s7, %s2711_s28  }
  0x31   : > { %s2859_s17 = sand.u32 1, %s2695_s19  }
  0x32   : > { %s2317_s27 = sshll.u32 %s2859_s17, 6  ;;  %s247_s8 = scalar_lea.sflag [#allocation3], %s2859_s17 }
  0x33   : > { %s2865_s11 = scalar_lea.vmem [#allocation2], %s2317_s27 }
  0x34   : > { %2674 = dma.done.wait (%p2774_p4), %s247_s8, 1024  }
  0x35   : > { %2676 = vsyncadd (%p2774_p4), %s247_s8, 4294966272 }
  0x36   : > { %2678 = dma.done.wait (%p44_p1), [#allocation6], 8256  }
  0x37   : > { %2680 = vsyncadd (%p44_p1), [#allocation6], 4294959040 }
  0x38   : > { %2682 = dma.done.wait (%p44_p1), [#allocation9], 8192  }
  0x39   : > { %2684 = vsyncadd (%p44_p1), [#allocation9], 4294959104  ;;  %v363_v0 = vld [vmem:[#allocation5 + $0x1e0] sm:$0xff]  ;;  %v364_v1 = vld [vmem:[#allocation5 + $0x1e8] sm:$0xff]  ;;  %s4327_s28 = scalar_lea.vmem [#allocation10], %s2317_s27  ;;  %s2360_s16 = sshll.u32 %s2765_s22, 6 }
  0x3a   : > { %v365_v2 = vld [vmem:[#allocation5 + $0x1f0] sm:$0xff]  ;;  %377 = vmatpush.msra.mxu0 %v363_v0  ;;  %418 = vmatpush.msra.mxu1 %v364_v1  ;;  %v366_v3 = vld [vmem:[#allocation5 + $0x1f8] sm:$0xff]  ;;  %v359_v4 = vld [vmem:[#allocation5 + $0x1c0] sm:$0xff]  ;;  %s2201_s6 = scalar_lea.hbm %s4392_s5, %s2360_s16  ;;  %s2202_s13 = sshll.u32 %s4327_s28, 4  ;;  %s2203_s13 = int_to_ptr.vmem [resolvable:$true] %s2202_s13 }
  0x3b   : > { %v360_v5 = vld [vmem:[#allocation5 + $0x1c8] sm:$0xff]  ;;  %459 = vmatpush.msra.mxu2 %v365_v2  ;;  %500 = vmatpush.msra.mxu3 %v366_v3  ;;  %v361_v6 = vld [vmem:[#allocation5 + $0x1d0] sm:$0xff]  ;;  %v362_v7 = vld [vmem:[#allocation5 + $0x1d8] sm:$0xff]  ;;  %s2204_s12 = sshll.u32 %s2201_s6, 4  ;;  %s2190_s14 = scalar_lea.sflag [#allocation4], %s2859_s17  ;;  %s2205_s12 = int_to_ptr.hbm [resolvable:$true] %s2204_s12 }
  0x3c   : > { %v355_v8 = vld [vmem:[#allocation5 + $0x1a0] sm:$0xff]  ;;  %378 = vmatpush.msra.mxu0 %v359_v4  ;;  %419 = vmatpush.msra.mxu1 %v360_v5  ;;  %v356_v9 = vld [vmem:[#allocation5 + $0x1a8] sm:$0xff]  ;;  %v357_v10 = vld [vmem:[#allocation5 + $0x1b0] sm:$0xff]  ;;  %s2643_s15 = sshra.s32 %s2205_s12, 4  ;;  %s2649_s8 = scalar_lea.hbm %s4392_s5, 128  ;;  %s2644_s15 = int_to_ptr.hbm [resolvable:$true] %s2643_s15 }
  0x3d   : > { %v358_v11 = vld [vmem:[#allocation5 + $0x1b8] sm:$0xff]  ;;  %460 = vmatpush.msra.mxu2 %v361_v6  ;;  %501 = vmatpush.msra.mxu3 %v362_v7  ;;  %v351_v12 = vld [vmem:[#allocation5 + $0x180] sm:$0xff]  ;;  %v352_v13 = vld [vmem:[#allocation5 + $0x188] sm:$0xff]  ;;  %s2645_s22 = scalar_lea.hbm %s2644_s15, 64  ;;  %p2650_p11 = scmp.lt.s32.totalorder %s2644_s15, %s4392_s5 }
  0x3e   : > { %379 = vmatpush.msra.mxu0 %v355_v8  ;;  %420 = vmatpush.msra.mxu1 %v356_v9  ;;  %v353_v14 = vld [vmem:[#allocation5 + $0x190] sm:$0xff]  ;;  %v354_v15 = vld [vmem:[#allocation5 + $0x198] sm:$0xff]  ;;  %v347_v16 = vld [vmem:[#allocation5 + $0x160] sm:$0xff]  ;;  %p2646_p1 = scmp.ne.s32.totalorder %s2644_s15, %s2645_s22  ;;  %p2651_p9 = scmp.lt.s32.totalorder %s2649_s8, %s2645_s22 }
  0x3f   : > { %461 = vmatpush.msra.mxu2 %v357_v10  ;;  %502 = vmatpush.msra.mxu3 %v358_v11  ;;  %v348_v17 = vld [vmem:[#allocation5 + $0x168] sm:$0xff]  ;;  %v349_v18 = vld [vmem:[#allocation5 + $0x170] sm:$0xff]  ;;  %v350_v19 = vld [vmem:[#allocation5 + $0x178] sm:$0xff] }
  0x40   : > { %380 = vmatpush.msra.mxu0 %v351_v12  ;;  %421 = vmatpush.msra.mxu1 %v352_v13  ;;  %v343_v20 = vld [vmem:[#allocation5 + $0x140] sm:$0xff]  ;;  %v344_v21 = vld [vmem:[#allocation5 + $0x148] sm:$0xff]  ;;  %v345_v22 = vld [vmem:[#allocation5 + $0x150] sm:$0xff]  ;;  %p2647_p4 = pnand %p2646_p1, %p2829_p3  ;;  %p2652_p2 = por %p2651_p9, %p2650_p11 }
  0x41   : > { %462 = vmatpush.msra.mxu2 %v353_v14  ;;  %503 = vmatpush.msra.mxu3 %v354_v15  ;;  %v346_v23 = vld [vmem:[#allocation5 + $0x158] sm:$0xff]  ;;  %v339_v24 = vld [vmem:[#allocation5 + $0x120] sm:$0xff]  ;;  %v340_v25 = vld [vmem:[#allocation5 + $0x128] sm:$0xff] }
  0x42   : > { %381 = vmatpush.msra.mxu0 %v347_v16  ;;  %422 = vmatpush.msra.mxu1 %v348_v17  ;;  %v341_v26 = vld [vmem:[#allocation5 + $0x130] sm:$0xff]  ;;  %v342_v27 = vld [vmem:[#allocation5 + $0x138] sm:$0xff]  ;;  %v335_v28 = vld [vmem:[#allocation5 + $0x100] sm:$0xff]  ;;  %p2648_p8 = pneg %p2647_p4 }
  0x43   : > { %463 = vmatpush.msra.mxu2 %v349_v18  ;;  %504 = vmatpush.msra.mxu3 %v350_v19  ;;  %v336_v29 = vld [vmem:[#allocation5 + $0x108] sm:$0xff]  ;;  %v337_v30 = vld [vmem:[#allocation5 + $0x110] sm:$0xff]  ;;  %v338_v31 = vld [vmem:[#allocation5 + $0x118] sm:$0xff] }
  0x44   : > { %382 = vmatpush.msra.mxu0 %v343_v20  ;;  %423 = vmatpush.msra.mxu1 %v344_v21  ;;  %v331_v32 = vld [vmem:[#allocation5 + $0xe0] sm:$0xff]  ;;  %v332_v33 = vld [vmem:[#allocation5 + $0xe8] sm:$0xff]  ;;  %v333_v34 = vld [vmem:[#allocation5 + $0xf0] sm:$0xff]  ;;  %p2653_p10 = pnand %p2652_p2, %p2648_p8 }
  0x45   : > { %464 = vmatpush.msra.mxu2 %v345_v22  ;;  %505 = vmatpush.msra.mxu3 %v346_v23  ;;  %v334_v35 = vld [vmem:[#allocation5 + $0xf8] sm:$0xff]  ;;  %v327_v36 = vld [vmem:[#allocation5 + $0xc0] sm:$0xff]  ;;  %v328_v37 = vld [vmem:[#allocation5 + $0xc8] sm:$0xff] }
  0x46   : > { %383 = vmatpush.msra.mxu0 %v339_v24  ;;  %424 = vmatpush.msra.mxu1 %v340_v25  ;;  %v329_v38 = vld [vmem:[#allocation5 + $0xd0] sm:$0xff]  ;;  %v330_v39 = vld [vmem:[#allocation5 + $0xd8] sm:$0xff]  ;;  %v323_v40 = vld [vmem:[#allocation5 + $0xa0] sm:$0xff] }
  0x47   : > { %465 = vmatpush.msra.mxu2 %v341_v26  ;;  %506 = vmatpush.msra.mxu3 %v342_v27  ;;  %v324_v41 = vld [vmem:[#allocation5 + $0xa8] sm:$0xff]  ;;  %v325_v42 = vld [vmem:[#allocation5 + $0xb0] sm:$0xff]  ;;  %v326_v43 = vld [vmem:[#allocation5 + $0xb8] sm:$0xff] }
  0x48   : > { %384 = vmatpush.msra.mxu0 %v335_v28  ;;  %425 = vmatpush.msra.mxu1 %v336_v29  ;;  %v319_v44 = vld [vmem:[#allocation5 + $0x80] sm:$0xff]  ;;  %v320_v45 = vld [vmem:[#allocation5 + $0x88] sm:$0xff]  ;;  %v321_v46 = vld [vmem:[#allocation5 + $0x90] sm:$0xff] }
  0x49   : > { %466 = vmatpush.msra.mxu2 %v337_v30  ;;  %507 = vmatpush.msra.mxu3 %v338_v31  ;;  %v322_v47 = vld [vmem:[#allocation5 + $0x98] sm:$0xff]  ;;  %v315_v48 = vld [vmem:[#allocation5 + $0x60] sm:$0xff]  ;;  %v316_v49 = vld [vmem:[#allocation5 + $0x68] sm:$0xff] }
  0x4a   : > { %385 = vmatpush.msra.mxu0 %v331_v32  ;;  %426 = vmatpush.msra.mxu1 %v332_v33  ;;  %v317_v50 = vld [vmem:[#allocation5 + $0x70] sm:$0xff]  ;;  %v318_v51 = vld [vmem:[#allocation5 + $0x78] sm:$0xff]  ;;  %v311_v52 = vld [vmem:[#allocation5 + $0x40] sm:$0xff] }
  0x4b   : > { %467 = vmatpush.msra.mxu2 %v333_v34  ;;  %508 = vmatpush.msra.mxu3 %v334_v35  ;;  %v312_v53 = vld [vmem:[#allocation5 + $0x48] sm:$0xff]  ;;  %v313_v54 = vld [vmem:[#allocation5 + $0x50] sm:$0xff]  ;;  %v314_v55 = vld [vmem:[#allocation5 + $0x58] sm:$0xff] }
  0x4c   : > { %386 = vmatpush.msra.mxu0 %v327_v36  ;;  %427 = vmatpush.msra.mxu1 %v328_v37  ;;  %v307_v56 = vld [vmem:[#allocation5 + $0x20] sm:$0xff]  ;;  %v308_v57 = vld [vmem:[#allocation5 + $0x28] sm:$0xff]  ;;  %v309_v58 = vld [vmem:[#allocation5 + $0x30] sm:$0xff] }
  0x4d   : > { %468 = vmatpush.msra.mxu2 %v329_v38  ;;  %509 = vmatpush.msra.mxu3 %v330_v39  ;;  %v310_v59 = vld [vmem:[#allocation5 + $0x38] sm:$0xff]  ;;  %v303_v60 = vld [vmem:[#allocation5] sm:$0xff]  ;;  %v304_v61 = vld [vmem:[#allocation5 + $0x8] sm:$0xff] }
  0x4e   : > { %387 = vmatpush.msra.mxu0 %v323_v40  ;;  %428 = vmatpush.msra.mxu1 %v324_v41  ;;  %v305_v62 = vld [vmem:[#allocation5 + $0x10] sm:$0xff]  ;;  %v306_v63 = vld [vmem:[#allocation5 + $0x18] sm:$0xff]  ;;  %v295_v0 = vld [vmem:[%s2865_s11] sm:$0xff] }
  0x4f   : > { %469 = vmatpush.msra.mxu2 %v325_v42  ;;  %510 = vmatpush.msra.mxu3 %v326_v43  ;;  %v296_v1 = vld [vmem:[%s2865_s11 + $0x8] sm:$0xff]  ;;  %v297_v2 = vld [vmem:[%s2865_s11 + $0x10] sm:$0xff]  ;;  %v298_v3 = vld [vmem:[%s2865_s11 + $0x18] sm:$0xff] }
  0x50   : > { %388 = vmatpush.msra.mxu0 %v319_v44  ;;  %429 = vmatpush.msra.mxu1 %v320_v45  ;;  %v1996_v4 = vld [vmem:[#allocation8 + $0x178] sm:$0xff]  ;;  %v300_v8 = vld [vmem:[%s2865_s11 + $0x28] sm:$0xff]  ;;  %v301_v9 = vld [vmem:[%s2865_s11 + $0x30] sm:$0xff] }
  0x51   : > { %470 = vmatpush.msra.mxu2 %v321_v46  ;;  %511 = vmatpush.msra.mxu3 %v322_v47  ;;  %v1964_v5 = vld [vmem:[#allocation8 + $0x78] sm:$0xff]  ;;  %v1963_v13 = vld [vmem:[#allocation8 + $0x70] sm:$0xff]  ;;  %v1994_v23 = vld [vmem:[#allocation8 + $0x168] sm:$0xff] }
  0x52   : > { %389 = vmatpush.msra.mxu0 %v315_v48  ;;  %430 = vmatpush.msra.mxu1 %v316_v49  ;;  %v2012_v6 = vld [vmem:[#allocation8 + $0x1f8] sm:$0xff]  ;;  %v1979_v14 = vld [vmem:[#allocation8 + $0xf0] sm:$0xff]  ;;  %v1962_v34 = vld [vmem:[#allocation8 + $0x68] sm:$0xff] }
  0x53   : > { %471 = vmatpush.msra.mxu2 %v317_v50  ;;  %512 = vmatpush.msra.mxu3 %v318_v51  ;;  %v299_v7 = vld [vmem:[%s2865_s11 + $0x20] sm:$0xff]  ;;  %v302_v10 = vld [vmem:[%s2865_s11 + $0x38] sm:$0xff]  ;;  %v2010_v50 = vld [vmem:[#allocation8 + $0x1e8] sm:$0xff] }
  0x54   : > { %390 = vmatpush.msra.mxu0 %v311_v52  ;;  %431 = vmatpush.msra.mxu1 %v312_v53  ;;  %v1980_v11 = vld [vmem:[#allocation8 + $0xf8] sm:$0xff]  ;;  %v1995_v19 = vld [vmem:[#allocation8 + $0x170] sm:$0xff] }
  0x55   : > { %472 = vmatpush.msra.mxu2 %v313_v54  ;;  %513 = vmatpush.msra.mxu3 %v314_v55  ;;  %v367_v12 = vld [vmem:[#allocation7] sm:$0xf]  ;;  %v2011_v20 = vld [vmem:[#allocation8 + $0x1f0] sm:$0xff] }
  0x56   : > { %391 = vmatpush.msra.mxu0 %v307_v56  ;;  %432 = vmatpush.msra.mxu1 %v308_v57  ;;  %v2887_v15 = vperm.slane %v367_v12, 0  ;;  %v2889_v16 = vperm.slane %v367_v12, 1  ;;  %v2903_v26 = vperm.slane %v367_v12, 2  ;;  %v2905_v27 = vperm.slane %v367_v12, 3 }
  0x57   : > { %473 = vmatpush.msra.mxu2 %v309_v58  ;;  %514 = vmatpush.msra.mxu3 %v310_v59 }
  0x58   : > { %392 = vmatpush.msra.mxu0 %v303_v60  ;;  %433 = vmatpush.msra.mxu1 %v304_v61 }
  0x59   : > { %474 = vmatpush.msra.mxu2 %v305_v62  ;;  %515 = vmatpush.msra.mxu3 %v306_v63 }
  0x5a   : > { %393 = vmatmul.f32.vlgmr.msra.gmra.mxu0 %v295_v0  ;;  %434 = vmatmul.f32.vlgmr.msra.gmra.mxu1 %v295_v0 }
  0x5b   : > { %475 = vmatmul.f32.vlgmr.msra.gmra.mxu2 %v295_v0  ;;  %516 = vmatmul.f32.vlgmr.msra.gmra.mxu3 %v295_v0 }
  0x5c   : > { %2099 = vmatpush.msrb.mxu2 %v1996_v4  ;;  %2017 = vmatpush.msrb.mxu0 %v1964_v5 }
  0x5d   : > { %2140 = vmatpush.msrb.mxu3 %v2012_v6  ;;  %2058 = vmatpush.msrb.mxu1 %v1980_v11 }
  0x5e   : > { %2018 = vmatpush.msrb.mxu0 %v1963_v13  ;;  %2100 = vmatpush.msrb.mxu2 %v1995_v19 }
  0x5f   : > { %2059 = vmatpush.msrb.mxu1 %v1979_v14  ;;  %2141 = vmatpush.msrb.mxu3 %v2011_v20 }
  0x60   : > { %2101 = vmatpush.msrb.mxu2 %v1994_v23  ;;  %2019 = vmatpush.msrb.mxu0 %v1962_v34 }
  0x61   : > { %2142 = vmatpush.msrb.mxu3 %v2010_v50 }
  0x62   : > { %396 = vmatmul.f32.gmra.mxu0 %v296_v1  ;;  %437 = vmatmul.f32.gmra.mxu1 %v296_v1 }
  0x63   : > { %478 = vmatmul.f32.gmra.mxu2 %v296_v1  ;;  %519 = vmatmul.f32.gmra.mxu3 %v296_v1 }
  0x6a   : > { %399 = vmatmul.f32.gmra.mxu0 %v297_v2  ;;  %440 = vmatmul.f32.gmra.mxu1 %v297_v2 }
  0x6b   : > { %481 = vmatmul.f32.gmra.mxu2 %v297_v2  ;;  %522 = vmatmul.f32.gmra.mxu3 %v297_v2 }
  0x72   : > { %402 = vmatmul.f32.gmra.mxu0 %v298_v3  ;;  %443 = vmatmul.f32.gmra.mxu1 %v298_v3 }
  0x73   : > { %484 = vmatmul.f32.gmra.mxu2 %v298_v3  ;;  %525 = vmatmul.f32.gmra.mxu3 %v298_v3 }
  0x7a   : > { %405 = vmatmul.f32.gmra.mxu0 %v299_v7  ;;  %446 = vmatmul.f32.gmra.mxu1 %v299_v7 }
  0x7b   : > { %487 = vmatmul.f32.gmra.mxu2 %v299_v7  ;;  %528 = vmatmul.f32.gmra.mxu3 %v299_v7 }
  0x82   : > { %408 = vmatmul.f32.gmra.mxu0 %v300_v8  ;;  %449 = vmatmul.f32.gmra.mxu1 %v300_v8 }
  0x83   : > { %490 = vmatmul.f32.gmra.mxu2 %v300_v8  ;;  %531 = vmatmul.f32.gmra.mxu3 %v300_v8 }
  0x8a   : > { %411 = vmatmul.f32.gmra.mxu0 %v301_v9  ;;  %452 = vmatmul.f32.gmra.mxu1 %v301_v9 }
  0x8b   : > { %493 = vmatmul.f32.gmra.mxu2 %v301_v9  ;;  %534 = vmatmul.f32.gmra.mxu3 %v301_v9 }
  0x92   : > { %414 = vmatmul.f32.gmra.mxu0 %v302_v10  ;;  %455 = vmatmul.f32.gmra.mxu1 %v302_v10 }
  0x93   : > { %496 = vmatmul.f32.gmra.mxu2 %v302_v10  ;;  %537 = vmatmul.f32.gmra.mxu3 %v302_v10 }
  0xd7   : > { %v394_v17 = vpop.f32.mrf.mxu0  ;;  %v435_v18 = vpop.f32.mrf.mxu1 }
  0xd8   : > { %v2892_v21 = vadd.f32 %v394_v17, %v2887_v15  ;;  %v2895_v22 = vadd.f32 %v435_v18, %v2889_v16  ;;  %v1978_v18 = vld [vmem:[#allocation8 + $0xe8] sm:$0xff] }
  0xd9   : > { %2060 = vmatpush.msrb.mxu1 %v1978_v18 }
  0xda   : > { %v2898_v24 = vmul.f32 0.70710677, %v2892_v21  ;;  %v2901_v25 = vmul.f32 0.70710677, %v2895_v22 }
  0xdc   : > { %v605_v28 = vmul.f32 %v2898_v24, %v2898_v24  ;;  %v645_v29 = vmul.f32 %v2901_v25, %v2901_v25 }
  0xde   : > { %v2911_v30 = vmin.f32 %v605_v28, 16.0  ;;  %v2913_v31 = vmin.f32 %v645_v29, 16.0  ;;  %v476_v32 = vpop.f32.mrf.mxu2  ;;  %v517_v33 = vpop.f32.mrf.mxu3  ;;  %v1961_v28 = vld [vmem:[#allocation8 + $0x60] sm:$0xff] }
  0xdf   : > { %v2916_v35 = vadd.f32 %v476_v32, %v2903_v26  ;;  %v2919_v36 = vadd.f32 %v517_v33, %v2905_v27  ;;  %v397_v17 = vpop.f32.mrf.mxu0  ;;  %v1977_v29 = vld [vmem:[#allocation8 + $0xe0] sm:$0xff]  ;;  %2020 = vmatpush.msrb.mxu0 %v1961_v28  ;;  %v2998_v28 = vmul.f32 0.5, %v2892_v21 }
  0xe0   : > { %v607_v37 = vmul.f32 2.1237322e-06, %v2911_v30  ;;  %v618_v38 = vmul.f32 3.8918573e-05, %v2911_v30  ;;  %v647_v39 = vmul.f32 2.1237322e-06, %v2913_v31  ;;  %2061 = vmatpush.msrb.mxu1 %v1977_v29 }
  0xe1   : > { %v658_v40 = vmul.f32 3.8918573e-05, %v2913_v31  ;;  %v2926_v41 = vmul.f32 0.70710677, %v2916_v35  ;;  %v2931_v47 = vmul.f32 0.70710677, %v2919_v36 }
  0xe2   : > { %v608_v42 = vadd.f32 0.00028619796, %v607_v37  ;;  %v619_v43 = vadd.f32 0.001143296, %v618_v38  ;;  %v648_v44 = vadd.f32 0.00028619796, %v647_v39  ;;  %v2958_v37 = vadd.f32 %v397_v17, %v2887_v15 }
  0xe3   : > { %v659_v45 = vadd.f32 0.001143296, %v658_v40  ;;  %v685_v46 = vmul.f32 %v2926_v41, %v2926_v41  ;;  %v725_v53 = vmul.f32 %v2931_v47, %v2931_v47  ;;  %v3001_v29 = vmul.f32 0.5, %v2895_v22 }
  0xe4   : > { %v609_v48 = vmul.f32 %v608_v42, %v2911_v30  ;;  %v620_v49 = vmul.f32 %v619_v43, %v2911_v30  ;;  %v649_v56 = vmul.f32 %v648_v44, %v2913_v31  ;;  %v438_v44 = vpop.f32.mrf.mxu1  ;;  %v3011_v22 = vmul.f32 0.5, %v2916_v35 }
  0xe5   : > { %v660_v51 = vmul.f32 %v659_v45, %v2913_v31  ;;  %v2936_v52 = vmin.f32 %v685_v46, 16.0  ;;  %v2944_v61 = vmin.f32 %v725_v53, 16.0  ;;  %v439_v53 = vadd.f32 %v438_v44, %v2889_v16  ;;  %4436 = vst [vmem:[#allocation16_spill] sm:$0xff] %v3001_v29  ;;  %v1990_v44 = vld [vmem:[#allocation8 + $0x148] sm:$0xff] }
  0xe6   : > { %v621_v54 = vadd.f32 0.014752088, %v620_v49  ;;  %v610_v55 = vadd.f32 0.0036580483, %v609_v48  ;;  %v650_v2 = vadd.f32 0.0036580483, %v649_v56 }
  0xe7   : > { %v661_v57 = vadd.f32 0.014752088, %v660_v51  ;;  %v698_v58 = vmul.f32 3.8918573e-05, %v2936_v52  ;;  %v687_v60 = vmul.f32 2.1237322e-06, %v2936_v52 }
  0xe8   : > { %v622_v59 = vmul.f32 %v621_v54, %v2911_v30  ;;  %v611_v1 = vmul.f32 %v610_v55, %v2911_v30  ;;  %v727_v7 = vmul.f32 2.1237322e-06, %v2944_v61  ;;  %v738_v8 = vmul.f32 3.8918573e-05, %v2944_v61  ;;  %v1993_v54 = vld [vmem:[#allocation8 + $0x160] sm:$0xff]  ;;  %4437 = vst [vmem:[#allocation17_spill] sm:$0xff] %v3011_v22 }
  0xe9   : > { %v662_v62 = vmul.f32 %v661_v57, %v2913_v31  ;;  %v699_v63 = vadd.f32 0.001143296, %v698_v58  ;;  %v688_v6 = vadd.f32 0.00028619796, %v687_v60  ;;  %v651_v13 = vmul.f32 %v650_v2, %v2913_v31  ;;  %2102 = vmatpush.msrb.mxu2 %v1993_v54  ;;  %v2009_v58 = vld [vmem:[#allocation8 + $0x1e0] sm:$0xff]  ;;  %v479_v60 = vpop.f32.mrf.mxu2 }
  0xea   : > { %v623_v0 = vadd.f32 0.112945676, %v622_v59  ;;  %v612_v12 = vadd.f32 0.05243302, %v611_v1  ;;  %v728_v20 = vadd.f32 0.00028619796, %v727_v7  ;;  %2143 = vmatpush.msrb.mxu3 %v2009_v58  ;;  %v2982_v7 = vadd.f32 %v479_v60, %v2903_v26 }
  0xeb   : > { %v663_v3 = vadd.f32 0.112945676, %v662_v62  ;;  %v700_v4 = vmul.f32 %v699_v63, %v2936_v52  ;;  %v689_v19 = vmul.f32 %v688_v6, %v2936_v52  ;;  %v739_v23 = vadd.f32 0.001143296, %v738_v8  ;;  %v1992_v59 = vld [vmem:[#allocation8 + $0x158] sm:$0xff]  ;;  %v1975_v8 = vld [vmem:[#allocation8 + $0xd0] sm:$0xff] }
  0xec   : > { %v624_v5 = vmul.f32 %v623_v0, %v2911_v30  ;;  %v613_v38 = vmul.f32 %v612_v12, %v2911_v30  ;;  %v652_v39 = vadd.f32 0.05243302, %v651_v13  ;;  %v729_v42 = vmul.f32 %v728_v20, %v2944_v61  ;;  %v1960_v0 = vld [vmem:[#allocation8 + $0x58] sm:$0xff]  ;;  %2103 = vmatpush.msrb.mxu2 %v1992_v59  ;;  %v441_v60 = vpop.f32.mrf.mxu1  ;;  %v1985_v22 = vld [vmem:[#allocation8 + $0x120] sm:$0xff] }
  0xed   : > { %v664_v9 = vmul.f32 %v663_v3, %v2913_v31  ;;  %v701_v10 = vadd.f32 0.014752088, %v700_v4  ;;  %v690_v40 = vadd.f32 0.0036580483, %v689_v19  ;;  %v740_v43 = vmul.f32 %v739_v23, %v2944_v61  ;;  %v1976_v1 = vld [vmem:[#allocation8 + $0xd8] sm:$0xff]  ;;  %2021 = vmatpush.msrb.mxu0 %v1960_v0  ;;  %v1959_v4 = vld [vmem:[#allocation8 + $0x50] sm:$0xff] }
  0xee   : > { %v625_v11 = vadd.f32 0.4994258, %v624_v5  ;;  %v2968_v49 = vmul.f32 0.70710677, %v2958_v37  ;;  %v614_v50 = vadd.f32 0.18741608, %v613_v38  ;;  %v653_v51 = vmul.f32 %v652_v39, %v2913_v31  ;;  %2062 = vmatpush.msrb.mxu1 %v1976_v1 }
  0xef   : > { %v702_v14 = vmul.f32 %v701_v10, %v2936_v52  ;;  %v665_v33 = vadd.f32 0.4994258, %v664_v9  ;;  %v691_v55 = vmul.f32 %v690_v40, %v2936_v52  ;;  %v730_v56 = vadd.f32 0.0036580483, %v729_v42  ;;  %2022 = vmatpush.msrb.mxu0 %v1959_v4  ;;  %v1991_v23 = vld [vmem:[#allocation8 + $0x150] sm:$0xff]  ;;  %v520_v42 = vpop.f32.mrf.mxu3 }
  0xf0   : > { %v626_v32 = vmul.f32 %v625_v11, %v2911_v30  ;;  %v741_v57 = vadd.f32 0.014752088, %v740_v43  ;;  %v765_v3 = vmul.f32 %v2968_v49, %v2968_v49  ;;  %v654_v5 = vadd.f32 0.18741608, %v653_v51  ;;  %v2008_v11 = vld [vmem:[#allocation8 + $0x1d8] sm:$0xff]  ;;  %2063 = vmatpush.msrb.mxu1 %v1975_v8  ;;  %2104 = vmatpush.msrb.mxu2 %v1991_v23  ;;  %v400_v43 = vpop.f32.mrf.mxu0 }
  0xf1   : > { %v703_v34 = vadd.f32 0.112945676, %v702_v14  ;;  %v666_v46 = vmul.f32 %v665_v33, %v2913_v31  ;;  %v2979_v6 = vmul.f32 0.70710677, %v439_v53  ;;  %v692_v9 = vadd.f32 0.05243302, %v691_v55  ;;  %2144 = vmatpush.msrb.mxu3 %v2008_v11 }
  0xf2   : > { %v2963_v45 = vadd.f32 1.0, %v626_v32  ;;  %v742_v2 = vmul.f32 %v741_v57, %v2944_v61  ;;  %v615_v12 = vmul.f32 %v614_v50, %v2911_v30  ;;  %v731_v14 = vmul.f32 %v730_v56, %v2944_v61  ;;  %v2007_v30 = vld [vmem:[#allocation8 + $0x1d0] sm:$0xff]  ;;  %2105 = vmatpush.msrb.mxu2 %v1990_v44  ;;  %v1958_v50 = vld [vmem:[#allocation8 + $0x48] sm:$0xff] }
  0xf3   : > { %v704_v48 = vmul.f32 %v703_v34, %v2936_v52  ;;  %v2974_v62 = vadd.f32 1.0, %v666_v46  ;;  %v2988_v17 = vmin.f32 %v765_v3, 16.0  ;;  %v805_v19 = vmul.f32 %v2979_v6, %v2979_v6  ;;  %2145 = vmatpush.msrb.mxu3 %v2007_v30  ;;  %2023 = vmatpush.msrb.mxu0 %v1958_v50  ;;  %v1974_v3 = vld [vmem:[#allocation8 + $0xc8] sm:$0xff] }
  0xf4   : > { %2445 = vrcp.f32 %v2963_v45  ;;  %v743_v10 = vadd.f32 0.112945676, %v742_v2  ;;  %v2995_v20 = vmul.f32 0.70710677, %v2982_v7  ;;  %v693_v32 = vmul.f32 %v692_v9, %v2936_v52  ;;  %2064 = vmatpush.msrb.mxu1 %v1974_v3 }
  0xf5   : > { %v705_v63 = vadd.f32 0.4994258, %v704_v48  ;;  %2447 = vrcp.f32 %v2974_v62  ;;  %4435 = vst [vmem:[#allocation15_spill] sm:$0xff] %v2988_v17  ;;  %v616_v34 = vadd.f32 1.1283791, %v615_v12  ;;  %v655_v38 = vmul.f32 %v654_v5, %v2913_v31 }
  0xf6   : > { %v744_v33 = vmul.f32 %v743_v10, %v2944_v61  ;;  %v732_v40 = vadd.f32 0.05243302, %v731_v14  ;;  %v767_v46 = vmul.f32 2.1237322e-06, %v2988_v17  ;;  %v3014_v48 = vmin.f32 %v805_v19, 16.0  ;;  %v1957_v14 = vld [vmem:[#allocation8 + $0x40] sm:$0xff] }
  0xf7   : > { %v706_v13 = vmul.f32 %v705_v63, %v2936_v52  ;;  %v3019_v31 = vmul.f32 0.5, %v2919_v36  ;;  %v3022_v54 = vmul.f32 0.5, %v2958_v37  ;;  %v3024_v55 = vmul.f32 0.5, %v439_v53  ;;  %2024 = vmatpush.msrb.mxu0 %v1957_v14 }
  0xf8   : > { %4438 = vst [vmem:[#allocation18_spill] sm:$0xff] %v3014_v48  ;;  %v845_v35 = vmul.f32 %v2995_v20, %v2995_v20  ;;  %v694_v56 = vadd.f32 0.18741608, %v693_v32  ;;  %v745_v57 = vadd.f32 0.4994258, %v744_v33  ;;  %v3029_v58 = vadd.f32 %v520_v42, %v2905_v27  ;;  %v1973_v32 = vld [vmem:[#allocation8 + $0xc0] sm:$0xff] }
  0xf9   : > { %v3006_v39 = vadd.f32 1.0, %v706_v13  ;;  %4439 = vst [vmem:[#allocation19_spill] sm:$0xff] %v3019_v31  ;;  %v3032_v59 = vadd.f32 %v400_v43, %v2887_v15  ;;  %v3035_v36 = vmul.f32 %v616_v34, %v2898_v24  ;;  %v656_v37 = vadd.f32 1.1283791, %v655_v38  ;;  %v2006_v13 = vld [vmem:[#allocation8 + $0x1c8] sm:$0xff]  ;;  %2065 = vmatpush.msrb.mxu1 %v1973_v32 }
  0xfa   : > { %v2990_v18 = vpop.eup %2445  ;;  %4440 = vst [vmem:[#allocation20_spill] sm:$0xff] %v3022_v54  ;;  %v733_v53 = vmul.f32 %v732_v40, %v2944_v61  ;;  %v768_v1 = vadd.f32 0.00028619796, %v767_v46  ;;  %v807_v2 = vmul.f32 2.1237322e-06, %v3014_v48  ;;  %v639_v5 = vand.u32 2147483648, %v2963_v45  ;;  %2146 = vmatpush.msrb.mxu3 %v2006_v13 }
  0xfb   : > { %v629_v21 = vmul.f32 %v2990_v18, %v2963_v45  ;;  %v3016_v51 = vpop.eup %2447  ;;  %4441 = vst [vmem:[#allocation21_spill] sm:$0xff] %v3024_v55  ;;  %2449 = vrcp.f32 %v3006_v39  ;;  %v637_v4 = vand.u32 2147483647, %v2963_v45  ;;  %v3044_v8 = vmin.f32 %v845_v35, 16.0  ;;  %v2002_v55 = vld [vmem:[#allocation8 + $0x1a8] sm:$0xff] }
  0xfc   : > { %v669_v0 = vmul.f32 %v3016_v51, %v2974_v62  ;;  %v3047_v24 = vadd.f32 %v441_v60, %v2889_v16  ;;  %v677_v9 = vand.u32 2147483647, %v2974_v62  ;;  %v679_v10 = vand.u32 2147483648, %v2974_v62 }
  0xfd   : > { %v630_v63 = vsub.f32 1.0, %v629_v21  ;;  %v695_v11 = vmul.f32 %v694_v56, %v2936_v52  ;;  %v746_v12 = vmul.f32 %v745_v57, %v2944_v61  ;;  %vm633_vm0 = vweird.f32 %v2963_v45 }
  0xfe   : > { %v3055_v19 = vmul.f32 %v656_v37, %v2901_v25  ;;  %v734_v23 = vadd.f32 0.18741608, %v733_v53  ;;  %v3058_v30 = vmul.f32 0.70710677, %v3029_v58  ;;  %v670_v34 = vsub.f32 1.0, %v669_v0  ;;  %v482_v53 = vpop.f32.mrf.mxu2 }
  0xff   : > { %v631_v33 = vmul.f32 %v2990_v18, %v630_v63  ;;  %v769_v52 = vmul.f32 %v768_v1, %v2988_v17  ;;  %v808_v38 = vadd.f32 0.00028619796, %v807_v2  ;;  %v847_v42 = vmul.f32 2.1237322e-06, %v3044_v8  ;;  %v1956_v63 = vld [vmem:[#allocation8 + $0x38] sm:$0xff] }
 0x100   : > { %v885_v25 = vmul.f32 %v3058_v30, %v3058_v30  ;;  %v3068_v43 = vmul.f32 0.70710677, %v3032_v59  ;;  %v3071_v44 = vmul.f32 0.70710677, %v3047_v24  ;;  %vm3073_vm1 = vcmp.eq.f32.partialorder %v637_v4, 8.507059e+37  ;;  %v1989_v4 = vld [vmem:[#allocation8 + $0x140] sm:$0xff]  ;;  %2025 = vmatpush.msrb.mxu0 %v1956_v63 }
 0x101   : > { %v3062_v40 = vpop.eup %2449  ;;  %v640_v46 = vor.u32 1.1754944e-38, %v639_v5  ;;  %vm673_vm2 = vweird.f32 %v2974_v62  ;;  %v3078_v50 = vor.u32 1.1754944e-38, %v679_v10  ;;  %v696_v35 = vadd.f32 1.1283791, %v695_v11  ;;  %v2005_v5 = vld [vmem:[#allocation8 + $0x1c0] sm:$0xff]  ;;  %2106 = vmatpush.msrb.mxu2 %v1989_v4 }
 0x102   : > { %v3080_v56 = vadd.f32 1.0, %v746_v12  ;;  %vm634_vm3 = vweird.f32 %v2990_v18  ;;  %v735_v57 = vmul.f32 %v734_v23, %v2944_v61  ;;  %v925_v60 = vmul.f32 %v3068_v43, %v3068_v43  ;;  %2147 = vmatpush.msrb.mxu3 %v2005_v5  ;;  %v2004_v5 = vld [vmem:[#allocation8 + $0x1b8] sm:$0xff] }
 0x103   : > { %v965_v37 = vmul.f32 %v3071_v44, %v3071_v44  ;;  %v632_v0 = vadd.f32 %v2990_v18, %v631_v33  ;;  %v671_v1 = vmul.f32 %v3016_v51, %v670_v34  ;;  %v709_v2 = vmul.f32 %v3062_v40, %v3006_v39  ;;  %vm3113_vm5 = vmor %vm633_vm0, %vm634_vm3 }
 0x104   : > { %v770_v3 = vadd.f32 0.0036580483, %v769_v52  ;;  %v809_v61 = vmul.f32 %v808_v38, %v3014_v48  ;;  %v3094_v10 = vmul.f32 0.5, %v2982_v7  ;;  %v848_v11 = vadd.f32 0.00028619796, %v847_v42  ;;  %v1988_v7 = vld [vmem:[#allocation8 + $0x138] sm:$0xff]  ;;  %2148 = vmatpush.msrb.mxu3 %v2004_v5 }
 0x105   : > { %v3096_v12 = vmin.f32 %v885_v25, 16.0  ;;  %vm3098_vm4 = vcmp.eq.f32.partialorder %v677_v9, 8.507059e+37  ;;  %v719_v14 = vand.u32 2147483648, %v3006_v39  ;;  %2451 = vrcp.f32 %v3080_v56  ;;  %2107 = vmatpush.msrb.mxu2 %v1988_v7  ;;  %v1955_v7 = vld [vmem:[#allocation8 + $0x30] sm:$0xff] }
 0x106   : > { %4444 = vst [vmem:[#allocation22_spill] sm:$0xff] %v3094_v10  ;;  %v3104_v23 = vmin.f32 %v925_v60, 16.0  ;;  %v3107_v32 = vadd.f32 %v482_v53, %v2903_v26  ;;  %vm674_vm6 = vweird.f32 %v3016_v51  ;;  %v717_v9 = vand.u32 2147483647, %v3006_v39  ;;  %v523_v60 = vpop.f32.mrf.mxu3  ;;  %v1972_v53 = vld [vmem:[#allocation8 + $0xb8] sm:$0xff]  ;;  %2026 = vmatpush.msrb.mxu0 %v1955_v7 }
 0x107   : > { %v736_v34 = vadd.f32 1.1283791, %v735_v57  ;;  %v3119_v52 = vmin.f32 %v965_v37, 16.0  ;;  %v636_v38 = vsel %vm3113_vm5, %v2990_v18, %v632_v0  ;;  %v672_v42 = vadd.f32 %v3016_v51, %v671_v1  ;;  %2066 = vmatpush.msrb.mxu1 %v1972_v53  ;;  %vm3144_vm8 = vmor %vm673_vm2, %vm674_vm6 }
 0x108   : > { %v710_v25 = vsub.f32 1.0, %v709_v2  ;;  %v771_v45 = vmul.f32 %v770_v3, %v2988_v17  ;;  %v3127_v63 = vmul.f32 %v696_v35, %v2926_v41  ;;  %v810_v4 = vadd.f32 0.0036580483, %v809_v61  ;;  %v1971_v41 = vld [vmem:[#allocation8 + $0xb0] sm:$0xff] }
 0x109   : > { %4449 = vst [vmem:[#allocation23_spill] sm:$0xff] %v3119_v52  ;;  %v849_v57 = vmul.f32 %v848_v11, %v3044_v8  ;;  %v887_v37 = vmul.f32 2.1237322e-06, %v3096_v12  ;;  %vm713_vm7 = vweird.f32 %v3006_v39  ;;  %v3132_v18 = vor.u32 1.1754944e-38, %v719_v14  ;;  %2067 = vmatpush.msrb.mxu1 %v1971_v41  ;;  %v1954_v41 = vld [vmem:[#allocation8 + $0x28] sm:$0xff] }
 0x10a   : > { %v927_v0 = vmul.f32 2.1237322e-06, %v3104_v23  ;;  %v3136_v1 = vmul.f32 0.70710677, %v3107_v32  ;;  %v641_v35 = vsel %vm3073_vm1, %v640_v46, %v636_v38  ;;  %v3149_v3 = vmul.f32 %v736_v34, %v2931_v47  ;;  %2027 = vmatpush.msrb.mxu0 %v1954_v41 }
 0x10b   : > { %v967_v61 = vmul.f32 2.1237322e-06, %v3119_v52  ;;  %v3153_v11 = vadd.f32 %v523_v60, %v2905_v27  ;;  %v3155_v14 = vpop.eup %2451  ;;  %v676_v21 = vsel %vm3144_vm8, %v3016_v51, %v672_v42  ;;  %v711_v62 = vmul.f32 %v3062_v40, %v710_v25  ;;  %v403_v60 = vpop.f32.mrf.mxu0 }
 0x10c   : > { %v772_v46 = vadd.f32 0.05243302, %v771_v45  ;;  %v1005_v33 = vmul.f32 %v3136_v1, %v3136_v1  ;;  %vm714_vm9 = vweird.f32 %v3062_v40  ;;  %v850_v47 = vadd.f32 0.0036580483, %v849_v57  ;;  %v444_v25 = vpop.f32.mrf.mxu1  ;;  %v1953_v57 = vld [vmem:[#allocation8 + $0x20] sm:$0xff] }
 0x10d   : > { %v3165_v34 = vmul.f32 0.5, %v3029_v58  ;;  %v888_v38 = vadd.f32 0.00028619796, %v887_v37  ;;  %v3168_v53 = vmul.f32 %v641_v35, %v3035_v36  ;;  %v811_v5 = vmul.f32 %v810_v4, %v3014_v48  ;;  %vm3207_vm11 = vmor %vm713_vm7, %vm714_vm9  ;;  %2028 = vmatpush.msrb.mxu0 %v1953_v57 }
 0x10e   : > { %v928_v51 = vadd.f32 0.00028619796, %v927_v0  ;;  %v3171_v42 = vmin.f32 %v1005_v33, 16.0  ;;  %v681_v45 = vsel %vm3098_vm4, %v3078_v50, %v676_v21  ;;  %vm3176_vm10 = vcmp.eq.f32.partialorder %v717_v9, 8.507059e+37  ;;  %v1987_v50 = vld [vmem:[#allocation8 + $0x130] sm:$0xff] }
 0x10f   : > { %4452 = vst [vmem:[#allocation24_spill] sm:$0xff] %v3165_v34  ;;  %v749_v58 = vmul.f32 %v3155_v14, %v3080_v56  ;;  %v968_v37 = vadd.f32 0.00028619796, %v967_v61  ;;  %v3183_v36 = vmul.f32 0.70710677, %v3153_v11  ;;  %v712_v4 = vadd.f32 %v3062_v40, %v711_v62  ;;  %v2003_v9 = vld [vmem:[#allocation8 + $0x1b0] sm:$0xff]  ;;  %2108 = vmatpush.msrb.mxu2 %v1987_v50 }
 0x110   : > { %4453 = vst [vmem:[#allocation25_spill] sm:$0xff] %v3171_v42  ;;  %v773_v7 = vmul.f32 %v772_v46, %v2988_v17  ;;  %v1007_v0 = vmul.f32 2.1237322e-06, %v3171_v42  ;;  %v3189_v13 = vadd.f32 %v403_v60, %v2887_v15  ;;  %v851_v35 = vmul.f32 %v850_v47, %v3044_v8  ;;  %v1986_v62 = vld [vmem:[#allocation8 + $0x128] sm:$0xff]  ;;  %2149 = vmatpush.msrb.mxu3 %v2003_v9  ;;  %v526_v47 = vpop.f32.mrf.mxu3 }
 0x111   : > { %v889_v2 = vmul.f32 %v888_v38, %v3096_v12  ;;  %v1045_v61 = vmul.f32 %v3183_v36, %v3183_v36  ;;  %v3196_v21 = vadd.f32 %v444_v25, %v2889_v16  ;;  %v3199_v46 = vmul.f32 %v681_v45, %v3055_v19  ;;  %2109 = vmatpush.msrb.mxu2 %v1986_v62 }
 0x112   : > { %v759_v33 = vand.u32 2147483648, %v3080_v56  ;;  %v812_v60 = vadd.f32 0.05243302, %v811_v5  ;;  %v929_v34 = vmul.f32 %v928_v51, %v3104_v23  ;;  %v750_v38 = vsub.f32 1.0, %v749_v58  ;;  %2150 = vmatpush.msrb.mxu3 %v2002_v55 }
 0x113   : > { %v1008_v25 = vadd.f32 0.00028619796, %v1007_v0  ;;  %v3211_v50 = vmin.f32 %v1045_v61, 16.0  ;;  %v3214_v19 = vmul.f32 0.70710677, %v3189_v13  ;;  %v716_v5 = vsel %vm3207_vm11, %v3062_v40, %v712_v4  ;;  %v485_v61 = vpop.f32.mrf.mxu2  ;;  %2110 = vmatpush.msrb.mxu2 %v1985_v22 }
 0x114   : > { %v757_v51 = vand.u32 2147483647, %v3080_v56  ;;  %v774_v45 = vadd.f32 0.18741608, %v773_v7  ;;  %v969_v39 = vmul.f32 %v968_v37, %v3119_v52  ;;  %v852_v9 = vadd.f32 0.05243302, %v851_v35 }
 0x115   : > { %4458 = vst [vmem:[#allocation26_spill] sm:$0xff] %v3211_v50  ;;  %v890_v41 = vadd.f32 0.0036580483, %v889_v2  ;;  %v1085_v58 = vmul.f32 %v3214_v19, %v3214_v19  ;;  %v3224_v0 = vmul.f32 0.70710677, %v3196_v21  ;;  %v3226_v10 = vor.u32 1.1754944e-38, %v759_v33 }
 0x116   : > { %v3229_v62 = vmul.f32 0.5, %v3032_v59  ;;  %v930_v40 = vadd.f32 0.0036580483, %v929_v34  ;;  %v1047_v4 = vmul.f32 2.1237322e-06, %v3211_v50  ;;  %v751_v7 = vmul.f32 %v3155_v14, %v750_v38  ;;  %v406_v38 = vpop.f32.mrf.mxu0 }
 0x117   : > { %v813_v37 = vmul.f32 %v812_v60, %v3014_v48  ;;  %v1009_v35 = vmul.f32 %v1008_v25, %v3171_v42  ;;  %v1125_v2 = vmul.f32 %v3224_v0, %v3224_v0  ;;  %v721_v33 = vsel %vm3176_vm10, %v3132_v18, %v716_v5  ;;  %v1970_v60 = vld [vmem:[#allocation8 + $0xa8] sm:$0xff]  ;;  %v1969_v18 = vld [vmem:[#allocation8 + $0xa0] sm:$0xff] }
 0x118   : > { %4459 = vst [vmem:[#allocation27_spill] sm:$0xff] %v3229_v62  ;;  %v970_v59 = vadd.f32 0.0036580483, %v969_v39  ;;  %v3240_v62 = vmin.f32 %v1085_v58, 16.0  ;;  %v3243_v34 = vadd.f32 %v485_v61, %v2903_v26  ;;  %vm754_vm12 = vweird.f32 %v3155_v14  ;;  %2068 = vmatpush.msrb.mxu1 %v1970_v60 }
 0x119   : > { %v775_v25 = vmul.f32 %v774_v45, %v2988_v17  ;;  %v853_v54 = vmul.f32 %v852_v9, %v3044_v8  ;;  %v891_v31 = vmul.f32 %v890_v41, %v3096_v12  ;;  %vm3249_vm13 = vcmp.eq.f32.partialorder %v757_v51, 8.507059e+37 }
 0x11a   : > { %4460 = vst [vmem:[#allocation28_spill] sm:$0xff] %v3240_v62  ;;  %v931_v39 = vmul.f32 %v930_v40, %v3104_v23  ;;  %v1048_v58 = vadd.f32 0.00028619796, %v1047_v4  ;;  %v3254_v55 = vmin.f32 %v1125_v2, 16.0  ;;  %v3257_v61 = vadd.f32 %v526_v47, %v2905_v27  ;;  %2069 = vmatpush.msrb.mxu1 %v1969_v18  ;;  %v1952_v2 = vld [vmem:[#allocation8 + $0x18] sm:$0xff] }
 0x11b   : > { %v752_v45 = vadd.f32 %v3155_v14, %v751_v7  ;;  %v814_v9 = vadd.f32 0.18741608, %v813_v37  ;;  %v1010_v41 = vadd.f32 0.0036580483, %v1009_v35  ;;  %v3261_v60 = vadd.f32 %v406_v38, %v2887_v15  ;;  %v1968_v47 = vld [vmem:[#allocation8 + $0x98] sm:$0xff]  ;;  %v447_v38 = vpop.f32.mrf.mxu1  ;;  %2029 = vmatpush.msrb.mxu0 %v1952_v2 }
 0x11c   : > { %4463 = vst [vmem:[#allocation29_spill] sm:$0xff] %v3254_v55  ;;  %vm753_vm14 = vweird.f32 %v3080_v56  ;;  %v971_v51 = vmul.f32 %v970_v59, %v3119_v52  ;;  %v1087_v40 = vmul.f32 2.1237322e-06, %v3240_v62  ;;  %v3267_v4 = vmul.f32 0.70710677, %v3243_v34  ;;  %2070 = vmatpush.msrb.mxu1 %v1968_v47 }
 0x11d   : > { %v3270_v57 = vmul.f32 %v721_v33, %v3127_v63  ;;  %v776_v7 = vadd.f32 1.1283791, %v775_v25  ;;  %v854_v37 = vadd.f32 0.18741608, %v853_v54  ;;  %v892_v35 = vadd.f32 0.05243302, %v891_v31  ;;  %vm3274_vm15 = vmor %vm753_vm14, %vm754_vm12 }
 0x11e   : > { %v932_v59 = vadd.f32 0.05243302, %v931_v39  ;;  %v1049_v18 = vmul.f32 %v1048_v58, %v3211_v50  ;;  %v1127_v17 = vmul.f32 2.1237322e-06, %v3254_v55  ;;  %v3281_v63 = vmul.f32 0.70710677, %v3257_v61 }
 0x11f   : > { %4464 = vst [vmem:[#allocation30_spill] sm:$0xff] %v3270_v57  ;;  %v756_v31 = vsel %vm3274_vm15, %v3155_v14, %v752_v45  ;;  %v815_v54 = vmul.f32 %v814_v9, %v3014_v48  ;;  %v1165_v33 = vmul.f32 %v3267_v4, %v3267_v4  ;;  %v3290_v25 = vmul.f32 0.70710677, %v3261_v60  ;;  %v2001_v57 = vld [vmem:[#allocation8 + $0x1a0] sm:$0xff] }
 0x120   : > { %v972_v39 = vadd.f32 0.05243302, %v971_v51  ;;  %v1011_v58 = vmul.f32 %v1010_v41, %v3171_v42  ;;  %v1088_v2 = vadd.f32 0.00028619796, %v1087_v40  ;;  %v3294_v47 = vadd.f32 %v447_v38, %v2889_v16  ;;  %2151 = vmatpush.msrb.mxu3 %v2001_v57  ;;  %v1984_v41 = vld [vmem:[#allocation8 + $0x118] sm:$0xff]  ;;  %v1951_v40 = vld [vmem:[#allocation8 + $0x10] sm:$0xff] }
 0x121   : > { %v3297_v56 = vmul.f32 %v776_v7, %v2968_v49  ;;  %v893_v14 = vmul.f32 %v892_v35, %v3096_v12  ;;  %v3301_v45 = vmul.f32 0.5, %v3047_v24  ;;  %v1205_v9 = vmul.f32 %v3281_v63, %v3281_v63  ;;  %v2000_v51 = vld [vmem:[#allocation8 + $0x198] sm:$0xff]  ;;  %v488_v7 = vpop.f32.mrf.mxu2  ;;  %2030 = vmatpush.msrb.mxu0 %v1951_v40  ;;  %v1967_v35 = vld [vmem:[#allocation8 + $0x90] sm:$0xff]  ;;  %2111 = vmatpush.msrb.mxu2 %v1984_v41  ;;  %v1950_v57 = vld [vmem:[#allocation8 + $0x8] sm:$0xff] }
 0x122   : > { %v855_v38 = vmul.f32 %v854_v37, %v3044_v8  ;;  %v933_v48 = vmul.f32 %v932_v59, %v3104_v23  ;;  %v1050_v29 = vadd.f32 0.0036580483, %v1049_v18  ;;  %v1128_v49 = vadd.f32 0.00028619796, %v1127_v17  ;;  %2152 = vmatpush.msrb.mxu3 %v2000_v51  ;;  %2071 = vmatpush.msrb.mxu1 %v1967_v35  ;;  %v1949_v41 = vld [vmem:[#allocation8] sm:$0xff] }
 0x123   : > { %4467 = vst [vmem:[#allocation31_spill] sm:$0xff] %v3297_v56  ;;  %v761_v24 = vsel %vm3249_vm13, %v3226_v10, %v756_v31  ;;  %v3310_v56 = vmin.f32 %v1165_v33, 16.0  ;;  %v1245_v22 = vmul.f32 %v3290_v25, %v3290_v25  ;;  %v973_v37 = vmul.f32 %v972_v39, %v3119_v52  ;;  %2031 = vmatpush.msrb.mxu0 %v1950_v57  ;;  %v1966_v33 = vld [vmem:[#allocation8 + $0x88] sm:$0xff]  ;;  %v1965_v40 = vld [vmem:[#allocation8 + $0x80] sm:$0xff]  ;;  %v1983_v57 = vld [vmem:[#allocation8 + $0x110] sm:$0xff] }
 0x124   : > { %4468 = vst [vmem:[#allocation32_spill] sm:$0xff] %v3301_v45  ;;  %v816_v45 = vadd.f32 1.1283791, %v815_v54  ;;  %v1012_v59 = vadd.f32 0.05243302, %v1011_v58  ;;  %v1089_v17 = vmul.f32 %v1088_v2, %v3240_v62  ;;  %v3320_v5 = vmul.f32 0.5, %v3107_v32  ;;  %2072 = vmatpush.msrb.mxu1 %v1966_v33  ;;  %2112 = vmatpush.msrb.mxu2 %v1983_v57 }
 0x125   : > { %v3317_v18 = vmul.f32 0.70710677, %v3294_v47  ;;  %v894_v10 = vadd.f32 0.18741608, %v893_v14  ;;  %v3322_v31 = vmin.f32 %v1205_v9, 16.0  ;;  %v3325_v54 = vadd.f32 %v488_v7, %v2903_v26  ;;  %2032 = vmatpush.msrb.mxu0 %v1949_v41 }
 0x126   : > { %4469 = vst [vmem:[#allocation33_spill] sm:$0xff] %v3320_v5  ;;  %v856_v39 = vadd.f32 1.1283791, %v855_v38  ;;  %v934_v58 = vadd.f32 0.18741608, %v933_v48  ;;  %v1051_v2 = vmul.f32 %v1050_v29, %v3211_v50  ;;  %v1129_v51 = vmul.f32 %v1128_v49, %v3254_v55  ;;  %v529_v49 = vpop.f32.mrf.mxu3  ;;  %2073 = vmatpush.msrb.mxu1 %v1965_v40 }
 0x127   : > { %4470 = vst [vmem:[#allocation34_spill] sm:$0xff] %v3322_v31  ;;  %v3330_v14 = vmul.f32 %v761_v24, %v3149_v3  ;;  %v3333_v32 = vmul.f32 0.5, %v3153_v11  ;;  %v1167_v9 = vmul.f32 2.1237322e-06, %v3310_v56  ;;  %v3336_v7 = vmin.f32 %v1245_v22, 16.0 }
 0x128   : > { %v974_v35 = vadd.f32 0.18741608, %v973_v37  ;;  %v1013_v48 = vmul.f32 %v1012_v59, %v3171_v42  ;;  %v1090_v38 = vadd.f32 0.0036580483, %v1089_v17  ;;  %v1285_v29 = vmul.f32 %v3317_v18, %v3317_v18  ;;  %v1999_v37 = vld [vmem:[#allocation8 + $0x190] sm:$0xff]  ;;  %v1982_v59 = vld [vmem:[#allocation8 + $0x108] sm:$0xff] }
 0x129   : > { %4471 = vst [vmem:[#allocation35_spill] sm:$0xff] %v3333_v32  ;;  %v3342_v3 = vmul.f32 %v816_v45, %v2979_v6  ;;  %v895_v11 = vmul.f32 %v894_v10, %v3096_v12  ;;  %v1207_v24 = vmul.f32 2.1237322e-06, %v3322_v31  ;;  %v3347_v22 = vmul.f32 0.70710677, %v3325_v54  ;;  %2153 = vmatpush.msrb.mxu3 %v1999_v37  ;;  %2113 = vmatpush.msrb.mxu2 %v1982_v59 }
 0x12a   : > { %4472 = vst [vmem:[#allocation36_spill] sm:$0xff] %v3336_v7  ;;  %v3350_v17 = vmul.f32 %v856_v39, %v2995_v20  ;;  %v935_v33 = vmul.f32 %v934_v58, %v3104_v23  ;;  %v1052_v41 = vadd.f32 0.05243302, %v1051_v2  ;;  %v1130_v40 = vadd.f32 0.0036580483, %v1129_v51  ;;  %v409_v58 = vpop.f32.mrf.mxu0 }
 0x12b   : > { %4473 = vst [vmem:[#allocation37_spill] sm:$0xff] %v3342_v3  ;;  %v3354_v6 = vmul.f32 0.5, %v3189_v13  ;;  %v1168_v45 = vadd.f32 0.00028619796, %v1167_v9  ;;  %v1247_v10 = vmul.f32 2.1237322e-06, %v3336_v7  ;;  %v3358_v32 = vadd.f32 %v529_v49, %v2905_v27 }
 0x12c   : > { %4474 = vst [vmem:[#allocation38_spill] sm:$0xff] %v3350_v17  ;;  %v975_v57 = vmul.f32 %v974_v35, %v3119_v52  ;;  %v1014_v5 = vadd.f32 0.18741608, %v1013_v48  ;;  %v1091_v20 = vmul.f32 %v1090_v38, %v3240_v62  ;;  %v3362_v39 = vmin.f32 %v1285_v29, 16.0 }
 0x12d   : > { %4475 = vst [vmem:[#allocation39_spill] sm:$0xff] %v3354_v6  ;;  %v896_v2 = vadd.f32 1.1283791, %v895_v11  ;;  %v3365_v51 = vmul.f32 0.5, %v3196_v21  ;;  %v1208_v13 = vadd.f32 0.00028619796, %v1207_v24  ;;  %v1325_v9 = vmul.f32 %v3347_v22, %v3347_v22 }
 0x12e   : > { %v936_v37 = vadd.f32 1.1283791, %v935_v33  ;;  %v1053_v49 = vmul.f32 %v1052_v41, %v3211_v50  ;;  %v1131_v59 = vmul.f32 %v1130_v40, %v3254_v55  ;;  %v3372_v35 = vmul.f32 0.5, %v3243_v34 }
 0x12f   : > { %4476 = vst [vmem:[#allocation40_spill] sm:$0xff] %v3365_v51  ;;  %v1169_v48 = vmul.f32 %v1168_v45, %v3310_v56  ;;  %v1248_v38 = vadd.f32 0.00028619796, %v1247_v10  ;;  %v3376_v29 = vmul.f32 0.70710677, %v3358_v32  ;;  %v3379_v21 = vadd.f32 %v409_v58, %v2887_v15  ;;  %v450_v10 = vpop.f32.mrf.mxu1 }
 0x130   : > { %4477 = vst [vmem:[#allocation41_spill] sm:$0xff] %v3372_v35  ;;  %v976_v11 = vadd.f32 1.1283791, %v975_v57  ;;  %v1015_v24 = vmul.f32 %v1014_v5, %v3171_v42  ;;  %v1092_v33 = vadd.f32 0.05243302, %v1091_v20  ;;  %v1209_v40 = vmul.f32 %v1208_v13, %v3322_v31 }
 0x131   : > { %v1287_v41 = vmul.f32 2.1237322e-06, %v3362_v39  ;;  %v3384_v51 = vmin.f32 %v1325_v9, 16.0  ;;  %v1365_v34 = vmul.f32 %v3376_v29, %v3376_v29  ;;  %v3389_v45 = vmul.f32 0.70710677, %v3379_v21 }
 0x132   : > { %v3392_v58 = vmul.f32 %v896_v2, %v3058_v30  ;;  %v3395_v57 = vmul.f32 %v936_v37, %v3068_v43  ;;  %v1132_v5 = vadd.f32 0.05243302, %v1131_v59  ;;  %v3398_v20 = vmul.f32 0.5, %v3257_v61  ;;  %v491_v43 = vpop.f32.mrf.mxu2 }
 0x133   : > { %v1054_v13 = vadd.f32 0.18741608, %v1053_v49  ;;  %v1170_v9 = vadd.f32 0.0036580483, %v1169_v48  ;;  %v1249_v35 = vmul.f32 %v1248_v38, %v3336_v7  ;;  %v1405_v6 = vmul.f32 %v3389_v45, %v3389_v45 }
 0x134   : > { %4478 = vst [vmem:[#allocation42_spill] sm:$0xff] %v3392_v58  ;;  %v1093_v17 = vmul.f32 %v1092_v33, %v3240_v62  ;;  %v1288_v3 = vadd.f32 0.00028619796, %v1287_v41  ;;  %v3404_v42 = vmin.f32 %v1365_v34, 16.0  ;;  %v3407_v30 = vadd.f32 %v450_v10, %v2889_v16  ;;  %v1997_v58 = vld [vmem:[#allocation8 + $0x180] sm:$0xff] }
 0x135   : > { %4479 = vst [vmem:[#allocation43_spill] sm:$0xff] %v3395_v57  ;;  %v3410_v2 = vmul.f32 %v976_v11, %v3071_v44  ;;  %v1016_v61 = vadd.f32 1.1283791, %v1015_v24  ;;  %v1210_v37 = vadd.f32 0.0036580483, %v1209_v40  ;;  %v1133_v59 = vmul.f32 %v1132_v5, %v3254_v55 }
 0x136   : > { %4480 = vst [vmem:[#allocation44_spill] sm:$0xff] %v3398_v20  ;;  %v1327_v49 = vmul.f32 2.1237322e-06, %v3384_v51  ;;  %v3415_v48 = vmul.f32 0.5, %v3261_v60  ;;  %v3418_v38 = vmul.f32 0.5, %v3294_v47  ;;  %v3420_v33 = vmin.f32 %v1405_v6, 16.0  ;;  %v532_v47 = vpop.f32.mrf.mxu3 }
 0x137   : > { %4481 = vst [vmem:[#allocation45_spill] sm:$0xff] %v3410_v2  ;;  %v1055_v41 = vmul.f32 %v1054_v13, %v3211_v50  ;;  %v1171_v34 = vmul.f32 %v1170_v9, %v3310_v56  ;;  %v1250_v44 = vadd.f32 0.0036580483, %v1249_v35  ;;  %v3425_v11 = vadd.f32 %v491_v43, %v2903_v26 }
 0x138   : > { %4482 = vst [vmem:[#allocation46_spill] sm:$0xff] %v3415_v48  ;;  %v1094_v24 = vadd.f32 0.18741608, %v1093_v17  ;;  %v1289_v40 = vmul.f32 %v1288_v3, %v3362_v39  ;;  %v1367_v10 = vmul.f32 2.1237322e-06, %v3404_v42  ;;  %v3433_v6 = vmul.f32 %v1016_v61, %v3136_v1 }
 0x139   : > { %4483 = vst [vmem:[#allocation47_spill] sm:$0xff] %v3418_v38  ;;  %v3430_v60 = vmul.f32 0.70710677, %v3407_v30  ;;  %v1211_v5 = vmul.f32 %v1210_v37, %v3322_v31  ;;  %v3437_v13 = vmul.f32 0.5, %v3325_v54  ;;  %v1328_v35 = vadd.f32 0.00028619796, %v1327_v49  ;;  %v412_v38 = vpop.f32.mrf.mxu0 }
 0x13a   : > { %4484 = vst [vmem:[#allocation48_spill] sm:$0xff] %v3433_v6  ;;  %v1134_v9 = vadd.f32 0.18741608, %v1133_v59  ;;  %v1407_v17 = vmul.f32 2.1237322e-06, %v3420_v33  ;;  %v1251_v1 = vmul.f32 %v1250_v44, %v3336_v7  ;;  %v3447_v61 = vadd.f32 %v532_v47, %v2905_v27  ;;  %v1981_v47 = vld [vmem:[#allocation8 + $0x100] sm:$0xff] }
 0x13b   : > { %4485 = vst [vmem:[#allocation49_spill] sm:$0xff] %v3437_v13  ;;  %v1445_v3 = vmul.f32 %v3430_v60, %v3430_v60  ;;  %v3443_v43 = vmul.f32 0.70710677, %v3425_v11  ;;  %v1056_v48 = vadd.f32 1.1283791, %v1055_v41  ;;  %v1095_v54 = vmul.f32 %v1094_v24, %v3240_v62  ;;  %v1998_v13 = vld [vmem:[#allocation8 + $0x188] sm:$0xff]  ;;  %2114 = vmatpush.msrb.mxu2 %v1981_v47 }
 0x13c   : > { %v1172_v20 = vadd.f32 0.05243302, %v1171_v34  ;;  %v1290_v37 = vadd.f32 0.0036580483, %v1289_v40  ;;  %v1368_v49 = vadd.f32 0.00028619796, %v1367_v10  ;;  %v1329_v2 = vmul.f32 %v1328_v35, %v3384_v51  ;;  %v453_v34 = vpop.f32.mrf.mxu1  ;;  %2154 = vmatpush.msrb.mxu3 %v1998_v13 }
 0x13d   : > { %v1485_v59 = vmul.f32 %v3443_v43, %v3443_v43  ;;  %v1212_v6 = vadd.f32 0.05243302, %v1211_v5  ;;  %v3454_v57 = vmul.f32 0.70710677, %v3447_v61  ;;  %v3457_v41 = vadd.f32 %v412_v38, %v2887_v15 }
 0x13e   : > { %v1135_v44 = vmul.f32 %v1134_v9, %v3254_v55  ;;  %v1408_v24 = vadd.f32 0.00028619796, %v1407_v17  ;;  %v3460_v40 = vmin.f32 %v1445_v3, 16.0  ;;  %v3465_v5 = vmul.f32 %v1056_v48, %v3183_v36  ;;  %2155 = vmatpush.msrb.mxu3 %v1997_v58 }
 0x13f   : > { %4486 = vst [vmem:[#allocation50_spill] sm:$0xff] %v3454_v57  ;;  %v3462_v10 = vmin.f32 %v1485_v59, 16.0  ;;  %v1173_v35 = vmul.f32 %v1172_v20, %v3310_v56  ;;  %v1252_v62 = vadd.f32 0.05243302, %v1251_v1  ;;  %v1525_v38 = vmul.f32 %v3454_v57, %v3454_v57  ;;  %v494_v1 = vpop.f32.mrf.mxu2 }
 0x140   : > { %4487 = vst [vmem:[#allocation51_spill] sm:$0xff] %v3465_v5  ;;  %v1096_v13 = vadd.f32 1.1283791, %v1095_v54  ;;  %v1291_v9 = vmul.f32 %v1290_v37, %v3362_v39  ;;  %v1369_v17 = vmul.f32 %v1368_v49, %v3404_v42  ;;  %v3473_v3 = vadd.f32 %v453_v34, %v2889_v16 }
 0x141   : > { %v1213_v59 = vmul.f32 %v1212_v6, %v3322_v31  ;;  %v1330_v36 = vadd.f32 0.0036580483, %v1329_v2  ;;  %v3476_v48 = vmin.f32 %v1525_v38, 16.0  ;;  %v3479_v20 = vmul.f32 0.70710677, %v3457_v41 }
 0x142   : > { %v1136_v5 = vadd.f32 1.1283791, %v1135_v44  ;;  %v1409_v58 = vmul.f32 %v1408_v24, %v3420_v33  ;;  %v1447_v54 = vmul.f32 2.1237322e-06, %v3460_v40  ;;  %v1487_v37 = vmul.f32 2.1237322e-06, %v3462_v10 }
 0x143   : > { %4488 = vst [vmem:[#allocation52_spill] sm:$0xff] %v3479_v20  ;;  %v1174_v49 = vadd.f32 0.18741608, %v1173_v35  ;;  %v1253_v34 = vmul.f32 %v1252_v62, %v3336_v7  ;;  %v3486_v47 = vmul.f32 0.5, %v3358_v32  ;;  %v1565_v2 = vmul.f32 %v3479_v20, %v3479_v20 }
 0x144   : > { %v1292_v6 = vadd.f32 0.05243302, %v1291_v9  ;;  %v1370_v38 = vadd.f32 0.0036580483, %v1369_v17  ;;  %v3491_v55 = vmul.f32 0.70710677, %v3473_v3  ;;  %v3494_v44 = vadd.f32 %v494_v1, %v2903_v26 }
 0x145   : > { %4489 = vst [vmem:[#allocation53_spill] sm:$0xff] %v3486_v47  ;;  %v1214_v24 = vadd.f32 0.18741608, %v1213_v59  ;;  %v1331_v50 = vmul.f32 %v1330_v36, %v3384_v51  ;;  %v1527_v35 = vmul.f32 2.1237322e-06, %v3476_v48  ;;  %v3498_v62 = vmin.f32 %v1565_v2, 16.0 }
 0x146   : > { %v3501_v32 = vmul.f32 %v1096_v13, %v3214_v19  ;;  %v1410_v47 = vadd.f32 0.0036580483, %v1409_v58  ;;  %v1448_v52 = vadd.f32 0.00028619796, %v1447_v54  ;;  %v1488_v9 = vadd.f32 0.00028619796, %v1487_v37  ;;  %v535_v13 = vpop.f32.mrf.mxu3 }
 0x147   : > { %v3504_v17 = vmul.f32 %v1136_v5, %v3224_v0  ;;  %v1175_v20 = vmul.f32 %v1174_v49, %v3310_v56  ;;  %v1254_v1 = vadd.f32 0.18741608, %v1253_v34  ;;  %v1605_v59 = vmul.f32 %v3491_v55, %v3491_v55 }
 0x148   : > { %4490 = vst [vmem:[#allocation54_spill] sm:$0xff] %v3501_v32  ;;  %v1293_v36 = vmul.f32 %v1292_v6, %v3362_v39  ;;  %v1371_v2 = vmul.f32 %v1370_v38, %v3404_v42  ;;  %v3512_v57 = vmul.f32 0.5, %v3379_v21  ;;  %v3515_v19 = vmul.f32 0.70710677, %v3494_v44 }
 0x149   : > { %4491 = vst [vmem:[#allocation55_spill] sm:$0xff] %v3504_v17  ;;  %v1215_v0 = vmul.f32 %v1214_v24, %v3322_v31  ;;  %v1332_v5 = vadd.f32 0.05243302, %v1331_v50  ;;  %v1528_v58 = vadd.f32 0.00028619796, %v1527_v35  ;;  %v1411_v37 = vmul.f32 %v1410_v47, %v3420_v33 }
 0x14a   : > { %4492 = vst [vmem:[#allocation56_spill] sm:$0xff] %v3512_v57  ;;  %v1567_v54 = vmul.f32 2.1237322e-06, %v3498_v62  ;;  %v1449_v49 = vmul.f32 %v1448_v52, %v3460_v40  ;;  %v1489_v34 = vmul.f32 %v1488_v9, %v3462_v10  ;;  %v1645_v21 = vmul.f32 %v3515_v19, %v3515_v19 }
 0x14b   : > { %v1176_v6 = vadd.f32 1.1283791, %v1175_v20  ;;  %v1255_v38 = vmul.f32 %v1254_v1, %v3336_v7  ;;  %v3525_v57 = vmin.f32 %v1605_v59, 16.0  ;;  %v3528_v24 = vadd.f32 %v535_v13, %v2905_v27 }
 0x14c   : > { %v1294_v50 = vadd.f32 0.18741608, %v1293_v36  ;;  %v1372_v35 = vadd.f32 0.05243302, %v1371_v2  ;;  %v3531_v17 = vmul.f32 0.5, %v3407_v30  ;;  %v3533_v47 = vmin.f32 %v1645_v21, 16.0 }
 0x14d   : > { %4493 = vst [vmem:[#allocation57_spill] sm:$0xff] %v3528_v24  ;;  %v1216_v52 = vadd.f32 1.1283791, %v1215_v0  ;;  %v1529_v9 = vmul.f32 %v1528_v58, %v3476_v48  ;;  %v1568_v32 = vadd.f32 0.00028619796, %v1567_v54  ;;  %v2322_v20 = vclamps-f32 %v3168_v53, 1.0 }
 0x14e   : > { %4494 = vst [vmem:[#allocation58_spill] sm:$0xff] %v3531_v17  ;;  %v1333_v1 = vmul.f32 %v1332_v5, %v3384_v51  ;;  %v1412_v59 = vadd.f32 0.05243302, %v1411_v37  ;;  %v1450_v7 = vadd.f32 0.0036580483, %v1449_v49  ;;  %v3539_v13 = vmul.f32 %v1176_v6, %v3267_v4 }
 0x14f   : > { %4495 = vst [vmem:[#allocation59_spill] sm:$0xff] %v3533_v47  ;;  %v1490_v31 = vadd.f32 0.0036580483, %v1489_v34  ;;  %v1607_v36 = vmul.f32 2.1237322e-06, %v3525_v57  ;;  %v1885_v2 = vadd.f32 1.0, %v2322_v20  ;;  %v1295_v58 = vmul.f32 %v1294_v50, %v3362_v39  ;;  %v415_v50 = vpop.f32.mrf.mxu0 }
 0x150   : > { %v3543_v30 = vmul.f32 0.70710677, %v3528_v24  ;;  %v1256_v0 = vadd.f32 1.1283791, %v1255_v38  ;;  %v1373_v54 = vmul.f32 %v1372_v35, %v3404_v42  ;;  %v1647_v53 = vmul.f32 2.1237322e-06, %v3533_v47 }
 0x151   : > { %v1530_v5 = vadd.f32 0.0036580483, %v1529_v9  ;;  %v1569_v37 = vmul.f32 %v1568_v32, %v3498_v62  ;;  %v1917_v49 = vmul.f32 %v1885_v2, %v2998_v28  ;;  %v3553_v34 = vmul.f32 %v1216_v52, %v3281_v63 }
 0x152   : > { %4496 = vst [vmem:[#allocation60_spill] sm:$0xff] %v3543_v30  ;;  %v1685_v4 = vmul.f32 %v3543_v30, %v3543_v30  ;;  %v1334_v21 = vadd.f32 0.18741608, %v1333_v1  ;;  %v1413_v6 = vmul.f32 %v1412_v59, %v3420_v33  ;;  %v1451_v38 = vmul.f32 %v1450_v7, %v3460_v40  ;;  %v4538_v30 = vld [vmem:[#allocation37_spill] sm:$0xff] }
 0x153   : > { %v1491_v35 = vmul.f32 %v1490_v31, %v3462_v10  ;;  %v1608_v20 = vadd.f32 0.00028619796, %v1607_v36  ;;  %2033 = vmatmul.f32.vlgmr.msrb.gmra.mxu0 %v1917_v49  ;;  %v2323_v32 = vclamps-f32 %v3199_v46, 1.0  ;;  %v3562_v24 = vmul.f32 %v1256_v0, %v3290_v25  ;;  %v4501_v49 = vld [vmem:[#allocation16_spill] sm:$0xff] }
 0x154   : > { %v3558_v9 = vmin.f32 %v1685_v4, 16.0  ;;  %v1296_v28 = vadd.f32 1.1283791, %v1295_v58  ;;  %v1374_v63 = vadd.f32 0.18741608, %v1373_v54  ;;  %v1531_v1 = vmul.f32 %v1530_v5, %v3476_v48  ;;  %v456_v5 = vpop.f32.mrf.mxu1 }
 0x155   : > { %v1648_v52 = vadd.f32 0.00028619796, %v1647_v53  ;;  %v1570_v59 = vadd.f32 0.0036580483, %v1569_v37  ;;  %v3567_v2 = vadd.f32 %v415_v50, %v2887_v15  ;;  %v1414_v31 = vadd.f32 0.18741608, %v1413_v6 }
 0x156   : > { %4497 = vst [vmem:[#allocation61_spill] sm:$0xff] %v3558_v9  ;;  %v1687_v7 = vmul.f32 2.1237322e-06, %v3558_v9  ;;  %v3570_v36 = vmul.f32 0.5, %v3425_v11  ;;  %v3573_v46 = vmul.f32 0.5, %v3447_v61  ;;  %v1886_v25 = vadd.f32 1.0, %v2323_v32 }
 0x157   : > { %4498 = vst [vmem:[#allocation62_spill] sm:$0xff] %v3567_v2  ;;  %v1335_v0 = vmul.f32 %v1334_v21, %v3384_v51  ;;  %v1452_v58 = vadd.f32 0.05243302, %v1451_v38  ;;  %v1492_v54 = vadd.f32 0.05243302, %v1491_v35  ;;  %v1609_v53 = vmul.f32 %v1608_v20, %v3525_v57 }
 0x158   : > { %4499 = vst [vmem:[#allocation63_spill] sm:$0xff] %v3570_v36  ;;  %v3578_v37 = vmul.f32 %v1296_v28, %v3317_v18  ;;  %v1649_v15 = vmul.f32 %v1648_v52, %v3533_v47  ;;  %v1688_v4 = vadd.f32 0.00028619796, %v1687_v7  ;;  %v1918_v11 = vmul.f32 %v1886_v25, %v4501_v49  ;;  %v4504_v18 = vld [vmem:[#allocation30_spill] sm:$0xff] }
 0x159   : > { %4500 = vst [vmem:[#allocation64_spill] sm:$0xff] %v3573_v46  ;;  %v1375_v6 = vmul.f32 %v1374_v63, %v3404_v42  ;;  %v1532_v61 = vadd.f32 0.05243302, %v1531_v1  ;;  %v1571_v50 = vmul.f32 %v1570_v59, %v3498_v62  ;;  %v3585_v21 = vmul.f32 0.70710677, %v3567_v2 }
 0x15a   : > { %v1415_v38 = vmul.f32 %v1414_v31, %v3420_v33  ;;  %2074 = vmatmul.f32.vlgmr.msrb.gmra.mxu1 %v1918_v11  ;;  %v3589_v35 = vadd.f32 %v456_v5, %v2889_v16  ;;  %v2324_v20 = vclamps-f32 %v4504_v18, 1.0  ;;  %v2325_v32 = vclamps-f32 %v3330_v14, 1.0 }
 0x15b   : > { %4502 = vst [vmem:[#allocation16_spill] sm:$0xff] %v3585_v21  ;;  %v1336_v28 = vadd.f32 1.1283791, %v1335_v0  ;;  %v1453_v52 = vmul.f32 %v1452_v58, %v3460_v40  ;;  %v1493_v63 = vmul.f32 %v1492_v54, %v3462_v10  ;;  %v1610_v1 = vadd.f32 0.0036580483, %v1609_v53  ;;  %v4506_v0 = vld [vmem:[#allocation17_spill] sm:$0xff] }
 0x15c   : > { %4503 = vst [vmem:[#allocation65_spill] sm:$0xff] %v3589_v35  ;;  %v1650_v59 = vadd.f32 0.0036580483, %v1649_v15  ;;  %v1689_v7 = vmul.f32 %v1688_v4, %v3558_v9  ;;  %v1887_v25 = vadd.f32 1.0, %v2324_v20  ;;  %v1888_v49 = vadd.f32 1.0, %v2325_v32  ;;  %v4507_v54 = vld [vmem:[#allocation19_spill] sm:$0xff] }
 0x15d   : > { %v1376_v31 = vadd.f32 1.1283791, %v1375_v6  ;;  %v1533_v11 = vmul.f32 %v1532_v61, %v3476_v48  ;;  %v1572_v16 = vadd.f32 0.05243302, %v1571_v50  ;;  %v1725_v5 = vmul.f32 %v3585_v21, %v3585_v21 }
 0x15e   : > { %v1416_v18 = vadd.f32 1.1283791, %v1415_v38  ;;  %v3600_v14 = vmul.f32 0.70710677, %v3589_v35  ;;  %v1919_v58 = vmul.f32 %v1887_v25, %v4506_v0  ;;  %v1920_v53 = vmul.f32 %v1888_v49, %v4507_v54 }
 0x15f   : > { %v1454_v15 = vadd.f32 0.18741608, %v1453_v52  ;;  %v1494_v2 = vadd.f32 0.18741608, %v1493_v63  ;;  %v3605_v4 = vmul.f32 0.5, %v3457_v41  ;;  %v1611_v6 = vmul.f32 %v1610_v1, %v3525_v57 }
 0x160   : > { %4505 = vst [vmem:[#allocation30_spill] sm:$0xff] %v3600_v14  ;;  %v3609_v61 = vmul.f32 %v1336_v28, %v3347_v22  ;;  %v3612_v50 = vmul.f32 0.5, %v3473_v3  ;;  %v1651_v38 = vmul.f32 %v1650_v59, %v3533_v47  ;;  %v1690_v20 = vadd.f32 0.0036580483, %v1689_v7  ;;  %2115 = vmatmul.f32.vlgmr.msrb.gmra.mxu2 %v1919_v58  ;;  %2156 = vmatmul.f32.vlgmr.msrb.gmra.mxu3 %v1920_v53  ;;  %v4512_v28 = vld [vmem:[#allocation15_spill] sm:$0xff] }
 0x161   : > { %4508 = vst [vmem:[#allocation17_spill] sm:$0xff] %v3605_v4  ;;  %v1534_v32 = vadd.f32 0.18741608, %v1533_v11  ;;  %v1573_v52 = vmul.f32 %v1572_v16, %v3498_v62  ;;  %v3617_v63 = vmul.f32 0.5, %v3494_v44  ;;  %v3619_v41 = vmin.f32 %v1725_v5, 16.0  ;;  %v497_v44 = vpop.f32.mrf.mxu2  ;;  %v4513_v11 = vld [vmem:[#allocation18_spill] sm:$0xff] }
 0x162   : > { %4509 = vst [vmem:[#allocation19_spill] sm:$0xff] %v3612_v50  ;;  %v3622_v1 = vmul.f32 %v1376_v31, %v3376_v29  ;;  %v3625_v22 = vmul.f32 %v1416_v18, %v3389_v45  ;;  %v1765_v3 = vmul.f32 %v3600_v14, %v3600_v14  ;;  %v778_v59 = vmul.f32 3.8918573e-05, %v4512_v28  ;;  %v538_v14 = vpop.f32.mrf.mxu3  ;;  %v4532_v4 = vld [vmem:[#allocation25_spill] sm:$0xff] }
 0x163   : > { %4510 = vst [vmem:[#allocation66_spill] sm:$0xff] %v3617_v63  ;;  %v1455_v7 = vmul.f32 %v1454_v15, %v3460_v40  ;;  %v1495_v25 = vmul.f32 %v1494_v2, %v3462_v10  ;;  %v1612_v49 = vadd.f32 0.05243302, %v1611_v6  ;;  %v818_v16 = vmul.f32 3.8918573e-05, %v4513_v11 }
 0x164   : > { %4511 = vst [vmem:[#allocation67_spill] sm:$0xff] %v3625_v22  ;;  %v1652_v5 = vadd.f32 0.05243302, %v1651_v38  ;;  %v1691_v29 = vmul.f32 %v1690_v20, %v3558_v9  ;;  %v779_v31 = vadd.f32 0.001143296, %v778_v59  ;;  %v1535_v18 = vmul.f32 %v1534_v32, %v3476_v48 }
 0x165   : > { %v858_v45 = vmul.f32 3.8918573e-05, %v3044_v8  ;;  %v1574_v0 = vadd.f32 0.18741608, %v1573_v52  ;;  %v1727_v58 = vmul.f32 2.1237322e-06, %v3619_v41  ;;  %v3640_v2 = vadd.f32 %v497_v44, %v2903_v26 }
 0x166   : > { %v819_v54 = vadd.f32 0.001143296, %v818_v16  ;;  %v3637_v53 = vmin.f32 %v1765_v3, 16.0  ;;  %v780_v15 = vmul.f32 %v779_v31, %v4512_v28  ;;  %v1456_v38 = vadd.f32 1.1283791, %v1455_v7 }
 0x167   : > { %4514 = vst [vmem:[#allocation15_spill] sm:$0xff] %v3640_v2  ;;  %v859_v6 = vadd.f32 0.001143296, %v858_v45  ;;  %v1496_v35 = vadd.f32 1.1283791, %v1495_v25  ;;  %v1613_v20 = vmul.f32 %v1612_v49, %v3525_v57  ;;  %v1653_v32 = vmul.f32 %v1652_v5, %v3533_v47 }
 0x168   : > { %v820_v59 = vmul.f32 %v819_v54, %v4513_v11  ;;  %v1692_v52 = vadd.f32 0.05243302, %v1691_v29  ;;  %v781_v21 = vadd.f32 0.014752088, %v780_v15  ;;  %v1536_v16 = vadd.f32 1.1283791, %v1535_v18 }
 0x169   : > { %v860_v3 = vmul.f32 %v859_v6, %v3044_v8  ;;  %v1575_v26 = vmul.f32 %v1574_v0, %v3498_v62  ;;  %v1728_v44 = vadd.f32 0.00028619796, %v1727_v58  ;;  %v1767_v31 = vmul.f32 2.1237322e-06, %v3637_v53 }
 0x16a   : > { %v821_v63 = vadd.f32 0.014752088, %v820_v59  ;;  %v3650_v7 = vmul.f32 0.70710677, %v3640_v2  ;;  %v782_v25 = vmul.f32 %v781_v21, %v4512_v28  ;;  %v1614_v45 = vadd.f32 0.18741608, %v1613_v20 }
 0x16b   : > { %v861_v49 = vadd.f32 0.014752088, %v860_v3  ;;  %v3654_v5 = vadd.f32 %v538_v14, %v2905_v27  ;;  %v898_v18 = vmul.f32 3.8918573e-05, %v3096_v12  ;;  %v1654_v54 = vadd.f32 0.18741608, %v1653_v32 }
 0x16c   : > { %4515 = vst [vmem:[#allocation18_spill] sm:$0xff] %v3650_v7  ;;  %v822_v29 = vmul.f32 %v821_v63, %v4513_v11  ;;  %v1693_v0 = vmul.f32 %v1692_v52, %v3558_v9  ;;  %v783_v58 = vadd.f32 0.112945676, %v782_v25  ;;  %v1576_v6 = vadd.f32 1.1283791, %v1575_v26 }
 0x16d   : > { %4516 = vst [vmem:[#allocation68_spill] sm:$0xff] %v3654_v5  ;;  %v862_v15 = vmul.f32 %v861_v49, %v3044_v8  ;;  %v1729_v59 = vmul.f32 %v1728_v44, %v3619_v41  ;;  %v899_v21 = vadd.f32 0.001143296, %v898_v18  ;;  %v1768_v3 = vadd.f32 0.00028619796, %v1767_v31 }
 0x16e   : > { %v823_v2 = vadd.f32 0.112945676, %v822_v29  ;;  %v1805_v27 = vmul.f32 %v3650_v7, %v3650_v7  ;;  %v784_v14 = vmul.f32 %v783_v58, %v4512_v28  ;;  %v1615_v20 = vmul.f32 %v1614_v45, %v3525_v57 }
 0x16f   : > { %v863_v63 = vadd.f32 0.112945676, %v862_v15  ;;  %v3666_v32 = vmul.f32 0.70710677, %v3654_v5  ;;  %v900_v26 = vmul.f32 %v899_v21, %v3096_v12  ;;  %v1655_v44 = vmul.f32 %v1654_v54, %v3533_v47 }
 0x170   : > { %v824_v52 = vmul.f32 %v823_v2, %v4513_v11  ;;  %v1694_v25 = vadd.f32 0.18741608, %v1693_v0  ;;  %v785_v49 = vadd.f32 0.4994258, %v784_v14  ;;  %v3673_v29 = vmul.f32 %v1456_v38, %v3430_v60 }
 0x171   : > { %4517 = vst [vmem:[#allocation69_spill] sm:$0xff] %v3666_v32  ;;  %v864_v31 = vmul.f32 %v863_v63, %v3044_v8  ;;  %v1730_v18 = vadd.f32 0.0036580483, %v1729_v59  ;;  %v901_v15 = vadd.f32 0.014752088, %v900_v26  ;;  %v1769_v45 = vmul.f32 %v1768_v3, %v3637_v53 }
 0x172   : > { %4518 = vst [vmem:[#allocation70_spill] sm:$0xff] %v3673_v29  ;;  %v825_v58 = vadd.f32 0.4994258, %v824_v52  ;;  %v3676_v5 = vmin.f32 %v1805_v27, 16.0  ;;  %v786_v2 = vmul.f32 %v785_v49, %v4512_v28  ;;  %v1616_v21 = vadd.f32 1.1283791, %v1615_v20 }
 0x173   : > { %v865_v7 = vadd.f32 0.4994258, %v864_v31  ;;  %v1845_v54 = vmul.f32 %v3666_v32, %v3666_v32  ;;  %v902_v14 = vmul.f32 %v901_v15, %v3096_v12  ;;  %v1656_v60 = vadd.f32 1.1283791, %v1655_v44  ;;  %v4520_v44 = vld [vmem:[#allocation50_spill] sm:$0xff]  ;;  %v4522_v49 = vld [vmem:[#allocation52_spill] sm:$0xff] }
 0x174   : > { %v826_v0 = vmul.f32 %v825_v58, %v4513_v11  ;;  %v1695_v38 = vmul.f32 %v1694_v25, %v3558_v9  ;;  %v3684_v59 = vadd.f32 1.0, %v786_v2  ;;  %v938_v3 = vmul.f32 3.8918573e-05, %v3104_v23 }
 0x175   : > { %v3688_v27 = vmul.f32 %v1496_v35, %v3443_v43  ;;  %v866_v63 = vmul.f32 %v865_v7, %v3044_v8  ;;  %v903_v20 = vadd.f32 0.112945676, %v902_v14  ;;  %v1731_v52 = vmul.f32 %v1730_v18, %v3619_v41 }
 0x176   : > { %v3690_v28 = vadd.f32 1.0, %v826_v0  ;;  %v1770_v11 = vadd.f32 0.0036580483, %v1769_v45  ;;  %v1807_v26 = vmul.f32 2.1237322e-06, %v3676_v5  ;;  %2453 = vrcp.f32 %v3684_v59 }
 0x177   : > { %4519 = vst [vmem:[#allocation71_spill] sm:$0xff] %v3688_v27  ;;  %v3697_v25 = vmul.f32 %v1536_v16, %v4520_v44  ;;  %v3700_v31 = vmul.f32 %v1576_v6, %v4522_v49  ;;  %v3702_v43 = vmin.f32 %v1845_v54, 16.0  ;;  %v3706_v8 = vmul.f32 %v1616_v21, %v3491_v55 }
 0x178   : > { %2455 = vrcp.f32 %v3690_v28  ;;  %v3709_v35 = vmul.f32 %v1656_v60, %v3515_v19  ;;  %v3711_v7 = vadd.f32 1.1283791, %v1695_v38  ;;  %v939_v18 = vadd.f32 0.001143296, %v938_v3  ;;  %v4527_v38 = vld [vmem:[#allocation23_spill] sm:$0xff] }
 0x179   : > { %4521 = vst [vmem:[#allocation50_spill] sm:$0xff] %v3697_v25  ;;  %v797_v58 = vand.u32 2147483647, %v3684_v59  ;;  %v799_v16 = vand.u32 2147483648, %v3684_v59  ;;  %v3715_v15 = vadd.f32 1.0, %v866_v63  ;;  %v904_v6 = vmul.f32 %v903_v20, %v3096_v12 }
 0x17a   : > { %4523 = vst [vmem:[#allocation52_spill] sm:$0xff] %v3700_v31  ;;  %v3718_v45 = vadd.f32 0.05243302, %v1731_v52  ;;  %v3721_v2 = vmul.f32 %v1770_v11, %v3637_v53  ;;  %v3723_v55 = vadd.f32 0.00028619796, %v1807_v26  ;;  %vm793_vm0 = vweird.f32 %v3684_v59 }
 0x17b   : > { %4524 = vst [vmem:[#allocation72_spill] sm:$0xff] %v3706_v8  ;;  %v837_v19 = vand.u32 2147483647, %v3690_v28  ;;  %v3727_v21 = vmul.f32 2.1237322e-06, %v3702_v43  ;;  %v839_v54 = vand.u32 2147483648, %v3690_v28  ;;  %2457 = vrcp.f32 %v3715_v15 }
 0x17c   : > { %4525 = vst [vmem:[#allocation73_spill] sm:$0xff] %v3709_v35  ;;  %v2454_v0 = vpop.eup %2453  ;;  %vm833_vm1 = vweird.f32 %v3690_v28  ;;  %v905_v14 = vadd.f32 0.4994258, %v904_v6  ;;  %v940_v60 = vmul.f32 %v939_v18, %v3104_v23  ;;  %v978_v3 = vmul.f32 3.8918573e-05, %v4527_v38 }
 0x17d   : > { %4526 = vst [vmem:[#allocation74_spill] sm:$0xff] %v3711_v7  ;;  %v789_v20 = vmul.f32 %v2454_v0, %v3684_v59  ;;  %vm3736_vm2 = vcmp.eq.f32.partialorder %v797_v58, 8.507059e+37  ;;  %v800_v11 = vor.u32 1.1754944e-38, %v799_v16  ;;  %v879_v26 = vand.u32 2147483648, %v3715_v15 }
 0x17e   : > { %v2456_v63 = vpop.eup %2455  ;;  %vm3742_vm3 = vcmp.eq.f32.partialorder %v837_v19, 8.507059e+37  ;;  %v877_v18 = vand.u32 2147483647, %v3715_v15  ;;  %v906_v6 = vmul.f32 %v905_v14, %v3096_v12  ;;  %v941_v32 = vadd.f32 0.014752088, %v940_v60 }
 0x17f   : > { %v829_v44 = vmul.f32 %v2456_v63, %v3690_v28  ;;  %v790_v35 = vsub.f32 1.0, %v789_v20  ;;  %v840_v50 = vor.u32 1.1754944e-38, %v839_v54  ;;  %v979_v58 = vadd.f32 0.001143296, %v978_v3  ;;  %v4535_v20 = vld [vmem:[#allocation26_spill] sm:$0xff] }
 0x180   : > { %v1018_v8 = vmul.f32 3.8918573e-05, %v4532_v4  ;;  %vm794_vm4 = vweird.f32 %v2454_v0  ;;  %vm873_vm5 = vweird.f32 %v3715_v15  ;;  %v3750_v46 = vadd.f32 1.0, %v906_v6 }
 0x181   : > { %v830_v16 = vsub.f32 1.0, %v829_v44  ;;  %v942_v19 = vmul.f32 %v941_v32, %v3104_v23  ;;  %v2458_v31 = vpop.eup %2457  ;;  %v791_v36 = vmul.f32 %v2454_v0, %v790_v35  ;;  %v880_v25 = vor.u32 1.1754944e-38, %v879_v26  ;;  %v4536_v44 = vld [vmem:[#allocation28_spill] sm:$0xff]  ;;  %vm795_vm9 = vmor %vm793_vm0, %vm794_vm4 }
 0x182   : > { %v980_v27 = vmul.f32 %v979_v58, %v4527_v38  ;;  %v1019_v12 = vadd.f32 0.001143296, %v1018_v8  ;;  %vm834_vm6 = vweird.f32 %v2456_v63  ;;  %v869_v54 = vmul.f32 %v2458_v31, %v3715_v15  ;;  %v4539_v15 = vld [vmem:[#allocation38_spill] sm:$0xff] }
 0x183   : > { %v831_v14 = vmul.f32 %v2456_v63, %v830_v16  ;;  %vm3755_vm7 = vcmp.eq.f32.partialorder %v877_v18, 8.507059e+37  ;;  %2459 = vrcp.f32 %v3750_v46  ;;  %v792_v3 = vadd.f32 %v2454_v0, %v791_v36  ;;  %vm835_vm10 = vmor %vm833_vm1, %vm834_vm6 }
 0x184   : > { %vm874_vm8 = vweird.f32 %v2458_v31  ;;  %v1058_v32 = vmul.f32 3.8918573e-05, %v4535_v20  ;;  %v1098_v35 = vmul.f32 3.8918573e-05, %v4536_v44  ;;  %v870_v26 = vsub.f32 1.0, %v869_v54  ;;  %v4537_v54 = vld [vmem:[#allocation31_spill] sm:$0xff] }
 0x185   : > { %v832_v8 = vadd.f32 %v2456_v63, %v831_v14  ;;  %v943_v6 = vadd.f32 0.112945676, %v942_v19  ;;  %v981_v58 = vadd.f32 0.014752088, %v980_v27  ;;  %v796_v18 = vsel %vm795_vm9, %v2454_v0, %v792_v3  ;;  %vm875_vm11 = vmor %vm873_vm5, %vm874_vm8 }
 0x186   : > { %v917_v16 = vand.u32 2147483647, %v3750_v46  ;;  %v919_v36 = vand.u32 2147483648, %v3750_v46  ;;  %v1020_v17 = vmul.f32 %v1019_v12, %v4532_v4  ;;  %v801_v29 = vsel %vm3736_vm2, %v800_v11, %v796_v18 }
 0x187   : > { %v836_v7 = vsel %vm835_vm10, %v2456_v63, %v832_v8  ;;  %v871_v59 = vmul.f32 %v2458_v31, %v870_v26  ;;  %v944_v14 = vmul.f32 %v943_v6, %v3104_v23  ;;  %v802_v19 = vmul.f32 %v801_v29, %v4537_v54 }
 0x188   : > { %v841_v27 = vsel %vm3742_vm3, %v840_v50, %v836_v7  ;;  %v982_v28 = vmul.f32 %v981_v58, %v4527_v38  ;;  %v1021_v0 = vadd.f32 0.014752088, %v1020_v17  ;;  %v1059_v47 = vadd.f32 0.001143296, %v1058_v32 }
 0x189   : > { %v2460_v3 = vpop.eup %2459  ;;  %v842_v9 = vmul.f32 %v841_v27, %v4538_v30  ;;  %v872_v22 = vadd.f32 %v2458_v31, %v871_v59  ;;  %v945_v12 = vadd.f32 0.4994258, %v944_v14  ;;  %v2326_v52 = vclamps-f32 %v802_v19, 1.0  ;;  %v4540_v59 = vld [vmem:[#allocation20_spill] sm:$0xff] }
 0x18a   : > { %v909_v63 = vmul.f32 %v2460_v3, %v3750_v46  ;;  %vm914_vm12 = vweird.f32 %v2460_v3  ;;  %v983_v29 = vadd.f32 0.112945676, %v982_v28  ;;  %v1022_v17 = vmul.f32 %v1021_v0, %v4532_v4 }
 0x18b   : > { %v2327_v11 = vclamps-f32 %v842_v9, 1.0  ;;  %v876_v50 = vsel %vm875_vm11, %v2458_v31, %v872_v22  ;;  %v946_v7 = vmul.f32 %v945_v12, %v3104_v23  ;;  %v1889_v49 = vadd.f32 1.0, %v2326_v52 }
 0x18c   : > { %v881_v30 = vsel %vm3755_vm7, %v880_v25, %v876_v50  ;;  %v910_v32 = vsub.f32 1.0, %v909_v63  ;;  %v984_v8 = vmul.f32 %v983_v29, %v4527_v38  ;;  %v1023_v18 = vadd.f32 0.112945676, %v1022_v17  ;;  %v4541_v25 = vld [vmem:[#allocation21_spill] sm:$0xff]  ;;  %v4543_v17 = vld [vmem:[#allocation42_spill] sm:$0xff] }
 0x18d   : > { %v1890_v26 = vadd.f32 1.0, %v2327_v11  ;;  %v882_v6 = vmul.f32 %v881_v30, %v4539_v15  ;;  %v3788_v58 = vadd.f32 1.0, %v946_v7  ;;  %v1921_v9 = vmul.f32 %v1889_v49, %v4540_v59  ;;  %v4542_v11 = vld [vmem:[#allocation22_spill] sm:$0xff] }
 0x18e   : > { %v911_v22 = vmul.f32 %v2460_v3, %v910_v32  ;;  %v985_v31 = vadd.f32 0.4994258, %v984_v8  ;;  %v1060_v23 = vmul.f32 %v1059_v47, %v4535_v20  ;;  %v3794_v14 = vmul.f32 %v3718_v45, %v3619_v41 }
 0x18f   : > { %v1922_v60 = vmul.f32 %v1890_v26, %v4541_v25  ;;  %v2328_v54 = vclamps-f32 %v882_v6, 1.0  ;;  %2461 = vrcp.f32 %v3788_v58  ;;  %2036 = vmatmul.f32.gmra.mxu0 %v1921_v9  ;;  %vm913_vm13 = vweird.f32 %v3750_v46 }
 0x190   : > { %v912_v19 = vadd.f32 %v2460_v3, %v911_v22  ;;  %v920_v27 = vor.u32 1.1754944e-38, %v919_v36  ;;  %v986_v28 = vmul.f32 %v985_v31, %v4527_v38  ;;  %vm915_vm14 = vmor %vm913_vm13, %vm914_vm12  ;;  %v1024_v47 = vmul.f32 %v1023_v18, %v4532_v4 }
 0x191   : > { %2077 = vmatmul.f32.gmra.mxu1 %v1922_v60  ;;  %v1891_v0 = vadd.f32 1.0, %v2328_v54  ;;  %v1061_v45 = vadd.f32 0.014752088, %v1060_v23  ;;  %v1099_v12 = vadd.f32 0.001143296, %v1098_v35  ;;  %vm918_vm15 = vcmp.eq.f32.partialorder %v917_v16, 8.507059e+37 }
 0x192   : > { %v3803_v52 = vadd.f32 0.05243302, %v3721_v2  ;;  %v916_v63 = vsel %vm915_vm14, %v2460_v3, %v912_v19  ;;  %v3805_v29 = vadd.f32 1.0, %v986_v28  ;;  %v1025_v50 = vadd.f32 0.4994258, %v1024_v47  ;;  %v4547_v54 = vld [vmem:[#allocation24_spill] sm:$0xff] }
 0x193   : > { %v1923_v46 = vmul.f32 %v1891_v0, %v4542_v11  ;;  %v921_v36 = vsel %vm918_vm15, %v920_v27, %v916_v63  ;;  %v1062_v38 = vmul.f32 %v1061_v45, %v4535_v20  ;;  %v3811_v7 = vmul.f32 %v3723_v55, %v3676_v5 }
 0x194   : > { %v922_v49 = vmul.f32 %v921_v36, %v4543_v17  ;;  %v957_v35 = vand.u32 2147483647, %v3788_v58  ;;  %2463 = vrcp.f32 %v3805_v29  ;;  %v959_v16 = vand.u32 2147483648, %v3788_v58 }
 0x195   : > { %v2462_v2 = vpop.eup %2461  ;;  %2118 = vmatmul.f32.gmra.mxu2 %v1923_v46  ;;  %v1026_v3 = vmul.f32 %v1025_v50, %v4532_v4  ;;  %v1063_v30 = vadd.f32 0.112945676, %v1062_v38  ;;  %v1100_v32 = vmul.f32 %v1099_v12, %v4536_v44  ;;  %v3820_v8 = vadd.f32 0.00028619796, %v3727_v21  ;;  %v4546_v21 = vld [vmem:[#allocation29_spill] sm:$0xff] }
 0x196   : > { %v2329_v55 = vclamps-f32 %v922_v49, 1.0  ;;  %v949_v26 = vmul.f32 %v2462_v2, %v3788_v58  ;;  %vm953_vm0 = vweird.f32 %v3788_v58  ;;  %v997_v15 = vand.u32 2147483647, %v3805_v29 }
 0x197   : > { %v3825_v6 = vadd.f32 1.0, %v1026_v3  ;;  %v1064_v18 = vmul.f32 %v1063_v30, %v4535_v20  ;;  %v1101_v59 = vadd.f32 0.014752088, %v1100_v32  ;;  %vm3828_vm1 = vcmp.eq.f32.partialorder %v957_v35, 8.507059e+37 }
 0x198   : > { %v1892_v9 = vadd.f32 1.0, %v2329_v55  ;;  %v950_v4 = vsub.f32 1.0, %v949_v26  ;;  %v1138_v31 = vmul.f32 3.8918573e-05, %v4546_v21  ;;  %vm954_vm2 = vweird.f32 %v2462_v2  ;;  %v4550_v55 = vld [vmem:[#allocation34_spill] sm:$0xff] }
 0x199   : > { %v960_v23 = vor.u32 1.1754944e-38, %v959_v16  ;;  %2465 = vrcp.f32 %v3825_v6  ;;  %v1178_v25 = vmul.f32 3.8918573e-05, %v3310_v56  ;;  %v1065_v28 = vadd.f32 0.4994258, %v1064_v18  ;;  %vm955_vm5 = vmor %vm953_vm0, %vm954_vm2 }
 0x19a   : > { %v2464_v60 = vpop.eup %2463  ;;  %v1924_v19 = vmul.f32 %v1892_v9, %v4547_v54  ;;  %v951_v27 = vmul.f32 %v2462_v2, %v950_v4  ;;  %v1102_v0 = vmul.f32 %v1101_v59, %v4536_v44  ;;  %vm993_vm3 = vweird.f32 %v3805_v29 }
 0x19b   : > { %v989_v47 = vmul.f32 %v2464_v60, %v3805_v29  ;;  %vm3839_vm4 = vcmp.eq.f32.partialorder %v997_v15, 8.507059e+37  ;;  %v999_v12 = vand.u32 2147483648, %v3805_v29  ;;  %v1066_v11 = vmul.f32 %v1065_v28, %v4535_v20  ;;  %v4551_v15 = vld [vmem:[#allocation43_spill] sm:$0xff] }
 0x19c   : > { %2159 = vmatmul.f32.gmra.mxu3 %v1924_v19  ;;  %v952_v63 = vadd.f32 %v2462_v2, %v951_v27  ;;  %v1103_v46 = vadd.f32 0.112945676, %v1102_v0  ;;  %v1139_v36 = vadd.f32 0.001143296, %v1138_v31  ;;  %vm994_vm6 = vweird.f32 %v2464_v60 }
 0x19d   : > { %v990_v50 = vsub.f32 1.0, %v989_v47  ;;  %v1037_v38 = vand.u32 2147483647, %v3825_v6  ;;  %v1179_v17 = vadd.f32 0.001143296, %v1178_v25  ;;  %v3849_v35 = vadd.f32 1.0, %v1066_v11  ;;  %vm995_vm9 = vmor %vm993_vm3, %vm994_vm6 }
 0x19e   : > { %v956_v49 = vsel %vm955_vm5, %v2462_v2, %v952_v63  ;;  %v1104_v16 = vmul.f32 %v1103_v46, %v4536_v44  ;;  %v1140_v3 = vmul.f32 %v1139_v36, %v4546_v21  ;;  %v1218_v26 = vmul.f32 3.8918573e-05, %v4550_v55  ;;  %v4554_v11 = vld [vmem:[#allocation45_spill] sm:$0xff] }
 0x19f   : > { %v2466_v30 = vpop.eup %2465  ;;  %v961_v20 = vsel %vm3828_vm1, %v960_v23, %v956_v49  ;;  %v991_v32 = vmul.f32 %v2464_v60, %v990_v50  ;;  %v1180_v58 = vmul.f32 %v1179_v17, %v3310_v56  ;;  %v1000_v59 = vor.u32 1.1754944e-38, %v999_v12  ;;  %v4555_v17 = vld [vmem:[#allocation27_spill] sm:$0xff] }
 0x1a0   : > { %v962_v18 = vmul.f32 %v961_v20, %v4551_v15  ;;  %v1029_v2 = vmul.f32 %v2466_v30, %v3825_v6  ;;  %2467 = vrcp.f32 %v3849_v35  ;;  %vm1033_vm7 = vweird.f32 %v3825_v6 }
 0x1a1   : > { %v992_v9 = vadd.f32 %v2464_v60, %v991_v32  ;;  %vm3861_vm8 = vcmp.eq.f32.partialorder %v1037_v38, 8.507059e+37  ;;  %v1039_v22 = vand.u32 2147483648, %v3825_v6  ;;  %v1105_v25 = vadd.f32 0.4994258, %v1104_v16 }
 0x1a2   : > { %v2330_v31 = vclamps-f32 %v962_v18, 1.0  ;;  %v1030_v23 = vsub.f32 1.0, %v1029_v2  ;;  %v1141_v54 = vadd.f32 0.014752088, %v1140_v3  ;;  %vm1034_vm10 = vweird.f32 %v2466_v30 }
 0x1a3   : > { %v996_v19 = vsel %vm995_vm9, %v2464_v60, %v992_v9  ;;  %v1181_v27 = vadd.f32 0.014752088, %v1180_v58  ;;  %v1219_v28 = vadd.f32 0.001143296, %v1218_v26  ;;  %v1106_v63 = vmul.f32 %v1105_v25, %v4536_v44  ;;  %vm1035_vm11 = vmor %vm1033_vm7, %vm1034_vm10  ;;  %v4556_v26 = vld [vmem:[#allocation36_spill] sm:$0xff] }
 0x1a4   : > { %v1893_v0 = vadd.f32 1.0, %v2330_v31  ;;  %v1001_v47 = vsel %vm3839_vm4, %v1000_v59, %v996_v19  ;;  %v1031_v12 = vmul.f32 %v2466_v30, %v1030_v23  ;;  %v1040_v36 = vor.u32 1.1754944e-38, %v1039_v22  ;;  %v4557_v9 = vld [vmem:[#allocation48_spill] sm:$0xff] }
 0x1a5   : > { %v1002_v46 = vmul.f32 %v1001_v47, %v4554_v11  ;;  %v1077_v29 = vand.u32 2147483647, %v3849_v35  ;;  %v1142_v50 = vmul.f32 %v1141_v54, %v4546_v21  ;;  %v3876_v16 = vadd.f32 1.0, %v1106_v63  ;;  %v4560_v25 = vld [vmem:[#allocation32_spill] sm:$0xff] }
 0x1a6   : > { %v2468_v38 = vpop.eup %2467  ;;  %v1925_v60 = vmul.f32 %v1893_v0, %v4555_v17  ;;  %v1032_v49 = vadd.f32 %v2466_v30, %v1031_v12  ;;  %v1182_v3 = vmul.f32 %v1181_v27, %v3310_v56  ;;  %v1220_v32 = vmul.f32 %v1219_v28, %v4550_v55 }
 0x1a7   : > { %v2331_v45 = vclamps-f32 %v1002_v46, 1.0  ;;  %v1069_v44 = vmul.f32 %v2468_v38, %v3849_v35  ;;  %v1143_v20 = vadd.f32 0.112945676, %v1142_v50  ;;  %vm1073_vm12 = vweird.f32 %v3849_v35 }
 0x1a8   : > { %2039 = vmatmul.f32.gmra.mxu0 %v1925_v60  ;;  %v1036_v58 = vsel %vm1035_vm11, %v2466_v30, %v1032_v49  ;;  %2469 = vrcp.f32 %v3876_v16  ;;  %v1258_v15 = vmul.f32 3.8918573e-05, %v4556_v26  ;;  %v1079_v6 = vand.u32 2147483648, %v3849_v35 }
 0x1a9   : > { %v1894_v18 = vadd.f32 1.0, %v2331_v45  ;;  %v1041_v59 = vsel %vm3861_vm8, %v1040_v36, %v1036_v58  ;;  %v1070_v2 = vsub.f32 1.0, %v1069_v44  ;;  %vm3891_vm13 = vcmp.eq.f32.partialorder %v1077_v29, 8.507059e+37 }
 0x1aa   : > { %v1042_v22 = vmul.f32 %v1041_v59, %v4557_v9  ;;  %v1144_v30 = vmul.f32 %v1143_v20, %v4546_v21  ;;  %v1183_v23 = vadd.f32 0.112945676, %v1182_v3  ;;  %vm1074_vm14 = vweird.f32 %v2468_v38  ;;  %v4561_v20 = vld [vmem:[#allocation33_spill] sm:$0xff] }
 0x1ab   : > { %v1926_v54 = vmul.f32 %v1894_v18, %v4560_v25  ;;  %v1071_v19 = vmul.f32 %v2468_v38, %v1070_v2  ;;  %v1221_v27 = vadd.f32 0.014752088, %v1220_v32  ;;  %v1259_v47 = vadd.f32 0.001143296, %v1258_v15  ;;  %vm1075_vm15 = vmor %vm1073_vm12, %vm1074_vm14  ;;  %v4562_v18 = vld [vmem:[#allocation51_spill] sm:$0xff] }
 0x1ac   : > { %v2332_v28 = vclamps-f32 %v1042_v22, 1.0  ;;  %v1145_v4 = vadd.f32 0.4994258, %v1144_v30  ;;  %v1184_v0 = vmul.f32 %v1183_v23, %v3310_v56  ;;  %v1080_v63 = vor.u32 1.1754944e-38, %v1079_v6 }
 0x1ad   : > { %2080 = vmatmul.f32.gmra.mxu1 %v1926_v54  ;;  %v1072_v12 = vadd.f32 %v2468_v38, %v1071_v19  ;;  %v1119_v11 = vand.u32 2147483648, %v3876_v16  ;;  %v1222_v46 = vmul.f32 %v1221_v27, %v4550_v55  ;;  %v1260_v60 = vmul.f32 %v1259_v47, %v4556_v26 }
 0x1ae   : > { %v2470_v36 = vpop.eup %2469  ;;  %v1895_v29 = vadd.f32 1.0, %v2332_v28  ;;  %v1146_v50 = vmul.f32 %v1145_v4, %v4546_v21  ;;  %v1185_v17 = vadd.f32 0.4994258, %v1184_v0  ;;  %v1298_v44 = vmul.f32 3.8918573e-05, %v3362_v39 }
 0x1af   : > { %v1076_v49 = vsel %vm1075_vm15, %v2468_v38, %v1072_v12  ;;  %v1109_v3 = vmul.f32 %v2470_v36, %v3876_v16  ;;  %v1223_v45 = vadd.f32 0.112945676, %v1222_v46  ;;  %v1261_v38 = vadd.f32 0.014752088, %v1260_v60 }
 0x1b0   : > { %v1927_v32 = vmul.f32 %v1895_v29, %v4561_v20  ;;  %v1081_v58 = vsel %vm3891_vm13, %v1080_v63, %v1076_v49  ;;  %v3909_v15 = vadd.f32 1.0, %v1146_v50  ;;  %v1186_v35 = vmul.f32 %v1185_v17, %v3310_v56  ;;  %v4563_v63 = vld [vmem:[#allocation35_spill] sm:$0xff]  ;;  %v4564_v49 = vld [vmem:[#allocation54_spill] sm:$0xff] }
 0x1b1   : > { %v1082_v21 = vmul.f32 %v1081_v58, %v4562_v18  ;;  %v1110_v59 = vsub.f32 1.0, %v1109_v3  ;;  %v1224_v2 = vmul.f32 %v1223_v45, %v4550_v55  ;;  %vm1113_vm0 = vweird.f32 %v3876_v16 }
 0x1b2   : > { %2121 = vmatmul.f32.gmra.mxu2 %v1927_v32  ;;  %vm1114_vm1 = vweird.f32 %v2470_v36  ;;  %v1117_v6 = vand.u32 2147483647, %v3876_v16  ;;  %2471 = vrcp.f32 %v3909_v15  ;;  %v3917_v31 = vadd.f32 1.0, %v1186_v35 }
 0x1b3   : > { %v2333_v9 = vclamps-f32 %v1082_v21, 1.0  ;;  %v1111_v22 = vmul.f32 %v2470_v36, %v1110_v59  ;;  %v1225_v30 = vadd.f32 0.4994258, %v1224_v2  ;;  %v1120_v56 = vor.u32 1.1754944e-38, %v1119_v11  ;;  %vm1115_vm2 = vmor %vm1113_vm0, %vm1114_vm1 }
 0x1b4   : > { %v1157_v23 = vand.u32 2147483647, %v3909_v15  ;;  %v1262_v25 = vmul.f32 %v1261_v38, %v4556_v26  ;;  %v1299_v54 = vadd.f32 0.001143296, %v1298_v44  ;;  %v1159_v28 = vand.u32 2147483648, %v3909_v15 }
 0x1b5   : > { %v1896_v19 = vadd.f32 1.0, %v2333_v9  ;;  %v1112_v27 = vadd.f32 %v2470_v36, %v1111_v22  ;;  %2473 = vrcp.f32 %v3917_v31  ;;  %v1199_v4 = vand.u32 2147483648, %v3917_v31 }
 0x1b6   : > { %v1226_v0 = vmul.f32 %v1225_v30, %v4550_v55  ;;  %v1263_v47 = vadd.f32 0.112945676, %v1262_v25  ;;  %v1338_v12 = vmul.f32 3.8918573e-05, %v3384_v51  ;;  %vm1118_vm3 = vcmp.eq.f32.partialorder %v1117_v6, 8.507059e+37 }
 0x1b7   : > { %v1928_v11 = vmul.f32 %v1896_v19, %v4563_v63  ;;  %v1116_v46 = vsel %vm1115_vm2, %v2470_v36, %v1112_v27  ;;  %v1300_v29 = vmul.f32 %v1299_v54, %v3362_v39  ;;  %vm1153_vm4 = vweird.f32 %v3909_v15 }
 0x1b8   : > { %v2472_v50 = vpop.eup %2471  ;;  %v1121_v17 = vsel %vm1118_vm3, %v1120_v56, %v1116_v46  ;;  %v1197_v16 = vand.u32 2147483647, %v3917_v31  ;;  %v3933_v60 = vadd.f32 1.0, %v1226_v0  ;;  %vm3937_vm5 = vcmp.eq.f32.partialorder %v1157_v23, 8.507059e+37 }
 0x1b9   : > { %2162 = vmatmul.f32.gmra.mxu3 %v1928_v11  ;;  %v1122_v55 = vmul.f32 %v1121_v17, %v4564_v49  ;;  %v1149_v3 = vmul.f32 %v2472_v50, %v3909_v15  ;;  %v1160_v36 = vor.u32 1.1754944e-38, %v1159_v28  ;;  %v1264_v44 = vmul.f32 %v1263_v47, %v4556_v26  ;;  %v4569_v28 = vld [vmem:[#allocation39_spill] sm:$0xff] }
 0x1ba   : > { %vm1193_vm6 = vweird.f32 %v3917_v31  ;;  %v1200_v20 = vor.u32 1.1754944e-38, %v1199_v4  ;;  %2475 = vrcp.f32 %v3933_v60  ;;  %v1339_v32 = vadd.f32 0.001143296, %v1338_v12 }
 0x1bb   : > { %v2474_v58 = vpop.eup %2473  ;;  %v2334_v35 = vclamps-f32 %v1122_v55, 1.0  ;;  %v1150_v18 = vsub.f32 1.0, %v1149_v3  ;;  %v1265_v21 = vadd.f32 0.4994258, %v1264_v44  ;;  %v1301_v59 = vadd.f32 0.014752088, %v1300_v29 }
 0x1bc   : > { %vm1154_vm7 = vweird.f32 %v2472_v50  ;;  %v1189_v2 = vmul.f32 %v2474_v58, %v3917_v31  ;;  %vm3945_vm8 = vcmp.eq.f32.partialorder %v1197_v16, 8.507059e+37  ;;  %v1237_v6 = vand.u32 2147483647, %v3933_v60  ;;  %v4572_v3 = vld [vmem:[#allocation55_spill] sm:$0xff] }
 0x1bd   : > { %v1239_v9 = vand.u32 2147483648, %v3933_v60  ;;  %v1897_v22 = vadd.f32 1.0, %v2334_v35  ;;  %v1151_v30 = vmul.f32 %v2472_v50, %v1150_v18  ;;  %v1266_v56 = vmul.f32 %v1265_v21, %v4556_v26  ;;  %vm1155_vm9 = vmor %vm1153_vm4, %vm1154_vm7 }
 0x1be   : > { %v1302_v23 = vmul.f32 %v1301_v59, %v3362_v39  ;;  %v1190_v25 = vsub.f32 1.0, %v1189_v2  ;;  %v1340_v54 = vmul.f32 %v1339_v32, %v3384_v51  ;;  %v1378_v19 = vmul.f32 3.8918573e-05, %v3404_v42 }
 0x1bf   : > { %v1418_v27 = vmul.f32 3.8918573e-05, %v3420_v33  ;;  %v1929_v4 = vmul.f32 %v1897_v22, %v4569_v28  ;;  %v1152_v0 = vadd.f32 %v2472_v50, %v1151_v30  ;;  %v3957_v47 = vadd.f32 1.0, %v1266_v56 }
 0x1c0   : > { %v1303_v12 = vadd.f32 0.112945676, %v1302_v23  ;;  %v2476_v63 = vpop.eup %2475  ;;  %v1191_v26 = vmul.f32 %v2474_v58, %v1190_v25  ;;  %vm1194_vm10 = vweird.f32 %v2474_v58  ;;  %v1341_v11 = vadd.f32 0.014752088, %v1340_v54 }
 0x1c1   : > { %v1379_v46 = vadd.f32 0.001143296, %v1378_v19  ;;  %2042 = vmatmul.f32.gmra.mxu0 %v1929_v4  ;;  %v1156_v29 = vsel %vm1155_vm9, %v2472_v50, %v1152_v0  ;;  %v1229_v17 = vmul.f32 %v2476_v63, %v3933_v60  ;;  %vm1233_vm11 = vweird.f32 %v3933_v60  ;;  %vm1195_vm13 = vmor %vm1193_vm6, %vm1194_vm10 }
 0x1c2   : > { %2477 = vrcp.f32 %v3957_v47  ;;  %v1161_v16 = vsel %vm3937_vm5, %v1160_v36, %v1156_v29  ;;  %v1192_v49 = vadd.f32 %v2474_v58, %v1191_v26  ;;  %vm3967_vm12 = vcmp.eq.f32.partialorder %v1237_v6, 8.507059e+37 }
 0x1c3   : > { %v1240_v15 = vor.u32 1.1754944e-38, %v1239_v9  ;;  %v1162_v44 = vmul.f32 %v1161_v16, %v4572_v3  ;;  %v1230_v50 = vsub.f32 1.0, %v1229_v17  ;;  %v1304_v32 = vmul.f32 %v1303_v12, %v3362_v39 }
 0x1c4   : > { %v1419_v35 = vadd.f32 0.001143296, %v1418_v27  ;;  %v1196_v18 = vsel %vm1195_vm13, %v2474_v58, %v1192_v49  ;;  %vm1234_vm14 = vweird.f32 %v2476_v63  ;;  %v1342_v45 = vmul.f32 %v1341_v11, %v3384_v51  ;;  %v4573_v27 = vld [vmem:[#allocation40_spill] sm:$0xff]  ;;  %v4574_v49 = vld [vmem:[#allocation41_spill] sm:$0xff] }
 0x1c5   : > { %v1380_v36 = vmul.f32 %v1379_v46, %v3404_v42  ;;  %v2335_v21 = vclamps-f32 %v1162_v44, 1.0  ;;  %v1201_v59 = vsel %vm3945_vm8, %v1200_v20, %v1196_v18  ;;  %v1231_v2 = vmul.f32 %v2476_v63, %v1230_v50  ;;  %vm1235_vm0 = vmor %vm1233_vm11, %vm1234_vm14 }
 0x1c6   : > { %v1277_v6 = vand.u32 2147483647, %v3957_v47  ;;  %v1202_v31 = vmul.f32 %v1201_v59, %v3539_v13  ;;  %vm1273_vm15 = vweird.f32 %v3957_v47  ;;  %v1305_v9 = vadd.f32 0.4994258, %v1304_v32 }
 0x1c7   : > { %v1343_v22 = vadd.f32 0.112945676, %v1342_v45  ;;  %v1381_v30 = vadd.f32 0.014752088, %v1380_v36  ;;  %v1898_v56 = vadd.f32 1.0, %v2335_v21  ;;  %v1232_v23 = vadd.f32 %v2476_v63, %v1231_v2 }
 0x1c8   : > { %v2478_v58 = vpop.eup %2477  ;;  %v1279_v25 = vand.u32 2147483648, %v3957_v47  ;;  %v1420_v54 = vmul.f32 %v1419_v35, %v3420_v33  ;;  %v2336_v19 = vclamps-f32 %v1202_v31, 1.0  ;;  %v1306_v13 = vmul.f32 %v1305_v9, %v3362_v39 }
 0x1c9   : > { %v1269_v20 = vmul.f32 %v2478_v58, %v3957_v47  ;;  %v1458_v38 = vmul.f32 3.8918573e-05, %v3460_v40  ;;  %v1930_v28 = vmul.f32 %v1898_v56, %v4573_v27  ;;  %v1236_v4 = vsel %vm1235_vm0, %v2476_v63, %v1232_v23 }
 0x1ca   : > { %v1344_v0 = vmul.f32 %v1343_v22, %v3384_v51  ;;  %v1382_v12 = vmul.f32 %v1381_v30, %v3404_v42  ;;  %v1899_v26 = vadd.f32 1.0, %v2336_v19  ;;  %v1241_v11 = vsel %vm3967_vm12, %v1240_v15, %v1236_v4  ;;  %v4577_v22 = vld [vmem:[#allocation44_spill] sm:$0xff] }
 0x1cb   : > { %v1270_v46 = vsub.f32 1.0, %v1269_v20  ;;  %v3995_v60 = vadd.f32 1.0, %v1306_v13  ;;  %2083 = vmatmul.f32.gmra.mxu1 %v1930_v28  ;;  %v1242_v29 = vmul.f32 %v1241_v11, %v3553_v34  ;;  %v1421_v16 = vadd.f32 0.014752088, %v1420_v54 }
 0x1cc   : > { %v1345_v39 = vadd.f32 0.4994258, %v1344_v0  ;;  %v1383_v17 = vadd.f32 0.112945676, %v1382_v12  ;;  %v1931_v3 = vmul.f32 %v1899_v26, %v4574_v49  ;;  %vm1274_vm1 = vweird.f32 %v2478_v58 }
 0x1cd   : > { %v1271_v63 = vmul.f32 %v2478_v58, %v1270_v46  ;;  %2479 = vrcp.f32 %v3995_v60  ;;  %v2337_v44 = vclamps-f32 %v1242_v29, 1.0  ;;  %vm4000_vm2 = vcmp.eq.f32.partialorder %v1277_v6, 8.507059e+37  ;;  %vm1275_vm3 = vmor %vm1273_vm15, %vm1274_vm1 }
 0x1ce   : > { %v1280_v55 = vor.u32 1.1754944e-38, %v1279_v25  ;;  %v1346_v15 = vmul.f32 %v1345_v39, %v3384_v51  ;;  %2124 = vmatmul.f32.gmra.mxu2 %v1931_v3  ;;  %v1384_v34 = vmul.f32 %v1383_v17, %v3404_v42  ;;  %v1422_v35 = vmul.f32 %v1421_v16, %v3420_v33  ;;  %v4580_v39 = vld [vmem:[#allocation46_spill] sm:$0xff] }
 0x1cf   : > { %v1272_v32 = vadd.f32 %v2478_v58, %v1271_v63  ;;  %v1459_v18 = vadd.f32 0.001143296, %v1458_v38  ;;  %v1900_v45 = vadd.f32 1.0, %v2337_v44  ;;  %v1317_v36 = vand.u32 2147483647, %v3995_v60 }
 0x1d0   : > { %v1319_v21 = vand.u32 2147483648, %v3995_v60  ;;  %v4011_v59 = vadd.f32 1.0, %v1346_v15  ;;  %v1385_v6 = vadd.f32 0.4994258, %v1384_v34  ;;  %v1423_v51 = vadd.f32 0.112945676, %v1422_v35 }
 0x1d1   : > { %v1276_v2 = vsel %vm1275_vm3, %v2478_v58, %v1272_v32  ;;  %v1460_v31 = vmul.f32 %v1459_v18, %v3460_v40  ;;  %v4016_v9 = vmul.f32 %v3803_v52, %v3637_v53  ;;  %v1932_v30 = vmul.f32 %v1900_v45, %v4577_v22 }
 0x1d2   : > { %v1281_v47 = vsel %vm4000_vm2, %v1280_v55, %v1276_v2  ;;  %2481 = vrcp.f32 %v4011_v59  ;;  %v4023_v23 = vadd.f32 0.0036580483, %v3811_v7  ;;  %v4027_v58 = vmul.f32 %v3820_v8, %v3702_v43 }
 0x1d3   : > { %v2480_v56 = vpop.eup %2479  ;;  %v1282_v25 = vmul.f32 %v1281_v47, %v3562_v24  ;;  %v1386_v52 = vmul.f32 %v1385_v6, %v3404_v42  ;;  %2165 = vmatmul.f32.gmra.mxu3 %v1932_v30  ;;  %vm1313_vm4 = vweird.f32 %v3995_v60  ;;  %v1424_v19 = vmul.f32 %v1423_v51, %v3420_v33 }
 0x1d4   : > { %v1309_v54 = vmul.f32 %v2480_v56, %v3995_v60  ;;  %v1461_v20 = vadd.f32 0.014752088, %v1460_v31  ;;  %vm4034_vm5 = vcmp.eq.f32.partialorder %v1317_v36, 8.507059e+37  ;;  %v1320_v38 = vor.u32 1.1754944e-38, %v1319_v21 }
 0x1d5   : > { %v2338_v13 = vclamps-f32 %v1282_v25, 1.0  ;;  %v4038_v8 = vadd.f32 1.0, %v1386_v52  ;;  %v1357_v24 = vand.u32 2147483647, %v4011_v59  ;;  %v1425_v42 = vadd.f32 0.4994258, %v1424_v19 }
 0x1d6   : > { %v1310_v27 = vsub.f32 1.0, %v1309_v54  ;;  %v1462_v28 = vmul.f32 %v1461_v20, %v3460_v40  ;;  %v1359_v0 = vand.u32 2147483648, %v4011_v59  ;;  %v1498_v12 = vmul.f32 3.8918573e-05, %v3462_v10 }
 0x1d7   : > { %v1901_v4 = vadd.f32 1.0, %v2338_v13  ;;  %2483 = vrcp.f32 %v4038_v8  ;;  %vm1314_vm6 = vweird.f32 %v2480_v56  ;;  %v1426_v46 = vmul.f32 %v1425_v42, %v3420_v33 }
 0x1d8   : > { %v2482_v26 = vpop.eup %2481  ;;  %v1311_v11 = vmul.f32 %v2480_v56, %v1310_v27  ;;  %v1463_v29 = vadd.f32 0.112945676, %v1462_v28  ;;  %vm1353_vm7 = vweird.f32 %v4011_v59  ;;  %v1397_v49 = vand.u32 2147483647, %v4038_v8  ;;  %vm1315_vm8 = vmor %vm1313_vm4, %vm1314_vm6 }
 0x1d9   : > { %v1933_v17 = vmul.f32 %v1901_v4, %v4580_v39  ;;  %v1349_v16 = vmul.f32 %v2482_v26, %v4011_v59  ;;  %v1399_v63 = vand.u32 2147483648, %v4038_v8  ;;  %v4051_v44 = vadd.f32 1.0, %v1426_v46  ;;  %v4587_v4 = vld [vmem:[#allocation47_spill] sm:$0xff] }
 0x1da   : > { %v1312_v3 = vadd.f32 %v2480_v56, %v1311_v11  ;;  %v1464_v50 = vmul.f32 %v1463_v29, %v3460_v40  ;;  %vm4056_vm9 = vcmp.eq.f32.partialorder %v1357_v24, 8.507059e+37  ;;  %v1360_v15 = vor.u32 1.1754944e-38, %v1359_v0 }
 0x1db   : > { %2045 = vmatmul.f32.gmra.mxu0 %v1933_v17  ;;  %v1350_v33 = vsub.f32 1.0, %v1349_v16  ;;  %v1499_v32 = vadd.f32 0.001143296, %v1498_v12  ;;  %vm1393_vm10 = vweird.f32 %v4038_v8  ;;  %2485 = vrcp.f32 %v4051_v44 }
 0x1dc   : > { %v1316_v34 = vsel %vm1315_vm8, %v2480_v56, %v1312_v3  ;;  %v1538_v35 = vmul.f32 3.8918573e-05, %v3476_v48  ;;  %vm1354_vm11 = vweird.f32 %v2482_v26  ;;  %v1465_v36 = vadd.f32 0.4994258, %v1464_v50 }
 0x1dd   : > { %v2484_v18 = vpop.eup %2483  ;;  %v1321_v45 = vsel %vm4034_vm5, %v1320_v38, %v1316_v34  ;;  %v1351_v60 = vmul.f32 %v2482_v26, %v1350_v33  ;;  %vm4067_vm12 = vcmp.eq.f32.partialorder %v1397_v49, 8.507059e+37  ;;  %v1400_v51 = vor.u32 1.1754944e-38, %v1399_v63  ;;  %vm1355_vm13 = vmor %vm1353_vm7, %vm1354_vm11 }
 0x1de   : > { %v1322_v21 = vmul.f32 %v1321_v45, %v3578_v37  ;;  %v1389_v2 = vmul.f32 %v2484_v18, %v4038_v8  ;;  %v1437_v31 = vand.u32 2147483647, %v4051_v44  ;;  %v1439_v30 = vand.u32 2147483648, %v4051_v44 }
 0x1df   : > { %v1352_v22 = vadd.f32 %v2482_v26, %v1351_v60  ;;  %v1466_v47 = vmul.f32 %v1465_v36, %v3460_v40  ;;  %v1500_v56 = vmul.f32 %v1499_v32, %v3462_v10  ;;  %vm1394_vm14 = vweird.f32 %v2484_v18  ;;  %v4589_v36 = vld [vmem:[#allocation59_spill] sm:$0xff] }
 0x1e0   : > { %v2339_v25 = vclamps-f32 %v1322_v21, 1.0  ;;  %v1390_v37 = vsub.f32 1.0, %v1389_v2  ;;  %v1539_v52 = vadd.f32 0.001143296, %v1538_v35  ;;  %vm1433_vm15 = vweird.f32 %v4051_v44  ;;  %vm1395_vm1 = vmor %vm1393_vm10, %vm1394_vm14  ;;  %v4588_v35 = vld [vmem:[#allocation49_spill] sm:$0xff] }
 0x1e1   : > { %v1356_v54 = vsel %vm1355_vm13, %v2482_v26, %v1352_v22  ;;  %v4078_v19 = vadd.f32 1.0, %v1466_v47  ;;  %v1501_v20 = vadd.f32 0.014752088, %v1500_v56  ;;  %v1578_v13 = vmul.f32 3.8918573e-05, %v3498_v62  ;;  %v2486_v7 = vpop.eup %2485 }
 0x1e2   : > { %v1902_v38 = vadd.f32 1.0, %v2339_v25  ;;  %v1361_v40 = vsel %vm4056_vm9, %v1360_v15, %v1356_v54  ;;  %v1391_v27 = vmul.f32 %v2484_v18, %v1390_v37  ;;  %v1540_v59 = vmul.f32 %v1539_v52, %v3476_v48  ;;  %v4590_v52 = vld [vmem:[#allocation67_spill] sm:$0xff] }
 0x1e3   : > { %v1362_v24 = vmul.f32 %v1361_v40, %v3609_v61  ;;  %v1429_v42 = vmul.f32 %v2486_v7, %v4051_v44  ;;  %vm4086_vm0 = vcmp.eq.f32.partialorder %v1437_v31, 8.507059e+37  ;;  %2487 = vrcp.f32 %v4078_v19 }
 0x1e4   : > { %v1934_v0 = vmul.f32 %v1902_v38, %v4587_v4  ;;  %v1392_v12 = vadd.f32 %v2484_v18, %v1391_v27  ;;  %v1440_v26 = vor.u32 1.1754944e-38, %v1439_v30  ;;  %v1618_v11 = vmul.f32 3.8918573e-05, %v3525_v57  ;;  %v4591_v38 = vld [vmem:[#allocation53_spill] sm:$0xff] }
 0x1e5   : > { %v2340_v46 = vclamps-f32 %v1362_v24, 1.0  ;;  %v1430_v61 = vsub.f32 1.0, %v1429_v42  ;;  %vm1434_vm2 = vweird.f32 %v2486_v7  ;;  %v1502_v29 = vmul.f32 %v1501_v20, %v3462_v10 }
 0x1e6   : > { %2086 = vmatmul.f32.gmra.mxu1 %v1934_v0  ;;  %v1396_v39 = vsel %vm1395_vm1, %v2484_v18, %v1392_v12  ;;  %v1477_v17 = vand.u32 2147483647, %v4078_v19  ;;  %v1541_v16 = vadd.f32 0.014752088, %v1540_v59  ;;  %v1579_v49 = vadd.f32 0.001143296, %v1578_v13  ;;  %vm1435_vm3 = vmor %vm1433_vm15, %vm1434_vm2 }
 0x1e7   : > { %v1903_v3 = vadd.f32 1.0, %v2340_v46  ;;  %v1401_v63 = vsel %vm4067_vm12, %v1400_v51, %v1396_v39  ;;  %v1431_v50 = vmul.f32 %v2486_v7, %v1430_v61  ;;  %v1479_v33 = vand.u32 2147483648, %v4078_v19 }
 0x1e8   : > { %v1402_v8 = vmul.f32 %v1401_v63, %v3622_v1  ;;  %v1503_v55 = vadd.f32 0.112945676, %v1502_v29  ;;  %v1542_v15 = vmul.f32 %v1541_v16, %v3476_v48  ;;  %v1580_v32 = vmul.f32 %v1579_v49, %v3498_v62  ;;  %v4592_v16 = vld [vmem:[#allocation56_spill] sm:$0xff]  ;;  %v4593_v63 = vld [vmem:[#allocation61_spill] sm:$0xff] }
 0x1e9   : > { %v2488_v34 = vpop.eup %2487  ;;  %v1935_v18 = vmul.f32 %v1903_v3, %v4588_v35  ;;  %v1432_v45 = vadd.f32 %v2486_v7, %v1431_v50  ;;  %v1619_v60 = vadd.f32 0.001143296, %v1618_v11  ;;  %v1658_v21 = vmul.f32 3.8918573e-05, %v4589_v36 }
 0x1ea   : > { %v2341_v2 = vclamps-f32 %v1402_v8, 1.0  ;;  %v1469_v6 = vmul.f32 %v2488_v34, %v4078_v19  ;;  %vm1474_vm4 = vweird.f32 %v2488_v34  ;;  %v1504_v1 = vmul.f32 %v1503_v55, %v3462_v10  ;;  %v4595_v8 = vld [vmem:[#allocation74_spill] sm:$0xff] }
 0x1eb   : > { %2127 = vmatmul.f32.gmra.mxu2 %v1935_v18  ;;  %v1436_v51 = vsel %vm1435_vm3, %v2486_v7, %v1432_v45  ;;  %v1543_v31 = vadd.f32 0.112945676, %v1542_v15  ;;  %v1581_v22 = vadd.f32 0.014752088, %v1580_v32  ;;  %v1620_v30 = vmul.f32 %v1619_v60, %v3525_v57 }
 0x1ec   : > { %v1904_v47 = vadd.f32 1.0, %v2341_v2  ;;  %v1441_v56 = vsel %vm4086_vm0, %v1440_v26, %v1436_v51  ;;  %v1470_v25 = vsub.f32 1.0, %v1469_v6  ;;  %v1505_v37 = vadd.f32 0.4994258, %v1504_v1 }
 0x1ed   : > { %v1442_v44 = vmul.f32 %v1441_v56, %v4590_v52  ;;  %v1544_v54 = vmul.f32 %v1543_v31, %v3476_v48  ;;  %v1582_v20 = vmul.f32 %v1581_v22, %v3498_v62  ;;  %v1621_v13 = vadd.f32 0.014752088, %v1620_v30  ;;  %v4599_v56 = vld [vmem:[#allocation58_spill] sm:$0xff] }
 0x1ee   : > { %v1936_v40 = vmul.f32 %v1904_v47, %v4591_v38  ;;  %v1471_v7 = vmul.f32 %v2488_v34, %v1470_v25  ;;  %v1506_v27 = vmul.f32 %v1505_v37, %v3462_v10  ;;  %v1659_v59 = vadd.f32 0.001143296, %v1658_v21 }
 0x1ef   : > { %v2342_v24 = vclamps-f32 %v1442_v44, 1.0  ;;  %v1545_v42 = vadd.f32 0.4994258, %v1544_v54  ;;  %v1583_v4 = vadd.f32 0.112945676, %v1582_v20  ;;  %v1622_v28 = vmul.f32 %v1621_v13, %v3525_v57 }
 0x1f0   : > { %2168 = vmatmul.f32.gmra.mxu3 %v1936_v40  ;;  %v1472_v0 = vadd.f32 %v2488_v34, %v1471_v7  ;;  %vm1473_vm5 = vweird.f32 %v4078_v19  ;;  %v1480_v12 = vor.u32 1.1754944e-38, %v1479_v33  ;;  %v4121_v26 = vadd.f32 1.0, %v1506_v27  ;;  %v4594_v33 = vld [vmem:[#allocation60_spill] sm:$0xff] }
 0x1f1   : > { %v1905_v11 = vadd.f32 1.0, %v2342_v24  ;;  %vm1475_vm6 = vmor %vm1473_vm5, %vm1474_vm4  ;;  %v1546_v46 = vmul.f32 %v1545_v42, %v3476_v48  ;;  %v1584_v10 = vmul.f32 %v1583_v4, %v3498_v62  ;;  %v1623_v61 = vadd.f32 0.112945676, %v1622_v28  ;;  %v4596_v48 = vld [vmem:[#allocation70_spill] sm:$0xff] }
 0x1f2   : > { %v1476_v29 = vsel %vm1475_vm6, %v2488_v34, %v1472_v0  ;;  %vm1478_vm7 = vcmp.eq.f32.partialorder %v1477_v17, 8.507059e+37  ;;  %2489 = vrcp.f32 %v4121_v26  ;;  %v1660_v39 = vmul.f32 %v1659_v59, %v4589_v36 }
 0x1f3   : > { %v1937_v49 = vmul.f32 %v1905_v11, %v4592_v16  ;;  %v1481_v19 = vsel %vm1478_vm7, %v1480_v12, %v1476_v29  ;;  %v4129_v3 = vadd.f32 1.0, %v1546_v46  ;;  %v1698_v50 = vmul.f32 3.8918573e-05, %v4593_v63 }
 0x1f4   : > { %v4134_v55 = vmul.f32 %v4595_v8, %v4594_v33  ;;  %v1482_v15 = vmul.f32 %v1481_v19, %v4596_v48  ;;  %v1585_v32 = vadd.f32 0.4994258, %v1584_v10  ;;  %v1624_v17 = vmul.f32 %v1623_v61, %v3525_v57 }
 0x1f5   : > { %v4139_v34 = vadd.f32 0.18741608, %v3794_v14  ;;  %v4142_v35 = vadd.f32 0.18741608, %v4016_v9  ;;  %2048 = vmatmul.f32.gmra.mxu0 %v1937_v49  ;;  %v1517_v18 = vand.u32 2147483647, %v4121_v26  ;;  %2491 = vrcp.f32 %v4129_v3 }
 0x1f6   : > { %v4148_v45 = vmul.f32 %v4023_v23, %v3676_v5  ;;  %v2343_v60 = vclamps-f32 %v1482_v15, 1.0  ;;  %v1586_v21 = vmul.f32 %v1585_v32, %v3498_v62  ;;  %v1625_v2 = vadd.f32 0.4994258, %v1624_v17  ;;  %v4604_v17 = vld [vmem:[#allocation71_spill] sm:$0xff] }
 0x1f7   : > { %v4152_v6 = vadd.f32 0.0036580483, %v4027_v58  ;;  %vm1513_vm8 = vweird.f32 %v4121_v26  ;;  %v1661_v14 = vadd.f32 0.014752088, %v1660_v39  ;;  %v1699_v9 = vadd.f32 0.001143296, %v1698_v50 }
 0x1f8   : > { %v2490_v1 = vpop.eup %2489  ;;  %v1906_v51 = vadd.f32 1.0, %v2343_v60  ;;  %v1519_v31 = vand.u32 2147483648, %v4121_v26  ;;  %v4156_v22 = vadd.f32 1.0, %v1586_v21  ;;  %v1626_v23 = vmul.f32 %v1625_v2, %v3525_v57 }
 0x1f9   : > { %v1509_v30 = vmul.f32 %v2490_v1, %v4121_v26  ;;  %vm4160_vm9 = vcmp.eq.f32.partialorder %v1517_v18, 8.507059e+37  ;;  %v1662_v58 = vmul.f32 %v1661_v14, %v4589_v36  ;;  %v1700_v47 = vmul.f32 %v1699_v9, %v4593_v63 }
 0x1fa   : > { %v1938_v25 = vmul.f32 %v1906_v51, %v4599_v56  ;;  %v1557_v37 = vand.u32 2147483647, %v4129_v3  ;;  %v1559_v52 = vand.u32 2147483648, %v4129_v3  ;;  %2493 = vrcp.f32 %v4156_v22 }
 0x1fb   : > { %v2492_v44 = vpop.eup %2491  ;;  %v1510_v57 = vsub.f32 1.0, %v1509_v30  ;;  %v1599_v54 = vand.u32 2147483648, %v4156_v22  ;;  %v4171_v20 = vadd.f32 1.0, %v1626_v23  ;;  %v1663_v13 = vadd.f32 0.112945676, %v1662_v58  ;;  %v4605_v30 = vld [vmem:[#allocation50_spill] sm:$0xff] }
 0x1fc   : > { %2089 = vmatmul.f32.gmra.mxu1 %v1938_v25  ;;  %v1520_v38 = vor.u32 1.1754944e-38, %v1519_v31  ;;  %v1549_v40 = vmul.f32 %v2492_v44, %v4129_v3  ;;  %vm1553_vm10 = vweird.f32 %v4129_v3  ;;  %v1701_v7 = vadd.f32 0.014752088, %v1700_v47 }
 0x1fd   : > { %v1511_v27 = vmul.f32 %v2490_v1, %v1510_v57  ;;  %vm1514_vm11 = vweird.f32 %v2490_v1  ;;  %v1597_v59 = vand.u32 2147483647, %v4156_v22  ;;  %2495 = vrcp.f32 %v4171_v20  ;;  %v4606_v57 = vld [vmem:[#allocation63_spill] sm:$0xff] }
 0x1fe   : > { %v1550_v24 = vsub.f32 1.0, %v1549_v40  ;;  %vm4177_vm12 = vcmp.eq.f32.partialorder %v1557_v37, 8.507059e+37  ;;  %v1560_v4 = vor.u32 1.1754944e-38, %v1559_v52  ;;  %v1664_v28 = vmul.f32 %v1663_v13, %v4589_v36  ;;  %vm1515_vm15 = vmor %vm1513_vm8, %vm1514_vm11 }
 0x1ff   : > { %v1512_v0 = vadd.f32 %v2490_v1, %v1511_v27  ;;  %vm1554_vm13 = vweird.f32 %v2492_v44  ;;  %vm1593_vm14 = vweird.f32 %v4156_v22  ;;  %v1600_v12 = vor.u32 1.1754944e-38, %v1599_v54 }
 0x200   : > { %v1702_v11 = vmul.f32 %v1701_v7, %v4593_v63  ;;  %v2494_v46 = vpop.eup %2493  ;;  %v1551_v10 = vmul.f32 %v2492_v44, %v1550_v24  ;;  %v1637_v61 = vand.u32 2147483647, %v4171_v20  ;;  %v1665_v29 = vadd.f32 0.4994258, %v1664_v28  ;;  %vm1555_vm1 = vmor %vm1553_vm10, %vm1554_vm13  ;;  %v4609_v24 = vld [vmem:[#allocation52_spill] sm:$0xff] }
 0x201   : > { %v1738_v39 = vmul.f32 3.8918573e-05, %v3619_v41  ;;  %v1516_v16 = vsel %vm1515_vm15, %v2490_v1, %v1512_v0  ;;  %v1589_v49 = vmul.f32 %v2494_v46, %v4156_v22  ;;  %vm4189_vm0 = vcmp.eq.f32.partialorder %v1597_v59, 8.507059e+37 }
 0x202   : > { %v1639_v50 = vand.u32 2147483648, %v4171_v20  ;;  %v1703_v33 = vadd.f32 0.112945676, %v1702_v11  ;;  %v1521_v26 = vsel %vm4160_vm9, %v1520_v38, %v1516_v16  ;;  %v1552_v8 = vadd.f32 %v2492_v44, %v1551_v10  ;;  %v4610_v11 = vld [vmem:[#allocation64_spill] sm:$0xff] }
 0x203   : > { %v1666_v48 = vmul.f32 %v1665_v29, %v4589_v36  ;;  %v1778_v15 = vmul.f32 3.8918573e-05, %v3637_v53  ;;  %v2496_v32 = vpop.eup %2495  ;;  %v1522_v18 = vmul.f32 %v1521_v26, %v4604_v17  ;;  %v1590_v60 = vsub.f32 1.0, %v1589_v49  ;;  %v4611_v16 = vld [vmem:[#allocation72_spill] sm:$0xff]  ;;  %v4614_v17 = vld [vmem:[#allocation17_spill] sm:$0xff] }
 0x204   : > { %vm1594_vm2 = vweird.f32 %v2494_v46  ;;  %v1704_v21 = vmul.f32 %v1703_v33, %v4593_v63  ;;  %v1556_v2 = vsel %vm1555_vm1, %v2492_v44, %v1552_v8  ;;  %v1629_v14 = vmul.f32 %v2496_v32, %v4171_v20 }
 0x205   : > { %v4204_v9 = vadd.f32 1.0, %v1666_v48  ;;  %v1739_v1 = vadd.f32 0.001143296, %v1738_v39  ;;  %v2344_v36 = vclamps-f32 %v1522_v18, 1.0  ;;  %v1561_v51 = vsel %vm4177_vm12, %v1560_v4, %v1556_v2  ;;  %vm1595_vm5 = vmor %vm1593_vm14, %vm1594_vm2 }
 0x206   : > { %v1591_v31 = vmul.f32 %v2494_v46, %v1590_v60  ;;  %v1705_v23 = vadd.f32 0.4994258, %v1704_v21  ;;  %v1562_v62 = vmul.f32 %v1561_v51, %v4605_v30  ;;  %v1630_v3 = vsub.f32 1.0, %v1629_v14 }
 0x207   : > { %vm1633_vm3 = vweird.f32 %v4171_v20  ;;  %2497 = vrcp.f32 %v4204_v9  ;;  %v1907_v58 = vadd.f32 1.0, %v2344_v36  ;;  %vm1634_vm4 = vweird.f32 %v2496_v32 }
 0x208   : > { %v1592_v47 = vadd.f32 %v2494_v46, %v1591_v31  ;;  %v1779_v56 = vadd.f32 0.001143296, %v1778_v15  ;;  %v2345_v25 = vclamps-f32 %v1562_v62, 1.0  ;;  %v1631_v37 = vmul.f32 %v2496_v32, %v1630_v3  ;;  %vm1635_vm7 = vmor %vm1633_vm3, %vm1634_vm4 }
 0x209   : > { %v1706_v52 = vmul.f32 %v1705_v23, %v4593_v63  ;;  %v1740_v44 = vmul.f32 %v1739_v1, %v3619_v41  ;;  %v1939_v54 = vmul.f32 %v1907_v58, %v4606_v57  ;;  %vm4217_vm6 = vcmp.eq.f32.partialorder %v1637_v61, 8.507059e+37  ;;  %v4615_v58 = vld [vmem:[#allocation19_spill] sm:$0xff] }
 0x20a   : > { %v1596_v13 = vsel %vm1595_vm5, %v2494_v46, %v1592_v47  ;;  %v1640_v40 = vor.u32 1.1754944e-38, %v1639_v50  ;;  %v1908_v7 = vadd.f32 1.0, %v2345_v25  ;;  %v1632_v59 = vadd.f32 %v2496_v32, %v1631_v37 }
 0x20b   : > { %v1601_v27 = vsel %vm4189_vm0, %v1600_v12, %v1596_v13  ;;  %v4223_v22 = vadd.f32 1.0, %v1706_v52  ;;  %2130 = vmatmul.f32.gmra.mxu2 %v1939_v54  ;;  %v1741_v42 = vadd.f32 0.014752088, %v1740_v44  ;;  %v1780_v4 = vmul.f32 %v1779_v56, %v3637_v53 }
 0x20c   : > { %v1602_v63 = vmul.f32 %v1601_v27, %v4609_v24  ;;  %v1818_v28 = vmul.f32 3.8918573e-05, %v3676_v5  ;;  %v1940_v46 = vmul.f32 %v1908_v7, %v4610_v11  ;;  %v1636_v10 = vsel %vm1635_vm7, %v2496_v32, %v1632_v59  ;;  %v4616_v7 = vld [vmem:[#allocation73_spill] sm:$0xff] }
 0x20d   : > { %v2498_v0 = vpop.eup %2497  ;;  %v1677_v12 = vand.u32 2147483647, %v4204_v9  ;;  %2499 = vrcp.f32 %v4223_v22  ;;  %v4235_v61 = vadd.f32 0.05243302, %v4148_v45  ;;  %v1641_v20 = vsel %vm4217_vm6, %v1640_v40, %v1636_v10 }
 0x20e   : > { %v2346_v29 = vclamps-f32 %v1602_v63, 1.0  ;;  %v1669_v39 = vmul.f32 %v2498_v0, %v4204_v9  ;;  %2171 = vmatmul.f32.gmra.mxu3 %v1940_v46  ;;  %v1642_v49 = vmul.f32 %v1641_v20, %v4611_v16  ;;  %vm1673_vm8 = vweird.f32 %v4204_v9 }
 0x20f   : > { %v1679_v19 = vand.u32 2147483648, %v4204_v9  ;;  %v1742_v50 = vmul.f32 %v1741_v42, %v3619_v41  ;;  %v1781_v8 = vadd.f32 0.014752088, %v1780_v4  ;;  %v1819_v45 = vadd.f32 0.001143296, %v1818_v28 }
 0x210   : > { %v1909_v33 = vadd.f32 1.0, %v2346_v29  ;;  %v1670_v26 = vsub.f32 1.0, %v1669_v39  ;;  %v2347_v48 = vclamps-f32 %v1642_v49, 1.0  ;;  %vm1674_vm9 = vweird.f32 %v2498_v0  ;;  %v4617_v49 = vld [vmem:[#allocation66_spill] sm:$0xff] }
 0x211   : > { %vm4244_vm10 = vcmp.eq.f32.partialorder %v1677_v12, 8.507059e+37  ;;  %v1743_v32 = vadd.f32 0.112945676, %v1742_v50  ;;  %v1782_v21 = vmul.f32 %v1781_v8, %v3637_v53  ;;  %v1820_v2 = vmul.f32 %v1819_v45, %v3676_v5  ;;  %vm1675_vm11 = vmor %vm1673_vm8, %vm1674_vm9 }
 0x212   : > { %v1941_v18 = vmul.f32 %v1909_v33, %v4614_v17  ;;  %v1671_v60 = vmul.f32 %v2498_v0, %v1670_v26  ;;  %v1910_v1 = vadd.f32 1.0, %v2347_v48  ;;  %v1680_v36 = vor.u32 1.1754944e-38, %v1679_v19 }
 0x213   : > { %v2500_v14 = vpop.eup %2499  ;;  %v1744_v51 = vmul.f32 %v1743_v32, %v3619_v41  ;;  %v1858_v31 = vmul.f32 3.8918573e-05, %v3702_v43  ;;  %v1717_v62 = vand.u32 2147483647, %v4223_v22  ;;  %v1783_v3 = vadd.f32 0.112945676, %v1782_v21 }
 0x214   : > { %2051 = vmatmul.f32.gmra.mxu0 %v1941_v18  ;;  %v1672_v23 = vadd.f32 %v2498_v0, %v1671_v60  ;;  %v1709_v30 = vmul.f32 %v2500_v14, %v4223_v22  ;;  %v1942_v47 = vmul.f32 %v1910_v1, %v4615_v58  ;;  %v1821_v25 = vadd.f32 0.014752088, %v1820_v2  ;;  %v4618_v32 = vld [vmem:[#allocation57_spill] sm:$0xff]  ;;  %v4619_v21 = vld [vmem:[#allocation62_spill] sm:$0xff] }
 0x215   : > { %v1745_v56 = vadd.f32 0.4994258, %v1744_v51  ;;  %v1859_v37 = vadd.f32 0.001143296, %v1858_v31  ;;  %v1719_v57 = vand.u32 2147483648, %v4223_v22  ;;  %v1784_v54 = vmul.f32 %v1783_v3, %v3637_v53 }
 0x216   : > { %v1676_v52 = vsel %vm1675_vm11, %v2498_v0, %v1672_v23  ;;  %v1710_v44 = vsub.f32 1.0, %v1709_v30  ;;  %2092 = vmatmul.f32.gmra.mxu1 %v1942_v47  ;;  %v1822_v40 = vmul.f32 %v1821_v25, %v3676_v5  ;;  %vm1714_vm12 = vweird.f32 %v2500_v14  ;;  %v4301_v31 = vld [vmem:[%s4391_s4] ss:$0 sm:$0xff]  ;;  %v2034_v23 = vpop.f32.mrf.mxu0  ;;  %v2116_v25 = vpop.f32.mrf.mxu2 }
 0x217   : > { %v1681_v13 = vsel %vm4244_vm10, %v1680_v36, %v1676_v52  ;;  %v1746_v38 = vmul.f32 %v1745_v56, %v3619_v41  ;;  %v1860_v9 = vmul.f32 %v1859_v37, %v3702_v43  ;;  %v1785_v24 = vadd.f32 0.4994258, %v1784_v54  ;;  %v2075_v56 = vpop.f32.mrf.mxu1  ;;  %v4621_v37 = vld [vmem:[#allocation30_spill] sm:$0xff] }
 0x218   : > { %v1682_v27 = vmul.f32 %v1681_v13, %v4616_v7  ;;  %v1711_v59 = vmul.f32 %v2500_v14, %v1710_v44  ;;  %v1735_v63 = vmul.f32 %v4139_v34, %v3619_v41  ;;  %v1823_v4 = vadd.f32 0.112945676, %v1822_v40 }
 0x219   : > { %v4269_v42 = vadd.f32 1.0, %v1746_v38  ;;  %v1861_v28 = vadd.f32 0.014752088, %v1860_v9  ;;  %vm1713_vm13 = vweird.f32 %v4223_v22  ;;  %v1786_v46 = vmul.f32 %v1785_v24, %v3637_v53 }
 0x21a   : > { %v2348_v0 = vclamps-f32 %v1682_v27, 1.0  ;;  %v1712_v11 = vadd.f32 %v2500_v14, %v1711_v59  ;;  %v1851_v10 = vmul.f32 %v4152_v6, %v3702_v43  ;;  %vm1715_vm14 = vmor %vm1713_vm13, %vm1714_vm12  ;;  %vm1718_vm15 = vcmp.eq.f32.partialorder %v1717_v62, 8.507059e+37 }
 0x21b   : > { %v1720_v12 = vor.u32 1.1754944e-38, %v1719_v57  ;;  %2501 = vrcp.f32 %v4269_v42  ;;  %v4276_v34 = vadd.f32 1.0, %v1786_v46  ;;  %v1824_v20 = vmul.f32 %v1823_v4, %v3676_v5 }
 0x21c   : > { %v1911_v29 = vadd.f32 1.0, %v2348_v0  ;;  %v1716_v41 = vsel %vm1715_vm14, %v2500_v14, %v1712_v11  ;;  %v1775_v39 = vmul.f32 %v4142_v35, %v3637_v53  ;;  %v1813_v22 = vmul.f32 %v4235_v61, %v3676_v5  ;;  %v4620_v14 = vld [vmem:[#allocation16_spill] sm:$0xff] }
 0x21d   : > { %v1721_v16 = vsel %vm1718_vm15, %v1720_v12, %v1716_v41  ;;  %v1862_v6 = vmul.f32 %v1861_v28, %v3702_v43  ;;  %2503 = vrcp.f32 %v4276_v34  ;;  %v1736_v33 = vadd.f32 1.1283791, %v1735_v63  ;;  %v2157_v63 = vpop.f32.mrf.mxu3 }
 0x21e   : > { %v1943_v19 = vmul.f32 %v1911_v29, %v4617_v49  ;;  %v1722_v50 = vmul.f32 %v1721_v16, %v4134_v55  ;;  %v1852_v26 = vadd.f32 0.05243302, %v1851_v10  ;;  %v1825_v8 = vadd.f32 0.4994258, %v1824_v20  ;;  %v2037_v29 = vpop.f32.mrf.mxu0 }
 0x21f   : > { %v1863_v48 = vadd.f32 0.112945676, %v1862_v6  ;;  %v1776_v53 = vadd.f32 1.1283791, %v1775_v39  ;;  %v1814_v35 = vadd.f32 0.18741608, %v1813_v22  ;;  %v1737_v1 = vmul.f32 %v1736_v33, %v4620_v14 }
 0x220   : > { %2133 = vmatmul.f32.gmra.mxu2 %v1943_v19  ;;  %v2349_v45 = vclamps-f32 %v1722_v50, 1.0  ;;  %v1826_v61 = vmul.f32 %v1825_v8, %v3676_v5  ;;  %v568_v17 = vmul.f32 0.5, %v4618_v32  ;;  %v4292_v2 = vmul.f32 0.5, %v4619_v21  ;;  %v2078_v8 = vpop.f32.mrf.mxu1  ;;  %v4623_v32 = vld [vmem:[#allocation18_spill] sm:$0xff] }
 0x221   : > { %v2502_v15 = vpop.eup %2501  ;;  %v1864_v55 = vmul.f32 %v1863_v48, %v3702_v43  ;;  %v1853_v36 = vmul.f32 %v1852_v26, %v3702_v43  ;;  %v1759_v58 = vand.u32 2147483648, %v4269_v42  ;;  %v1777_v52 = vmul.f32 %v1776_v53, %v4621_v37 }
 0x222   : > { %v1912_v18 = vadd.f32 1.0, %v2349_v45  ;;  %v1749_v60 = vmul.f32 %v2502_v15, %v4269_v42  ;;  %v4296_v51 = vadd.f32 1.0, %v1826_v61  ;;  %v1815_v44 = vmul.f32 %v1814_v35, %v3676_v5  ;;  %v2119_v45 = vpop.f32.mrf.mxu2 }
 0x223   : > { %v2504_v30 = vpop.eup %2503  ;;  %v1865_v47 = vadd.f32 0.4994258, %v1864_v55  ;;  %vm1754_vm0 = vweird.f32 %v2502_v15  ;;  %v1757_v13 = vand.u32 2147483647, %v4269_v42  ;;  %v1854_v40 = vadd.f32 0.18741608, %v1853_v36 }
 0x224   : > { %v1944_v62 = vmul.f32 %v1912_v18, %v568_v17  ;;  %v1750_v3 = vsub.f32 1.0, %v1749_v60  ;;  %v1789_v57 = vmul.f32 %v2504_v30, %v4276_v34  ;;  %2505 = vrcp.f32 %v4296_v51 }
 0x225   : > { %v1866_v38 = vmul.f32 %v1865_v47, %v3702_v43  ;;  %vm1753_vm1 = vweird.f32 %v4269_v42  ;;  %v2035_v7 = vadd.f32 %v4301_v31, %v2034_v23  ;;  %v1760_v59 = vor.u32 1.1754944e-38, %v1759_v58 }
 0x226   : > { %2174 = vmatmul.f32.gmra.mxu3 %v1944_v62  ;;  %v1751_v54 = vmul.f32 %v2502_v15, %v1750_v3  ;;  %v1790_v9 = vsub.f32 1.0, %v1789_v57  ;;  %v1799_v5 = vand.u32 2147483648, %v4276_v34  ;;  %vm1755_vm2 = vmor %vm1753_vm1, %vm1754_vm0  ;;  %vm1794_vm3 = vweird.f32 %v2504_v30  ;;  %v2040_v47 = vpop.f32.mrf.mxu0 }
 0x227   : > { %v4313_v24 = vadd.f32 1.0, %v1866_v38  ;;  %v1797_v28 = vand.u32 2147483647, %v4276_v34  ;;  %v2076_v0 = vadd.f32 %v2075_v56, %v2035_v7  ;;  %v1816_v11 = vadd.f32 1.1283791, %v1815_v44 }
 0x228   : > { %v1752_v27 = vadd.f32 %v2502_v15, %v1751_v54  ;;  %v1791_v4 = vmul.f32 %v2504_v30, %v1790_v9  ;;  %vm1758_vm4 = vcmp.eq.f32.partialorder %v1757_v13, 8.507059e+37  ;;  %vm1793_vm5 = vweird.f32 %v4276_v34 }
 0x229   : > { %2507 = vrcp.f32 %v4313_v24  ;;  %v2117_v41 = vadd.f32 %v2116_v25, %v2076_v0  ;;  %v1855_v20 = vmul.f32 %v1854_v40, %v3702_v43  ;;  %vm1795_vm6 = vmor %vm1793_vm5, %vm1794_vm3  ;;  %v1800_v22 = vor.u32 1.1754944e-38, %v1799_v5  ;;  %v4622_v43 = vld [vmem:[#allocation65_spill] sm:$0xff] }
 0x22a   : > { %v1756_v46 = vsel %vm1755_vm2, %v2502_v15, %v1752_v27  ;;  %v2506_v42 = vpop.eup %2505  ;;  %v1792_v12 = vadd.f32 %v2504_v30, %v1791_v4  ;;  %vm1798_vm7 = vcmp.eq.f32.partialorder %v1797_v28, 8.507059e+37  ;;  %v2038_v49 = vadd.f32 %v4301_v31, %v2037_v29  ;;  %v2081_v9 = vpop.f32.mrf.mxu1  ;;  %v4624_v27 = vld [vmem:[#allocation69_spill] sm:$0xff]  ;;  %v4625_v4 = vld [vmem:[#allocation15_spill] sm:$0xff]  ;;  %v4626_v29 = vld [vmem:[#allocation68_spill] sm:$0xff] }
 0x22b   : > { %v1761_v10 = vsel %vm1758_vm4, %v1760_v59, %v1756_v46  ;;  %v1829_v16 = vmul.f32 %v2506_v42, %v4296_v51  ;;  %v2158_v19 = vadd.f32 %v2157_v63, %v2117_v41  ;;  %v1837_v34 = vand.u32 2147483647, %v4296_v51 }
 0x22c   : > { %v1762_v39 = vmul.f32 %v1761_v10, %v1737_v1  ;;  %v1796_v6 = vsel %vm1795_vm6, %v2504_v30, %v1792_v12  ;;  %v570_v48 = vmul.f32 0.5, %v4622_v43  ;;  %v1839_v53 = vand.u32 2147483648, %v4296_v51  ;;  %v2160_v30 = vpop.f32.mrf.mxu3 }
 0x22d   : > { %v1801_v33 = vsel %vm1798_vm7, %v1800_v22, %v1796_v6  ;;  %v1830_v26 = vsub.f32 1.0, %v1829_v16  ;;  %v2079_v35 = vadd.f32 %v2078_v8, %v2038_v49  ;;  %2181 = vst [vmem:[%s4327_s28] sm:$0xff] %v2158_v19  ;;  %v1817_v17 = vmul.f32 %v1816_v11, %v4623_v32 }
 0x22e   : > { %v2350_v50 = vclamps-f32 %v1762_v39, 1.0  ;;  %v1802_v15 = vmul.f32 %v1801_v33, %v1777_v52  ;;  %vm1834_vm8 = vweird.f32 %v2506_v42  ;;  %v1856_v55 = vadd.f32 1.1283791, %v1855_v20 }
 0x22f   : > { %v2508_v61 = vpop.eup %2507  ;;  %v1831_v60 = vmul.f32 %v2506_v42, %v1830_v26  ;;  %v2120_v1 = vadd.f32 %v2119_v45, %v2079_v35  ;;  %vm1833_vm9 = vweird.f32 %v4296_v51  ;;  %vm1838_vm10 = vcmp.eq.f32.partialorder %v1837_v34, 8.507059e+37 }
 0x230   : > { %v1913_v18 = vadd.f32 1.0, %v2350_v50  ;;  %v2351_v21 = vclamps-f32 %v1802_v15, 1.0  ;;  %v1869_v14 = vmul.f32 %v2508_v61, %v4313_v24  ;;  %vm1835_vm11 = vmor %vm1833_vm9, %vm1834_vm8  ;;  %v1840_v3 = vor.u32 1.1754944e-38, %v1839_v53 }
 0x231   : > { %v1832_v23 = vadd.f32 %v2506_v42, %v1831_v60  ;;  %v2161_v56 = vadd.f32 %v2160_v30, %v2120_v1  ;;  %vm1874_vm12 = vweird.f32 %v2508_v61  ;;  %v1877_v37 = vand.u32 2147483647, %v4313_v24 }
 0x232   : > { %v1945_v36 = vmul.f32 %v1913_v18, %v4292_v2  ;;  %v1914_v62 = vadd.f32 1.0, %v2351_v21  ;;  %v1870_v58 = vsub.f32 1.0, %v1869_v14  ;;  %v1879_v52 = vand.u32 2147483648, %v4313_v24 }
 0x233   : > { %v1836_v25 = vsel %vm1835_vm11, %v2506_v42, %v1832_v23  ;;  %v2041_v51 = vadd.f32 %v4301_v31, %v2040_v47  ;;  %2182 = vst [vmem:[%s4327_s28 + $0x8] sm:$0xff] %v2161_v56  ;;  %vm1873_vm13 = vweird.f32 %v4313_v24  ;;  %v1857_v59 = vmul.f32 %v1856_v55, %v4624_v27 }
 0x234   : > { %2054 = vmatmul.f32.gmra.mxu0 %v1945_v36  ;;  %v1946_v2 = vmul.f32 %v1914_v62, %v570_v48  ;;  %v1841_v44 = vsel %vm1838_vm10, %v1840_v3, %v1836_v25  ;;  %v1871_v57 = vmul.f32 %v2508_v61, %v1870_v58  ;;  %vm1875_vm14 = vmor %vm1873_vm13, %vm1874_vm12  ;;  %v1880_v40 = vor.u32 1.1754944e-38, %v1879_v52 }
 0x235   : > { %v1842_v54 = vmul.f32 %v1841_v44, %v1817_v17  ;;  %v2122_v7 = vpop.f32.mrf.mxu2  ;;  %vm1878_vm15 = vcmp.eq.f32.partialorder %v1877_v37, 8.507059e+37  ;;  %v2082_v63 = vadd.f32 %v2081_v9, %v2041_v51  ;;  %v571_v28 = vmul.f32 0.5, %v4625_v4 }
 0x236   : > { %2095 = vmatmul.f32.gmra.mxu1 %v1946_v2  ;;  %v1872_v13 = vadd.f32 %v2508_v61, %v1871_v57  ;;  %v572_v41 = vmul.f32 0.5, %v4626_v29 }
 0x237   : > { %v2352_v38 = vclamps-f32 %v1842_v54, 1.0  ;;  %v2123_v42 = vadd.f32 %v2122_v7, %v2082_v63 }
 0x238   : > { %v1876_v5 = vsel %vm1875_vm14, %v2508_v61, %v1872_v13 }
 0x239   : > { %v1915_v0 = vadd.f32 1.0, %v2352_v38  ;;  %v1881_v11 = vsel %vm1878_vm15, %v1880_v40, %v1876_v5 }
 0x23a   : > { %v1882_v46 = vmul.f32 %v1881_v11, %v1857_v59 }
 0x23b   : > { %v1947_v10 = vmul.f32 %v1915_v0, %v571_v28 }
 0x23c   : > { %v2353_v12 = vclamps-f32 %v1882_v46, 1.0  ;;  %v2163_v24 = vpop.f32.mrf.mxu3 }
 0x23d   : > { %2136 = vmatmul.f32.gmra.mxu2 %v1947_v10  ;;  %v2164_v39 = vadd.f32 %v2163_v24, %v2123_v42 }
 0x23e   : > { %v1916_v20 = vadd.f32 1.0, %v2353_v12  ;;  %v2043_v16 = vpop.f32.mrf.mxu0 }
 0x23f   : > { %2183 = vst [vmem:[%s4327_s28 + $0x10] sm:$0xff] %v2164_v39  ;;  %v2044_v6 = vadd.f32 %v4301_v31, %v2043_v16 }
 0x240   : > { %v1948_v22 = vmul.f32 %v1916_v20, %v572_v41 }
 0x242   : > { %2177 = vmatmul.f32.gmra.mxu3 %v1948_v22 }
 0x248   : > { %v2084_v49 = vpop.f32.mrf.mxu1 }
 0x249   : > { %v2085_v19 = vadd.f32 %v2084_v49, %v2044_v6 }
 0x251   : > { %v2125_v50 = vpop.f32.mrf.mxu2 }
 0x252   : > { %v2126_v33 = vadd.f32 %v2125_v50, %v2085_v19 }
 0x256   : > { %v2166_v26 = vpop.f32.mrf.mxu3 }
 0x257   : > { %v2167_v34 = vadd.f32 %v2166_v26, %v2126_v33 }
 0x258   : > { %v2046_v8 = vpop.f32.mrf.mxu0 }
 0x259   : > { %2184 = vst [vmem:[%s4327_s28 + $0x18] sm:$0xff] %v2167_v34  ;;  %v2047_v45 = vadd.f32 %v4301_v31, %v2046_v8 }
 0x263   : > { %v2087_v43 = vpop.f32.mrf.mxu1 }
 0x264   : > { %v2088_v48 = vadd.f32 %v2087_v43, %v2047_v45 }
 0x26e   : > { %v2128_v15 = vpop.f32.mrf.mxu2 }
 0x26f   : > { %v2129_v53 = vadd.f32 %v2128_v15, %v2088_v48 }
 0x272   : > { %v2049_v32 = vpop.f32.mrf.mxu0 }
 0x273   : > { %v2169_v35 = vpop.f32.mrf.mxu3  ;;  %v2050_v17 = vadd.f32 %v4301_v31, %v2049_v32 }
 0x274   : > { %v2170_v61 = vadd.f32 %v2169_v35, %v2129_v53 }
 0x276   : > { %2185 = vst [vmem:[%s4327_s28 + $0x20] sm:$0xff] %v2170_v61 }
 0x279   : > { %v2090_v18 = vpop.f32.mrf.mxu1 }
 0x27a   : > { %v2091_v60 = vadd.f32 %v2090_v18, %v2050_v17 }
 0x28e   : > { %v2131_v55 = vpop.f32.mrf.mxu2 }
 0x28f   : > { %v2132_v21 = vadd.f32 %v2131_v55, %v2091_v60 }
 0x291   : > { %v2172_v14 = vpop.f32.mrf.mxu3  ;;  %v2052_v36 = vpop.f32.mrf.mxu0 }
 0x292   : > { %v2173_v1 = vadd.f32 %v2172_v14, %v2132_v21  ;;  %v2053_v23 = vadd.f32 %v4301_v31, %v2052_v36 }
 0x293   : > { %v2093_v30 = vpop.f32.mrf.mxu1 }
 0x294   : > { %2186 = vst [vmem:[%s4327_s28 + $0x28] sm:$0xff] %v2173_v1  ;;  %v2094_v3 = vadd.f32 %v2093_v30, %v2053_v23 }
 0x2a3   : > { %v2134_v62 = vpop.f32.mrf.mxu2 }
 0x2a4   : > { %v2135_v58 = vadd.f32 %v2134_v62, %v2094_v3 }
 0x2a9   : > { %v2175_v47 = vpop.f32.mrf.mxu3 }
 0x2aa   : > { %v2176_v56 = vadd.f32 %v2175_v47, %v2135_v58 }
 0x2ac   : > { %2187 = vst [vmem:[%s4327_s28 + $0x30] sm:$0xff] %v2176_v56 }
 0x2b1   : > { %v2055_v25 = vpop.f32.mrf.mxu0 }
 0x2b2   : > { %v2056_v37 = vadd.f32 %v4301_v31, %v2055_v25 }
 0x2b3   : > { %v2096_v52 = vpop.f32.mrf.mxu1 }
 0x2b4   : > { %v2097_v2 = vadd.f32 %v2096_v52, %v2056_v37 }
 0x2c0   : > { %v2137_v44 = vpop.f32.mrf.mxu2 }
 0x2c1   : > { %v2138_v57 = vadd.f32 %v2137_v44, %v2097_v2 }
 0x2c5   : > { %v2178_v51 = vpop.f32.mrf.mxu3 }
 0x2c6   : > { %v2179_v54 = vadd.f32 %v2178_v51, %v2138_v57 }
 0x2c8   : > { %2188 = vst [vmem:[%s4327_s28 + $0x38] sm:$0xff] %v2179_v54 }
 0x2c9   : > { %2656 = shalt.err (!%p2653_p10)
}
 0x2ca   : > { %s2712_s17 = smov 128   ;;  %s2713_s29 = smov 8  }
 0x2cb   : > { %2375 = dma.vmem_to_hbm [thread:$0]  (%p2829_p3), %s2203_s13, 1024, %s2205_s12, %s2190_s14, %s2712_s17, %s2712_s17, %s2713_s29  }
 0x2cc PF: > { %s2219_s28 = sand.u32 1, %s2691_s18   ;;  %p4627_p12 = scmp.ge.s32.totalorder %s2703_s21, 2 }
 0x2cd   : > { %s2220_s16 = scalar_lea.sflag [#allocation4], %s2219_s28 }
 0x2ce   : > { %p2392_p13 = pnand %p4627_p12, %p2779_p6 }
 0x2d0   : > { %p2393_p0 = pneg %p2392_p13 }
 0x2d2   : > { %2686 = dma.done.wait (%p2393_p0), %s2220_s16, 1024  }
 0x2d3   : > { %2688 = vsyncadd (%p2393_p0), %s2220_s16, 4294966272  ;;  %p20_p5 = scmp.ge.s32.totalorder %s2816_s30, 4   ;;  %s4628_s18 = smov %s2695_s19 }
 0x2d4   : > { %s4629_s19 = smov %s2699_s20  ;;  %s4630_s20 = smov %s2825_s9 }
 0x2d5   : > { %s4631_s21 = smov %s2816_s30  ;;  %22 = sbr.rel (!%p20_p5) target bundleno = 7 (0x7), region = 97 }
 0x2da   :  { %2226 = vsyncpa [#allocation3], 1 }
 0x2db   :  { %2228 = vsyncpa [#allocation3 + $0x1], 1 }
 0x2dc   :  { %2229 = vsyncpa [#allocation6], 1 }
 0x2dd   :  { %2230 = vsyncpa [#allocation9], 1 }
 0x2de   :  { %2231 = vsyncpa [#allocation4], 1 }
 0x2df   :  { %2233 = vsyncpa [#allocation4 + $0x1], 1 }

</bundles_post_ra>
